<compile_context>
chip_gen: v6e
topology: v6e:2x2x1
jax: 0.10.0
libtpu: 0.0.40
codegen_flags: <defaults>
</compile_context>

<pallas_src>
from functools import partial

import numpy as np
import jax
import jax.numpy as jnp
from jax import lax
from jax.experimental import pallas as pl
from jax.experimental.pallas import tpu as pltpu

_BN_EPS = 1e-5
_E_LAMBDA = 1e-4      # simam e_lambda
_SUB = 8              # TPU sublane tile
_TAPS = tuple((kh, kw) for kh in (-1, 0, 1) for kw in (-1, 0, 1))


# ----------------------------------------------------------------------------
# Pallas kernel: one batch element per grid step, everything in (C, H*W) layout
# ----------------------------------------------------------------------------
def bfam_kernel(x1_ref, x2_ref, xeo_ref, mask_ref,
                wdw_ref, bdw_ref, wfuse_ref, bfuse_ref, wout_ref, bout_ref,
                o_ref, *, H, W, e_lambda, matmul_dtype):
    P = H * W
    x1 = x1_ref[0]                       # (Cp, P)   f32
    x2 = x2_ref[0]                       # (Cp, P)
    xeo = xeo_ref[0]                     # (2Cp, P)  sublane-stacked even/odd group inputs
    Cp = x1.shape[0]

    def simam(v):
        mu = jnp.mean(v, axis=1, keepdims=True)
        dev = jnp.square(v - mu)
        denom = 4.0 * (jnp.sum(dev, axis=1, keepdims=True) * (1.0 / (P - 1))
                       + e_lambda)
        inv = pl.reciprocal(denom, approx=True)      # EUP, (Cp,1) column only
        return v * jax.nn.sigmoid(dev * inv + 0.5)

    # --- four grouped dilated 3x3 convs: one roll + one precomputed mask +
    #     one multiply per tap on the (2Cp, P) stacked input; chunks are
    #     collected so the fuse 1x1 conv is a single K=4*Cp matmul. ---
    c_chunks = []
    for d in range(4):                               # dilation = d + 1
        dil = d + 1
        acc = jnp.zeros((2 * Cp, P), jnp.float32)
        for t, (kh, kw) in enumerate(_TAPS):
            w_t = wdw_ref[d, t]                      # (2Cp, 1)
            if kh == 0 and kw == 0:                  # center tap: no shift/mask
                acc = acc + w_t * xeo
            else:
                off = kh * dil * W + kw * dil
                shifted = pltpu.roll(xeo, (-off) % P, axis=1)   # XLU lane rotate
                m = mask_ref[d * 9 + t: d * 9 + t + 1, :]       # (1, P) f32
                acc = acc + (w_t * shifted) * m
        # reduce the two group-input planes + bias -> conv_{d+1}(cat(x1,x2))
        c_chunks.append(acc[:Cp, :] + acc[Cp:, :] + bdw_ref[d])  # (Cp, P)

    # fuse: 1x1 conv (+ folded BN) as ONE matmul, then ReLU
    cat4 = jnp.concatenate(c_chunks, axis=0).astype(matmul_dtype)     # (4Cp, P)
    fuse0 = jnp.maximum(
        jnp.dot(wfuse_ref[...], cat4, preferred_element_type=jnp.float32)
        + bfuse_ref[...], 0.0)

    # --- simam branches and merge ---
    m1 = simam(x1) * fuse0
    m2 = simam(x2) * fuse0
    pre = simam(fuse0) + x1 + x2 + m2 + m1

    # --- out: dense 3x3 conv (+ folded BN) as ONE K=9*Cp matmul -> ReLU -> simam
    taps9 = []
    for t, (kh, kw) in enumerate(_TAPS):
        if kh == 0 and kw == 0:
            taps9.append(pre)
        else:
            off = kh * W + kw
            shifted = pltpu.roll(pre, (-off) % P, axis=1)
            taps9.append(shifted * mask_ref[t: t + 1, :])   # dilation-1 masks
    cat9 = jnp.concatenate(taps9, axis=0).astype(matmul_dtype)        # (9Cp, P)
    out0 = jnp.maximum(
        jnp.dot(wout_ref[...], cat9, preferred_element_type=jnp.float32)
        + bout_ref[...], 0.0)
    o_ref[0] = simam(out0).astype(o_ref.dtype)


# ----------------------------------------------------------------------------
# Wrapper: layout plumbing, BN folding, mask/tap packing, pallas_call
# ----------------------------------------------------------------------------
def _pad_to(a, axis, size):
    if a.shape[axis] == size:
        return a
    pad = [(0, 0)] * a.ndim
    pad[axis] = (0, size - a.shape[axis])
    return jnp.pad(a, pad)


@partial(jax.jit, static_argnames=("matmul_dtype",))
def bfam_forward(inp1, inp2, params, matmul_dtype=jnp.bfloat16):
    N, C, H, W = inp1.shape              # requires inp channels == out channels
    Cout = params["w_o"].shape[0]
    P = H * W
    Cp = ((C + _SUB - 1) // _SUB) * _SUB
    Coutp = ((Cout + _SUB - 1) // _SUB) * _SUB

    # roll+mask shifts are exact only while the largest offset stays inside one
    # flattened image (max dilation = 4 in BFAM).
    assert 4 * W + 4 < P, "max dilated-conv offset must be < H*W"

    # activations: NCHW -> (N, C, H*W); even/odd grouped-conv input planes
    # stacked along sublanes; channels zero-padded to the 8-sublane tile.
    x1 = _pad_to(inp1.reshape(N, C, P), 1, Cp)
    x2 = _pad_to(inp2.reshape(N, C, P), 1, Cp)
    xcat = jnp.concatenate([inp1.reshape(N, C, P), inp2.reshape(N, C, P)], axis=1)
    xeo = jnp.concatenate([_pad_to(xcat[:, 0::2, :], 1, Cp),
                           _pad_to(xcat[:, 1::2, :], 1, Cp)], axis=1)  # (N, 2Cp, P)

    # precomputed boundary masks: (4 dilations x 9 taps, P) f32 (host numpy,
    # constant-folded); the out conv reuses the dilation-1 rows [0:9].
    rr = np.arange(P) // W
    cc = np.arange(P) % W
    masks = []
    for d in range(4):
        dil = d + 1
        for kh, kw in _TAPS:
            dy, dx = kh * dil, kw * dil
            masks.append(((rr + dy >= 0) & (rr + dy < H) &
                          (cc + dx >= 0) & (cc + dx < W)).astype(np.float32))
    mask = jnp.asarray(np.stack(masks, axis=0))                  # (36, P)

    # grouped dilated 3x3 conv weights -> (4, 9, 2Cp, 1): even group-input
    # weights in rows [0:Cp], odd group-input weights in rows [Cp:2Cp]
    w_taps = params["w_dw"].transpose(0, 3, 4, 1, 2).reshape(4, 9, C, 2)
    w_dw = jnp.concatenate([_pad_to(w_taps[..., 0], 2, Cp),
                            _pad_to(w_taps[..., 1], 2, Cp)], axis=2)[..., None]
    b_dw = _pad_to(params["b_dw"][..., None], 1, Cp)             # (4, Cp, 1)

    # fuse 1x1 conv with BN folded, packed for a single (Cp, 4Cp) matmul
    s_f = params["gamma_f"] / jnp.sqrt(params["var_f"] + _BN_EPS)
    wf = (s_f[:, None] * params["w_f"][:, :, 0, 0]).reshape(C, 4, C)
    w_fuse = _pad_to(_pad_to(wf, 0, Cp), 2, Cp).reshape(Cp, 4 * Cp)
    w_fuse = w_fuse.astype(matmul_dtype)
    b_fuse = _pad_to((s_f * (params["b_f"] - params["mean_f"])
                      + params["beta_f"])[:, None], 0, Cp)       # (Cp, 1)

    # out 3x3 conv with BN folded, packed for a single (Coutp, 9Cp) matmul
    s_o = params["gamma_o"] / jnp.sqrt(params["var_o"] + _BN_EPS)
    wo = (s_o[:, None, None, None] * params["w_o"]).transpose(2, 3, 0, 1)
    wo = _pad_to(_pad_to(wo.reshape(9, Cout, C), 1, Coutp), 2, Cp)   # (9,Coutp,Cp)
    w_out = wo.transpose(1, 0, 2).reshape(Coutp, 9 * Cp).astype(matmul_dtype)
    b_out = _pad_to((s_o * (params["b_o"] - params["mean_o"])
                     + params["beta_o"])[:, None], 0, Coutp)     # (Coutp, 1)

    kernel = partial(bfam_kernel, H=H, W=W, e_lambda=_E_LAMBDA,
                     matmul_dtype=matmul_dtype)

    operands = (x1, x2, xeo, mask, w_dw, b_dw, w_fuse, b_fuse, w_out, b_out)

    def batch_spec(a):
        return pl.BlockSpec((1,) + a.shape[1:], lambda n: (n, 0, 0))

    def full_spec(a):
        nd = a.ndim
        return pl.BlockSpec(a.shape, lambda n, _nd=nd: (0,) * _nd)

    in_specs = [batch_spec(x1), batch_spec(x2), batch_spec(xeo)]
    in_specs += [full_spec(a) for a in operands[3:]]

    # advisory cost hint (per-block accounting for activations / output)
    flops = int(N * P * (4 * 9 * 3 * 2 * Cp            # dilated-conv taps
                         + 2 * Cp * 4 * Cp             # fuse matmul
                         + 2 * Coutp * 9 * Cp          # out matmul
                         + 60 * Cp))                   # simam + merge (approx)
    transcendentals = int(N * P * 4 * Cp)
    bytes_accessed = int((x1.size + x2.size + xeo.size) * 4
                         + sum(int(a.size) * a.dtype.itemsize
                               for a in operands[3:])
                         + N * Coutp * P * 4)

    out = pl.pallas_call(
        kernel,
        out_shape=jax.ShapeDtypeStruct((N, Coutp, P), jnp.float32),
        grid=(N,),
        in_specs=in_specs,
        out_specs=pl.BlockSpec((1, Coutp, P), lambda n: (n, 0, 0)),
        compiler_params=pltpu.CompilerParams(
            dimension_semantics=("parallel",)),
        cost_estimate=pl.CostEstimate(
            flops=flops, transcendentals=transcendentals,
            bytes_accessed=bytes_accessed),
    )(*operands)

    return out[:, :Cout, :].reshape(N, Cout, H, W)


# ----------------------------------------------------------------------------
# Deterministic parameters (PyTorch layouts, eval-mode BN statistics)
# ----------------------------------------------------------------------------
def make_params(key, inp, out):
    C, Cout = inp, out
    ks = jax.random.split(key, 11)

    def w_init(k, shape, fan_in):
        return jax.random.normal(k, shape, jnp.float32) / np.sqrt(float(fan_in))

    def bn_init(k, ch):
        k1, k2, k3, k4 = jax.random.split(k, 4)
        return (1.0 + 0.1 * jax.random.normal(k1, (ch,), jnp.float32),     # gamma
                0.1 * jax.random.normal(k2, (ch,), jnp.float32),           # beta
                0.1 * jax.random.normal(k3, (ch,), jnp.float32),           # mean
                jnp.abs(jax.random.normal(k4, (ch,), jnp.float32)) + 0.5)  # var

    w_dw = jnp.stack([w_init(ks[i], (C, 2, 3, 3), 2 * 9) for i in range(4)])
    b_dw = 0.1 * jax.random.normal(ks[4], (4, C), jnp.float32)
    w_f = w_init(ks[5], (C, 4 * C, 1, 1), 4 * C)
    b_f = 0.1 * jax.random.normal(ks[6], (C,), jnp.float32)
    gamma_f, beta_f, mean_f, var_f = bn_init(ks[7], C)
    w_o = w_init(ks[8], (Cout, C, 3, 3), 9 * C)
    b_o = 0.1 * jax.random.normal(ks[9], (Cout,), jnp.float32)
    gamma_o, beta_o, mean_o, var_o = bn_init(ks[10], Cout)
    return dict(w_dw=w_dw, b_dw=b_dw, w_f=w_f, b_f=b_f,
                gamma_f=gamma_f, beta_f=beta_f, mean_f=mean_f, var_f=var_f,
                w_o=w_o, b_o=b_o, gamma_o=gamma_o, beta_o=beta_o,
                mean_o=mean_o, var_o=var_o)


# ----------------------------------------------------------------------------
# Pure-JAX reference (faithful to the PyTorch module, NCHW)
# ----------------------------------------------------------------------------
def bfam_reference(inp1, inp2, p):
    C = inp1.shape[1]

    def bn(v, g, b, m, var):
        rs = lambda a: a.reshape(1, -1, 1, 1)
        return rs(g) * (v - rs(m)) / jnp.sqrt(rs(var) + _BN_EPS) + rs(b)

    def simam(v):
        n = v.shape[2] * v.shape[3] - 1
        mu = v.mean(axis=(2, 3), keepdims=True)
        dev = jnp.square(v - mu)
        y = dev / (4.0 * (dev.sum(axis=(2, 3), keepdims=True) / n + _E_LAMBDA)) + 0.5
        return v * jax.nn.sigmoid(y)

    dn = ("NCHW", "OIHW", "NCHW")
    hi = lax.Precision.HIGHEST
    x = jnp.concatenate([inp1, inp2], axis=1)
    cs = []
    for d in range(4):
        dil = d + 1
        c = lax.conv_general_dilated(
            x, p["w_dw"][d], (1, 1), [(dil, dil), (dil, dil)],
            rhs_dilation=(dil, dil), dimension_numbers=dn,
            feature_group_count=C, precision=hi)
        cs.append(c + p["b_dw"][d].reshape(1, -1, 1, 1))
    cat = jnp.concatenate(cs, axis=1)
    fuse = lax.conv_general_dilated(
        cat, p["w_f"], (1, 1), [(0, 0), (0, 0)],
        dimension_numbers=dn, precision=hi) + p["b_f"].reshape(1, -1, 1, 1)
    fuse = jnp.maximum(bn(fuse, p["gamma_f"], p["beta_f"], p["mean_f"], p["var_f"]), 0.0)
    m1 = simam(inp1) * fuse
    m2 = simam(inp2) * fuse
    fuse = simam(fuse)
    out = lax.conv_general_dilated(
        fuse + inp1 + inp2 + m2 + m1, p["w_o"], (1, 1), [(1, 1), (1, 1)],
        dimension_numbers=dn, precision=hi) + p["b_o"].reshape(1, -1, 1, 1)
    out = jnp.maximum(bn(out, p["gamma_o"], p["beta_o"], p["mean_o"], p["var_o"]), 0.0)
    return simam(out)


# ----------------------------------------------------------------------------
if __name__ == "__main__":
    N, C, H, W = 2, 4, 16, 16            # BFAM(inp=4, out=4); inp2 also 4 channels
    key = jax.random.PRNGKey(0)
    k1, k2, kp = jax.random.split(key, 3)
    inp1 = jax.random.normal(k1, (N, C, H, W), jnp.float32)
    inp2 = jax.random.normal(k2, (N, C, H, W), jnp.float32)
    params = make_params(kp, C, C)

    ref = bfam_reference(inp1, inp2, params)

    # f32-matmul variant: tight check of the kernel logic (only folded-BN
    # rounding + approx EUP reciprocal differ from the reference).
    out_f32 = jax.block_until_ready(
        bfam_forward(inp1, inp2, params, matmul_dtype=jnp.float32))
    assert out_f32.shape == (N, C, H, W)
    np.testing.assert_allclose(np.asarray(out_f32), np.asarray(ref),
                               rtol=1e-2, atol=1e-2)

    # bf16-matmul variant (default / production config).
    out_bf16 = jax.block_until_ready(
        bfam_forward(inp1, inp2, params, matmul_dtype=jnp.bfloat16))
    assert out_bf16.shape == (N, C, H, W)
    np.testing.assert_allclose(np.asarray(out_bf16), np.asarray(ref),
                               rtol=5e-2, atol=5e-2)

    print("KERNEL_OK")
</pallas_src>

<mosaic_0001>
module attributes {stable_mosaic.version = 11 : i64} {
  func.func @bfam_kernel(%arg0: i32, %arg1: memref<1x8x256xf32, #tpu.memory_space<vmem>>, %arg2: memref<1x8x256xf32, #tpu.memory_space<vmem>>, %arg3: memref<1x16x256xf32, #tpu.memory_space<vmem>>, %arg4: memref<36x256xf32, #tpu.memory_space<vmem>>, %arg5: memref<4x9x16x1xf32, #tpu.memory_space<vmem>>, %arg6: memref<4x8x1xf32, #tpu.memory_space<vmem>>, %arg7: memref<8x32xf32, #tpu.memory_space<vmem>>, %arg8: memref<8x1xf32, #tpu.memory_space<vmem>>, %arg9: memref<8x72xf32, #tpu.memory_space<vmem>>, %arg10: memref<8x1xf32, #tpu.memory_space<vmem>>, %arg11: memref<1x8x256xf32, #tpu.memory_space<vmem>>) attributes {dimension_semantics = [#tpu.dimension_semantics<parallel>], iteration_bounds = array<i64: 2>, scalar_prefetch = 0 : i64, scratch_operands = 0 : i64, tpu.core_type = #tpu.core_type<tc>, window_params = [{transform_indices = @transform_0, window_bounds = array<i64: 1, 8, 256>}, {transform_indices = @transform_1, window_bounds = array<i64: 1, 8, 256>}, {transform_indices = @transform_2, window_bounds = array<i64: 1, 16, 256>}, {pipeline_mode = #tpu.pipeline_mode<synchronous>, transform_indices = @transform_3, window_bounds = array<i64: 36, 256>}, {pipeline_mode = #tpu.pipeline_mode<synchronous>, transform_indices = @transform_4, window_bounds = array<i64: 4, 9, 16, 1>}, {pipeline_mode = #tpu.pipeline_mode<synchronous>, transform_indices = @transform_5, window_bounds = array<i64: 4, 8, 1>}, {pipeline_mode = #tpu.pipeline_mode<synchronous>, transform_indices = @transform_6, window_bounds = array<i64: 8, 32>}, {pipeline_mode = #tpu.pipeline_mode<synchronous>, transform_indices = @transform_7, window_bounds = array<i64: 8, 1>}, {pipeline_mode = #tpu.pipeline_mode<synchronous>, transform_indices = @transform_8, window_bounds = array<i64: 8, 72>}, {pipeline_mode = #tpu.pipeline_mode<synchronous>, transform_indices = @transform_9, window_bounds = array<i64: 8, 1>}, {transform_indices = @transform_10, window_bounds = array<i64: 1, 8, 256>}]} {
    %c0 = arith.constant 0 : index
    %c0_0 = arith.constant 0 : index
    %c0_1 = arith.constant 0 : index
    %0 = vector.load %arg1[%c0, %c0_0, %c0_1] : memref<1x8x256xf32, #tpu.memory_space<vmem>>, vector<1x8x256xf32>
    %1 = vector.shape_cast %0 : vector<1x8x256xf32> to vector<8x256xf32>
    %c0_2 = arith.constant 0 : index
    %c0_3 = arith.constant 0 : index
    %c0_4 = arith.constant 0 : index
    %2 = vector.load %arg2[%c0_2, %c0_3, %c0_4] : memref<1x8x256xf32, #tpu.memory_space<vmem>>, vector<1x8x256xf32>
    %3 = vector.shape_cast %2 : vector<1x8x256xf32> to vector<8x256xf32>
    %c0_5 = arith.constant 0 : index
    %c0_6 = arith.constant 0 : index
    %c0_7 = arith.constant 0 : index
    %4 = vector.load %arg3[%c0_5, %c0_6, %c0_7] : memref<1x16x256xf32, #tpu.memory_space<vmem>>, vector<1x16x256xf32>
    %5 = vector.shape_cast %4 : vector<1x16x256xf32> to vector<16x256xf32>
    %cst = arith.constant 0.000000e+00 : f32
    %6 = vector.broadcast %cst : f32 to vector<16x256xf32>
    %c0_8 = arith.constant 0 : index
    %c0_9 = arith.constant 0 : index
    %c0_10 = arith.constant 0 : index
    %c0_11 = arith.constant 0 : index
    %7 = vector.load %arg5[%c0_8, %c0_9, %c0_10, %c0_11] : memref<4x9x16x1xf32, #tpu.memory_space<vmem>>, vector<1x1x16x1xf32>
    %8 = vector.shape_cast %7 : vector<1x1x16x1xf32> to vector<16x1xf32>
    %c17_i32 = arith.constant 17 : i32
    %9 = tpu.dynamic_rotate %5 by %c17_i32 dim 1 : vector<16x256xf32>, i32 -> vector<16x256xf32>
    %c0_12 = arith.constant 0 : index
    %c0_13 = arith.constant 0 : index
    %10 = vector.load %arg4[%c0_12, %c0_13] : memref<36x256xf32, #tpu.memory_space<vmem>>, vector<1x256xf32>
    %11 = vector.broadcast %8 : vector<16x1xf32> to vector<16x256xf32>
    %12 = arith.mulf %11, %9 : vector<16x256xf32>
    %13 = vector.broadcast %10 : vector<1x256xf32> to vector<16x256xf32>
    %14 = arith.mulf %12, %13 : vector<16x256xf32>
    %15 = arith.addf %6, %14 : vector<16x256xf32>
    %c0_14 = arith.constant 0 : index
    %c1 = arith.constant 1 : index
    %c0_15 = arith.constant 0 : index
    %c0_16 = arith.constant 0 : index
    %16 = vector.load %arg5[%c0_14, %c1, %c0_15, %c0_16] : memref<4x9x16x1xf32, #tpu.memory_space<vmem>>, vector<1x1x16x1xf32>
    %17 = vector.shape_cast %16 : vector<1x1x16x1xf32> to vector<16x1xf32>
    %c16_i32 = arith.constant 16 : i32
    %18 = tpu.dynamic_rotate %5 by %c16_i32 dim 1 : vector<16x256xf32>, i32 -> vector<16x256xf32>
    %c1_17 = arith.constant 1 : index
    %c0_18 = arith.constant 0 : index
    %19 = vector.load %arg4[%c1_17, %c0_18] : memref<36x256xf32, #tpu.memory_space<vmem>>, vector<1x256xf32>
    %20 = vector.broadcast %17 : vector<16x1xf32> to vector<16x256xf32>
    %21 = arith.mulf %20, %18 : vector<16x256xf32>
    %22 = vector.broadcast %19 : vector<1x256xf32> to vector<16x256xf32>
    %23 = arith.mulf %21, %22 : vector<16x256xf32>
    %24 = arith.addf %15, %23 : vector<16x256xf32>
    %c0_19 = arith.constant 0 : index
    %c2 = arith.constant 2 : index
    %c0_20 = arith.constant 0 : index
    %c0_21 = arith.constant 0 : index
    %25 = vector.load %arg5[%c0_19, %c2, %c0_20, %c0_21] : memref<4x9x16x1xf32, #tpu.memory_space<vmem>>, vector<1x1x16x1xf32>
    %26 = vector.shape_cast %25 : vector<1x1x16x1xf32> to vector<16x1xf32>
    %c15_i32 = arith.constant 15 : i32
    %27 = tpu.dynamic_rotate %5 by %c15_i32 dim 1 : vector<16x256xf32>, i32 -> vector<16x256xf32>
    %c2_22 = arith.constant 2 : index
    %c0_23 = arith.constant 0 : index
    %28 = vector.load %arg4[%c2_22, %c0_23] : memref<36x256xf32, #tpu.memory_space<vmem>>, vector<1x256xf32>
    %29 = vector.broadcast %26 : vector<16x1xf32> to vector<16x256xf32>
    %30 = arith.mulf %29, %27 : vector<16x256xf32>
    %31 = vector.broadcast %28 : vector<1x256xf32> to vector<16x256xf32>
    %32 = arith.mulf %30, %31 : vector<16x256xf32>
    %33 = arith.addf %24, %32 : vector<16x256xf32>
    %c0_24 = arith.constant 0 : index
    %c3 = arith.constant 3 : index
    %c0_25 = arith.constant 0 : index
    %c0_26 = arith.constant 0 : index
    %34 = vector.load %arg5[%c0_24, %c3, %c0_25, %c0_26] : memref<4x9x16x1xf32, #tpu.memory_space<vmem>>, vector<1x1x16x1xf32>
    %35 = vector.shape_cast %34 : vector<1x1x16x1xf32> to vector<16x1xf32>
    %c1_i32 = arith.constant 1 : i32
    %36 = tpu.dynamic_rotate %5 by %c1_i32 dim 1 : vector<16x256xf32>, i32 -> vector<16x256xf32>
    %c3_27 = arith.constant 3 : index
    %c0_28 = arith.constant 0 : index
    %37 = vector.load %arg4[%c3_27, %c0_28] : memref<36x256xf32, #tpu.memory_space<vmem>>, vector<1x256xf32>
    %38 = vector.broadcast %35 : vector<16x1xf32> to vector<16x256xf32>
    %39 = arith.mulf %38, %36 : vector<16x256xf32>
    %40 = vector.broadcast %37 : vector<1x256xf32> to vector<16x256xf32>
    %41 = arith.mulf %39, %40 : vector<16x256xf32>
    %42 = arith.addf %33, %41 : vector<16x256xf32>
    %c0_29 = arith.constant 0 : index
    %c4 = arith.constant 4 : index
    %c0_30 = arith.constant 0 : index
    %c0_31 = arith.constant 0 : index
    %43 = vector.load %arg5[%c0_29, %c4, %c0_30, %c0_31] : memref<4x9x16x1xf32, #tpu.memory_space<vmem>>, vector<1x1x16x1xf32>
    %44 = vector.shape_cast %43 : vector<1x1x16x1xf32> to vector<16x1xf32>
    %45 = vector.broadcast %44 : vector<16x1xf32> to vector<16x256xf32>
    %46 = arith.mulf %45, %5 : vector<16x256xf32>
    %47 = arith.addf %42, %46 : vector<16x256xf32>
    %c0_32 = arith.constant 0 : index
    %c5 = arith.constant 5 : index
    %c0_33 = arith.constant 0 : index
    %c0_34 = arith.constant 0 : index
    %48 = vector.load %arg5[%c0_32, %c5, %c0_33, %c0_34] : memref<4x9x16x1xf32, #tpu.memory_space<vmem>>, vector<1x1x16x1xf32>
    %49 = vector.shape_cast %48 : vector<1x1x16x1xf32> to vector<16x1xf32>
    %c255_i32 = arith.constant 255 : i32
    %50 = tpu.dynamic_rotate %5 by %c255_i32 dim 1 : vector<16x256xf32>, i32 -> vector<16x256xf32>
    %c5_35 = arith.constant 5 : index
    %c0_36 = arith.constant 0 : index
    %51 = vector.load %arg4[%c5_35, %c0_36] : memref<36x256xf32, #tpu.memory_space<vmem>>, vector<1x256xf32>
    %52 = vector.broadcast %49 : vector<16x1xf32> to vector<16x256xf32>
    %53 = arith.mulf %52, %50 : vector<16x256xf32>
    %54 = vector.broadcast %51 : vector<1x256xf32> to vector<16x256xf32>
    %55 = arith.mulf %53, %54 : vector<16x256xf32>
    %56 = arith.addf %47, %55 : vector<16x256xf32>
    %c0_37 = arith.constant 0 : index
    %c6 = arith.constant 6 : index
    %c0_38 = arith.constant 0 : index
    %c0_39 = arith.constant 0 : index
    %57 = vector.load %arg5[%c0_37, %c6, %c0_38, %c0_39] : memref<4x9x16x1xf32, #tpu.memory_space<vmem>>, vector<1x1x16x1xf32>
    %58 = vector.shape_cast %57 : vector<1x1x16x1xf32> to vector<16x1xf32>
    %c241_i32 = arith.constant 241 : i32
    %59 = tpu.dynamic_rotate %5 by %c241_i32 dim 1 : vector<16x256xf32>, i32 -> vector<16x256xf32>
    %c6_40 = arith.constant 6 : index
    %c0_41 = arith.constant 0 : index
    %60 = vector.load %arg4[%c6_40, %c0_41] : memref<36x256xf32, #tpu.memory_space<vmem>>, vector<1x256xf32>
    %61 = vector.broadcast %58 : vector<16x1xf32> to vector<16x256xf32>
    %62 = arith.mulf %61, %59 : vector<16x256xf32>
    %63 = vector.broadcast %60 : vector<1x256xf32> to vector<16x256xf32>
    %64 = arith.mulf %62, %63 : vector<16x256xf32>
    %65 = arith.addf %56, %64 : vector<16x256xf32>
    %c0_42 = arith.constant 0 : index
    %c7 = arith.constant 7 : index
    %c0_43 = arith.constant 0 : index
    %c0_44 = arith.constant 0 : index
    %66 = vector.load %arg5[%c0_42, %c7, %c0_43, %c0_44] : memref<4x9x16x1xf32, #tpu.memory_space<vmem>>, vector<1x1x16x1xf32>
    %67 = vector.shape_cast %66 : vector<1x1x16x1xf32> to vector<16x1xf32>
    %c240_i32 = arith.constant 240 : i32
    %68 = tpu.dynamic_rotate %5 by %c240_i32 dim 1 : vector<16x256xf32>, i32 -> vector<16x256xf32>
    %c7_45 = arith.constant 7 : index
    %c0_46 = arith.constant 0 : index
    %69 = vector.load %arg4[%c7_45, %c0_46] : memref<36x256xf32, #tpu.memory_space<vmem>>, vector<1x256xf32>
    %70 = vector.broadcast %67 : vector<16x1xf32> to vector<16x256xf32>
    %71 = arith.mulf %70, %68 : vector<16x256xf32>
    %72 = vector.broadcast %69 : vector<1x256xf32> to vector<16x256xf32>
    %73 = arith.mulf %71, %72 : vector<16x256xf32>
    %74 = arith.addf %65, %73 : vector<16x256xf32>
    %c0_47 = arith.constant 0 : index
    %c8 = arith.constant 8 : index
    %c0_48 = arith.constant 0 : index
    %c0_49 = arith.constant 0 : index
    %75 = vector.load %arg5[%c0_47, %c8, %c0_48, %c0_49] : memref<4x9x16x1xf32, #tpu.memory_space<vmem>>, vector<1x1x16x1xf32>
    %76 = vector.shape_cast %75 : vector<1x1x16x1xf32> to vector<16x1xf32>
    %c239_i32 = arith.constant 239 : i32
    %77 = tpu.dynamic_rotate %5 by %c239_i32 dim 1 : vector<16x256xf32>, i32 -> vector<16x256xf32>
    %c8_50 = arith.constant 8 : index
    %c0_51 = arith.constant 0 : index
    %78 = vector.load %arg4[%c8_50, %c0_51] : memref<36x256xf32, #tpu.memory_space<vmem>>, vector<1x256xf32>
    %79 = vector.broadcast %76 : vector<16x1xf32> to vector<16x256xf32>
    %80 = arith.mulf %79, %77 : vector<16x256xf32>
    %81 = vector.broadcast %78 : vector<1x256xf32> to vector<16x256xf32>
    %82 = arith.mulf %80, %81 : vector<16x256xf32>
    %83 = arith.addf %74, %82 : vector<16x256xf32>
    %84 = vector.extract_strided_slice %83 {offsets = [0, 0], sizes = [8, 256], strides = [1, 1]} : vector<16x256xf32> to vector<8x256xf32>
    %85 = vector.extract_strided_slice %83 {offsets = [8, 0], sizes = [8, 256], strides = [1, 1]} : vector<16x256xf32> to vector<8x256xf32>
    %86 = arith.addf %84, %85 : vector<8x256xf32>
    %c0_52 = arith.constant 0 : index
    %c0_53 = arith.constant 0 : index
    %c0_54 = arith.constant 0 : index
    %87 = vector.load %arg6[%c0_52, %c0_53, %c0_54] : memref<4x8x1xf32, #tpu.memory_space<vmem>>, vector<1x8x1xf32>
    %88 = vector.shape_cast %87 : vector<1x8x1xf32> to vector<8x1xf32>
    %89 = vector.broadcast %88 : vector<8x1xf32> to vector<8x256xf32>
    %90 = arith.addf %86, %89 : vector<8x256xf32>
    %cst_55 = arith.constant 0.000000e+00 : f32
    %91 = vector.broadcast %cst_55 : f32 to vector<16x256xf32>
    %c1_56 = arith.constant 1 : index
    %c0_57 = arith.constant 0 : index
    %c0_58 = arith.constant 0 : index
    %c0_59 = arith.constant 0 : index
    %92 = vector.load %arg5[%c1_56, %c0_57, %c0_58, %c0_59] : memref<4x9x16x1xf32, #tpu.memory_space<vmem>>, vector<1x1x16x1xf32>
    %93 = vector.shape_cast %92 : vector<1x1x16x1xf32> to vector<16x1xf32>
    %c34_i32 = arith.constant 34 : i32
    %94 = tpu.dynamic_rotate %5 by %c34_i32 dim 1 : vector<16x256xf32>, i32 -> vector<16x256xf32>
    %c9 = arith.constant 9 : index
    %c0_60 = arith.constant 0 : index
    %95 = vector.load %arg4[%c9, %c0_60] : memref<36x256xf32, #tpu.memory_space<vmem>>, vector<1x256xf32>
    %96 = vector.broadcast %93 : vector<16x1xf32> to vector<16x256xf32>
    %97 = arith.mulf %96, %94 : vector<16x256xf32>
    %98 = vector.broadcast %95 : vector<1x256xf32> to vector<16x256xf32>
    %99 = arith.mulf %97, %98 : vector<16x256xf32>
    %100 = arith.addf %91, %99 : vector<16x256xf32>
    %c1_61 = arith.constant 1 : index
    %c1_62 = arith.constant 1 : index
    %c0_63 = arith.constant 0 : index
    %c0_64 = arith.constant 0 : index
    %101 = vector.load %arg5[%c1_61, %c1_62, %c0_63, %c0_64] : memref<4x9x16x1xf32, #tpu.memory_space<vmem>>, vector<1x1x16x1xf32>
    %102 = vector.shape_cast %101 : vector<1x1x16x1xf32> to vector<16x1xf32>
    %c32_i32 = arith.constant 32 : i32
    %103 = tpu.dynamic_rotate %5 by %c32_i32 dim 1 : vector<16x256xf32>, i32 -> vector<16x256xf32>
    %c10 = arith.constant 10 : index
    %c0_65 = arith.constant 0 : index
    %104 = vector.load %arg4[%c10, %c0_65] : memref<36x256xf32, #tpu.memory_space<vmem>>, vector<1x256xf32>
    %105 = vector.broadcast %102 : vector<16x1xf32> to vector<16x256xf32>
    %106 = arith.mulf %105, %103 : vector<16x256xf32>
    %107 = vector.broadcast %104 : vector<1x256xf32> to vector<16x256xf32>
    %108 = arith.mulf %106, %107 : vector<16x256xf32>
    %109 = arith.addf %100, %108 : vector<16x256xf32>
    %c1_66 = arith.constant 1 : index
    %c2_67 = arith.constant 2 : index
    %c0_68 = arith.constant 0 : index
    %c0_69 = arith.constant 0 : index
    %110 = vector.load %arg5[%c1_66, %c2_67, %c0_68, %c0_69] : memref<4x9x16x1xf32, #tpu.memory_space<vmem>>, vector<1x1x16x1xf32>
    %111 = vector.shape_cast %110 : vector<1x1x16x1xf32> to vector<16x1xf32>
    %c30_i32 = arith.constant 30 : i32
    %112 = tpu.dynamic_rotate %5 by %c30_i32 dim 1 : vector<16x256xf32>, i32 -> vector<16x256xf32>
    %c11 = arith.constant 11 : index
    %c0_70 = arith.constant 0 : index
    %113 = vector.load %arg4[%c11, %c0_70] : memref<36x256xf32, #tpu.memory_space<vmem>>, vector<1x256xf32>
    %114 = vector.broadcast %111 : vector<16x1xf32> to vector<16x256xf32>
    %115 = arith.mulf %114, %112 : vector<16x256xf32>
    %116 = vector.broadcast %113 : vector<1x256xf32> to vector<16x256xf32>
    %117 = arith.mulf %115, %116 : vector<16x256xf32>
    %118 = arith.addf %109, %117 : vector<16x256xf32>
    %c1_71 = arith.constant 1 : index
    %c3_72 = arith.constant 3 : index
    %c0_73 = arith.constant 0 : index
    %c0_74 = arith.constant 0 : index
    %119 = vector.load %arg5[%c1_71, %c3_72, %c0_73, %c0_74] : memref<4x9x16x1xf32, #tpu.memory_space<vmem>>, vector<1x1x16x1xf32>
    %120 = vector.shape_cast %119 : vector<1x1x16x1xf32> to vector<16x1xf32>
    %c2_i32 = arith.constant 2 : i32
    %121 = tpu.dynamic_rotate %5 by %c2_i32 dim 1 : vector<16x256xf32>, i32 -> vector<16x256xf32>
    %c12 = arith.constant 12 : index
    %c0_75 = arith.constant 0 : index
    %122 = vector.load %arg4[%c12, %c0_75] : memref<36x256xf32, #tpu.memory_space<vmem>>, vector<1x256xf32>
    %123 = vector.broadcast %120 : vector<16x1xf32> to vector<16x256xf32>
    %124 = arith.mulf %123, %121 : vector<16x256xf32>
    %125 = vector.broadcast %122 : vector<1x256xf32> to vector<16x256xf32>
    %126 = arith.mulf %124, %125 : vector<16x256xf32>
    %127 = arith.addf %118, %126 : vector<16x256xf32>
    %c1_76 = arith.constant 1 : index
    %c4_77 = arith.constant 4 : index
    %c0_78 = arith.constant 0 : index
    %c0_79 = arith.constant 0 : index
    %128 = vector.load %arg5[%c1_76, %c4_77, %c0_78, %c0_79] : memref<4x9x16x1xf32, #tpu.memory_space<vmem>>, vector<1x1x16x1xf32>
    %129 = vector.shape_cast %128 : vector<1x1x16x1xf32> to vector<16x1xf32>
    %130 = vector.broadcast %129 : vector<16x1xf32> to vector<16x256xf32>
    %131 = arith.mulf %130, %5 : vector<16x256xf32>
    %132 = arith.addf %127, %131 : vector<16x256xf32>
    %c1_80 = arith.constant 1 : index
    %c5_81 = arith.constant 5 : index
    %c0_82 = arith.constant 0 : index
    %c0_83 = arith.constant 0 : index
    %133 = vector.load %arg5[%c1_80, %c5_81, %c0_82, %c0_83] : memref<4x9x16x1xf32, #tpu.memory_space<vmem>>, vector<1x1x16x1xf32>
    %134 = vector.shape_cast %133 : vector<1x1x16x1xf32> to vector<16x1xf32>
    %c254_i32 = arith.constant 254 : i32
    %135 = tpu.dynamic_rotate %5 by %c254_i32 dim 1 : vector<16x256xf32>, i32 -> vector<16x256xf32>
    %c14 = arith.constant 14 : index
    %c0_84 = arith.constant 0 : index
    %136 = vector.load %arg4[%c14, %c0_84] : memref<36x256xf32, #tpu.memory_space<vmem>>, vector<1x256xf32>
    %137 = vector.broadcast %134 : vector<16x1xf32> to vector<16x256xf32>
    %138 = arith.mulf %137, %135 : vector<16x256xf32>
    %139 = vector.broadcast %136 : vector<1x256xf32> to vector<16x256xf32>
    %140 = arith.mulf %138, %139 : vector<16x256xf32>
    %141 = arith.addf %132, %140 : vector<16x256xf32>
    %c1_85 = arith.constant 1 : index
    %c6_86 = arith.constant 6 : index
    %c0_87 = arith.constant 0 : index
    %c0_88 = arith.constant 0 : index
    %142 = vector.load %arg5[%c1_85, %c6_86, %c0_87, %c0_88] : memref<4x9x16x1xf32, #tpu.memory_space<vmem>>, vector<1x1x16x1xf32>
    %143 = vector.shape_cast %142 : vector<1x1x16x1xf32> to vector<16x1xf32>
    %c226_i32 = arith.constant 226 : i32
    %144 = tpu.dynamic_rotate %5 by %c226_i32 dim 1 : vector<16x256xf32>, i32 -> vector<16x256xf32>
    %c15 = arith.constant 15 : index
    %c0_89 = arith.constant 0 : index
    %145 = vector.load %arg4[%c15, %c0_89] : memref<36x256xf32, #tpu.memory_space<vmem>>, vector<1x256xf32>
    %146 = vector.broadcast %143 : vector<16x1xf32> to vector<16x256xf32>
    %147 = arith.mulf %146, %144 : vector<16x256xf32>
    %148 = vector.broadcast %145 : vector<1x256xf32> to vector<16x256xf32>
    %149 = arith.mulf %147, %148 : vector<16x256xf32>
    %150 = arith.addf %141, %149 : vector<16x256xf32>
    %c1_90 = arith.constant 1 : index
    %c7_91 = arith.constant 7 : index
    %c0_92 = arith.constant 0 : index
    %c0_93 = arith.constant 0 : index
    %151 = vector.load %arg5[%c1_90, %c7_91, %c0_92, %c0_93] : memref<4x9x16x1xf32, #tpu.memory_space<vmem>>, vector<1x1x16x1xf32>
    %152 = vector.shape_cast %151 : vector<1x1x16x1xf32> to vector<16x1xf32>
    %c224_i32 = arith.constant 224 : i32
    %153 = tpu.dynamic_rotate %5 by %c224_i32 dim 1 : vector<16x256xf32>, i32 -> vector<16x256xf32>
    %c16 = arith.constant 16 : index
    %c0_94 = arith.constant 0 : index
    %154 = vector.load %arg4[%c16, %c0_94] : memref<36x256xf32, #tpu.memory_space<vmem>>, vector<1x256xf32>
    %155 = vector.broadcast %152 : vector<16x1xf32> to vector<16x256xf32>
    %156 = arith.mulf %155, %153 : vector<16x256xf32>
    %157 = vector.broadcast %154 : vector<1x256xf32> to vector<16x256xf32>
    %158 = arith.mulf %156, %157 : vector<16x256xf32>
    %159 = arith.addf %150, %158 : vector<16x256xf32>
    %c1_95 = arith.constant 1 : index
    %c8_96 = arith.constant 8 : index
    %c0_97 = arith.constant 0 : index
    %c0_98 = arith.constant 0 : index
    %160 = vector.load %arg5[%c1_95, %c8_96, %c0_97, %c0_98] : memref<4x9x16x1xf32, #tpu.memory_space<vmem>>, vector<1x1x16x1xf32>
    %161 = vector.shape_cast %160 : vector<1x1x16x1xf32> to vector<16x1xf32>
    %c222_i32 = arith.constant 222 : i32
    %162 = tpu.dynamic_rotate %5 by %c222_i32 dim 1 : vector<16x256xf32>, i32 -> vector<16x256xf32>
    %c17 = arith.constant 17 : index
    %c0_99 = arith.constant 0 : index
    %163 = vector.load %arg4[%c17, %c0_99] : memref<36x256xf32, #tpu.memory_space<vmem>>, vector<1x256xf32>
    %164 = vector.broadcast %161 : vector<16x1xf32> to vector<16x256xf32>
    %165 = arith.mulf %164, %162 : vector<16x256xf32>
    %166 = vector.broadcast %163 : vector<1x256xf32> to vector<16x256xf32>
    %167 = arith.mulf %165, %166 : vector<16x256xf32>
    %168 = arith.addf %159, %167 : vector<16x256xf32>
    %169 = vector.extract_strided_slice %168 {offsets = [0, 0], sizes = [8, 256], strides = [1, 1]} : vector<16x256xf32> to vector<8x256xf32>
    %170 = vector.extract_strided_slice %168 {offsets = [8, 0], sizes = [8, 256], strides = [1, 1]} : vector<16x256xf32> to vector<8x256xf32>
    %171 = arith.addf %169, %170 : vector<8x256xf32>
    %c1_100 = arith.constant 1 : index
    %c0_101 = arith.constant 0 : index
    %c0_102 = arith.constant 0 : index
    %172 = vector.load %arg6[%c1_100, %c0_101, %c0_102] : memref<4x8x1xf32, #tpu.memory_space<vmem>>, vector<1x8x1xf32>
    %173 = vector.shape_cast %172 : vector<1x8x1xf32> to vector<8x1xf32>
    %174 = vector.broadcast %173 : vector<8x1xf32> to vector<8x256xf32>
    %175 = arith.addf %171, %174 : vector<8x256xf32>
    %cst_103 = arith.constant 0.000000e+00 : f32
    %176 = vector.broadcast %cst_103 : f32 to vector<16x256xf32>
    %c2_104 = arith.constant 2 : index
    %c0_105 = arith.constant 0 : index
    %c0_106 = arith.constant 0 : index
    %c0_107 = arith.constant 0 : index
    %177 = vector.load %arg5[%c2_104, %c0_105, %c0_106, %c0_107] : memref<4x9x16x1xf32, #tpu.memory_space<vmem>>, vector<1x1x16x1xf32>
    %178 = vector.shape_cast %177 : vector<1x1x16x1xf32> to vector<16x1xf32>
    %c51_i32 = arith.constant 51 : i32
    %179 = tpu.dynamic_rotate %5 by %c51_i32 dim 1 : vector<16x256xf32>, i32 -> vector<16x256xf32>
    %c18 = arith.constant 18 : index
    %c0_108 = arith.constant 0 : index
    %180 = vector.load %arg4[%c18, %c0_108] : memref<36x256xf32, #tpu.memory_space<vmem>>, vector<1x256xf32>
    %181 = vector.broadcast %178 : vector<16x1xf32> to vector<16x256xf32>
    %182 = arith.mulf %181, %179 : vector<16x256xf32>
    %183 = vector.broadcast %180 : vector<1x256xf32> to vector<16x256xf32>
    %184 = arith.mulf %182, %183 : vector<16x256xf32>
    %185 = arith.addf %176, %184 : vector<16x256xf32>
    %c2_109 = arith.constant 2 : index
    %c1_110 = arith.constant 1 : index
    %c0_111 = arith.constant 0 : index
    %c0_112 = arith.constant 0 : index
    %186 = vector.load %arg5[%c2_109, %c1_110, %c0_111, %c0_112] : memref<4x9x16x1xf32, #tpu.memory_space<vmem>>, vector<1x1x16x1xf32>
    %187 = vector.shape_cast %186 : vector<1x1x16x1xf32> to vector<16x1xf32>
    %c48_i32 = arith.constant 48 : i32
    %188 = tpu.dynamic_rotate %5 by %c48_i32 dim 1 : vector<16x256xf32>, i32 -> vector<16x256xf32>
    %c19 = arith.constant 19 : index
    %c0_113 = arith.constant 0 : index
    %189 = vector.load %arg4[%c19, %c0_113] : memref<36x256xf32, #tpu.memory_space<vmem>>, vector<1x256xf32>
    %190 = vector.broadcast %187 : vector<16x1xf32> to vector<16x256xf32>
    %191 = arith.mulf %190, %188 : vector<16x256xf32>
    %192 = vector.broadcast %189 : vector<1x256xf32> to vector<16x256xf32>
    %193 = arith.mulf %191, %192 : vector<16x256xf32>
    %194 = arith.addf %185, %193 : vector<16x256xf32>
    %c2_114 = arith.constant 2 : index
    %c2_115 = arith.constant 2 : index
    %c0_116 = arith.constant 0 : index
    %c0_117 = arith.constant 0 : index
    %195 = vector.load %arg5[%c2_114, %c2_115, %c0_116, %c0_117] : memref<4x9x16x1xf32, #tpu.memory_space<vmem>>, vector<1x1x16x1xf32>
    %196 = vector.shape_cast %195 : vector<1x1x16x1xf32> to vector<16x1xf32>
    %c45_i32 = arith.constant 45 : i32
    %197 = tpu.dynamic_rotate %5 by %c45_i32 dim 1 : vector<16x256xf32>, i32 -> vector<16x256xf32>
    %c20 = arith.constant 20 : index
    %c0_118 = arith.constant 0 : index
    %198 = vector.load %arg4[%c20, %c0_118] : memref<36x256xf32, #tpu.memory_space<vmem>>, vector<1x256xf32>
    %199 = vector.broadcast %196 : vector<16x1xf32> to vector<16x256xf32>
    %200 = arith.mulf %199, %197 : vector<16x256xf32>
    %201 = vector.broadcast %198 : vector<1x256xf32> to vector<16x256xf32>
    %202 = arith.mulf %200, %201 : vector<16x256xf32>
    %203 = arith.addf %194, %202 : vector<16x256xf32>
    %c2_119 = arith.constant 2 : index
    %c3_120 = arith.constant 3 : index
    %c0_121 = arith.constant 0 : index
    %c0_122 = arith.constant 0 : index
    %204 = vector.load %arg5[%c2_119, %c3_120, %c0_121, %c0_122] : memref<4x9x16x1xf32, #tpu.memory_space<vmem>>, vector<1x1x16x1xf32>
    %205 = vector.shape_cast %204 : vector<1x1x16x1xf32> to vector<16x1xf32>
    %c3_i32 = arith.constant 3 : i32
    %206 = tpu.dynamic_rotate %5 by %c3_i32 dim 1 : vector<16x256xf32>, i32 -> vector<16x256xf32>
    %c21 = arith.constant 21 : index
    %c0_123 = arith.constant 0 : index
    %207 = vector.load %arg4[%c21, %c0_123] : memref<36x256xf32, #tpu.memory_space<vmem>>, vector<1x256xf32>
    %208 = vector.broadcast %205 : vector<16x1xf32> to vector<16x256xf32>
    %209 = arith.mulf %208, %206 : vector<16x256xf32>
    %210 = vector.broadcast %207 : vector<1x256xf32> to vector<16x256xf32>
    %211 = arith.mulf %209, %210 : vector<16x256xf32>
    %212 = arith.addf %203, %211 : vector<16x256xf32>
    %c2_124 = arith.constant 2 : index
    %c4_125 = arith.constant 4 : index
    %c0_126 = arith.constant 0 : index
    %c0_127 = arith.constant 0 : index
    %213 = vector.load %arg5[%c2_124, %c4_125, %c0_126, %c0_127] : memref<4x9x16x1xf32, #tpu.memory_space<vmem>>, vector<1x1x16x1xf32>
    %214 = vector.shape_cast %213 : vector<1x1x16x1xf32> to vector<16x1xf32>
    %215 = vector.broadcast %214 : vector<16x1xf32> to vector<16x256xf32>
    %216 = arith.mulf %215, %5 : vector<16x256xf32>
    %217 = arith.addf %212, %216 : vector<16x256xf32>
    %c2_128 = arith.constant 2 : index
    %c5_129 = arith.constant 5 : index
    %c0_130 = arith.constant 0 : index
    %c0_131 = arith.constant 0 : index
    %218 = vector.load %arg5[%c2_128, %c5_129, %c0_130, %c0_131] : memref<4x9x16x1xf32, #tpu.memory_space<vmem>>, vector<1x1x16x1xf32>
    %219 = vector.shape_cast %218 : vector<1x1x16x1xf32> to vector<16x1xf32>
    %c253_i32 = arith.constant 253 : i32
    %220 = tpu.dynamic_rotate %5 by %c253_i32 dim 1 : vector<16x256xf32>, i32 -> vector<16x256xf32>
    %c23 = arith.constant 23 : index
    %c0_132 = arith.constant 0 : index
    %221 = vector.load %arg4[%c23, %c0_132] : memref<36x256xf32, #tpu.memory_space<vmem>>, vector<1x256xf32>
    %222 = vector.broadcast %219 : vector<16x1xf32> to vector<16x256xf32>
    %223 = arith.mulf %222, %220 : vector<16x256xf32>
    %224 = vector.broadcast %221 : vector<1x256xf32> to vector<16x256xf32>
    %225 = arith.mulf %223, %224 : vector<16x256xf32>
    %226 = arith.addf %217, %225 : vector<16x256xf32>
    %c2_133 = arith.constant 2 : index
    %c6_134 = arith.constant 6 : index
    %c0_135 = arith.constant 0 : index
    %c0_136 = arith.constant 0 : index
    %227 = vector.load %arg5[%c2_133, %c6_134, %c0_135, %c0_136] : memref<4x9x16x1xf32, #tpu.memory_space<vmem>>, vector<1x1x16x1xf32>
    %228 = vector.shape_cast %227 : vector<1x1x16x1xf32> to vector<16x1xf32>
    %c211_i32 = arith.constant 211 : i32
    %229 = tpu.dynamic_rotate %5 by %c211_i32 dim 1 : vector<16x256xf32>, i32 -> vector<16x256xf32>
    %c24 = arith.constant 24 : index
    %c0_137 = arith.constant 0 : index
    %230 = vector.load %arg4[%c24, %c0_137] : memref<36x256xf32, #tpu.memory_space<vmem>>, vector<1x256xf32>
    %231 = vector.broadcast %228 : vector<16x1xf32> to vector<16x256xf32>
    %232 = arith.mulf %231, %229 : vector<16x256xf32>
    %233 = vector.broadcast %230 : vector<1x256xf32> to vector<16x256xf32>
    %234 = arith.mulf %232, %233 : vector<16x256xf32>
    %235 = arith.addf %226, %234 : vector<16x256xf32>
    %c2_138 = arith.constant 2 : index
    %c7_139 = arith.constant 7 : index
    %c0_140 = arith.constant 0 : index
    %c0_141 = arith.constant 0 : index
    %236 = vector.load %arg5[%c2_138, %c7_139, %c0_140, %c0_141] : memref<4x9x16x1xf32, #tpu.memory_space<vmem>>, vector<1x1x16x1xf32>
    %237 = vector.shape_cast %236 : vector<1x1x16x1xf32> to vector<16x1xf32>
    %c208_i32 = arith.constant 208 : i32
    %238 = tpu.dynamic_rotate %5 by %c208_i32 dim 1 : vector<16x256xf32>, i32 -> vector<16x256xf32>
    %c25 = arith.constant 25 : index
    %c0_142 = arith.constant 0 : index
    %239 = vector.load %arg4[%c25, %c0_142] : memref<36x256xf32, #tpu.memory_space<vmem>>, vector<1x256xf32>
    %240 = vector.broadcast %237 : vector<16x1xf32> to vector<16x256xf32>
    %241 = arith.mulf %240, %238 : vector<16x256xf32>
    %242 = vector.broadcast %239 : vector<1x256xf32> to vector<16x256xf32>
    %243 = arith.mulf %241, %242 : vector<16x256xf32>
    %244 = arith.addf %235, %243 : vector<16x256xf32>
    %c2_143 = arith.constant 2 : index
    %c8_144 = arith.constant 8 : index
    %c0_145 = arith.constant 0 : index
    %c0_146 = arith.constant 0 : index
    %245 = vector.load %arg5[%c2_143, %c8_144, %c0_145, %c0_146] : memref<4x9x16x1xf32, #tpu.memory_space<vmem>>, vector<1x1x16x1xf32>
    %246 = vector.shape_cast %245 : vector<1x1x16x1xf32> to vector<16x1xf32>
    %c205_i32 = arith.constant 205 : i32
    %247 = tpu.dynamic_rotate %5 by %c205_i32 dim 1 : vector<16x256xf32>, i32 -> vector<16x256xf32>
    %c26 = arith.constant 26 : index
    %c0_147 = arith.constant 0 : index
    %248 = vector.load %arg4[%c26, %c0_147] : memref<36x256xf32, #tpu.memory_space<vmem>>, vector<1x256xf32>
    %249 = vector.broadcast %246 : vector<16x1xf32> to vector<16x256xf32>
    %250 = arith.mulf %249, %247 : vector<16x256xf32>
    %251 = vector.broadcast %248 : vector<1x256xf32> to vector<16x256xf32>
    %252 = arith.mulf %250, %251 : vector<16x256xf32>
    %253 = arith.addf %244, %252 : vector<16x256xf32>
    %254 = vector.extract_strided_slice %253 {offsets = [0, 0], sizes = [8, 256], strides = [1, 1]} : vector<16x256xf32> to vector<8x256xf32>
    %255 = vector.extract_strided_slice %253 {offsets = [8, 0], sizes = [8, 256], strides = [1, 1]} : vector<16x256xf32> to vector<8x256xf32>
    %256 = arith.addf %254, %255 : vector<8x256xf32>
    %c2_148 = arith.constant 2 : index
    %c0_149 = arith.constant 0 : index
    %c0_150 = arith.constant 0 : index
    %257 = vector.load %arg6[%c2_148, %c0_149, %c0_150] : memref<4x8x1xf32, #tpu.memory_space<vmem>>, vector<1x8x1xf32>
    %258 = vector.shape_cast %257 : vector<1x8x1xf32> to vector<8x1xf32>
    %259 = vector.broadcast %258 : vector<8x1xf32> to vector<8x256xf32>
    %260 = arith.addf %256, %259 : vector<8x256xf32>
    %cst_151 = arith.constant 0.000000e+00 : f32
    %261 = vector.broadcast %cst_151 : f32 to vector<16x256xf32>
    %c3_152 = arith.constant 3 : index
    %c0_153 = arith.constant 0 : index
    %c0_154 = arith.constant 0 : index
    %c0_155 = arith.constant 0 : index
    %262 = vector.load %arg5[%c3_152, %c0_153, %c0_154, %c0_155] : memref<4x9x16x1xf32, #tpu.memory_space<vmem>>, vector<1x1x16x1xf32>
    %263 = vector.shape_cast %262 : vector<1x1x16x1xf32> to vector<16x1xf32>
    %c68_i32 = arith.constant 68 : i32
    %264 = tpu.dynamic_rotate %5 by %c68_i32 dim 1 : vector<16x256xf32>, i32 -> vector<16x256xf32>
    %c27 = arith.constant 27 : index
    %c0_156 = arith.constant 0 : index
    %265 = vector.load %arg4[%c27, %c0_156] : memref<36x256xf32, #tpu.memory_space<vmem>>, vector<1x256xf32>
    %266 = vector.broadcast %263 : vector<16x1xf32> to vector<16x256xf32>
    %267 = arith.mulf %266, %264 : vector<16x256xf32>
    %268 = vector.broadcast %265 : vector<1x256xf32> to vector<16x256xf32>
    %269 = arith.mulf %267, %268 : vector<16x256xf32>
    %270 = arith.addf %261, %269 : vector<16x256xf32>
    %c3_157 = arith.constant 3 : index
    %c1_158 = arith.constant 1 : index
    %c0_159 = arith.constant 0 : index
    %c0_160 = arith.constant 0 : index
    %271 = vector.load %arg5[%c3_157, %c1_158, %c0_159, %c0_160] : memref<4x9x16x1xf32, #tpu.memory_space<vmem>>, vector<1x1x16x1xf32>
    %272 = vector.shape_cast %271 : vector<1x1x16x1xf32> to vector<16x1xf32>
    %c64_i32 = arith.constant 64 : i32
    %273 = tpu.dynamic_rotate %5 by %c64_i32 dim 1 : vector<16x256xf32>, i32 -> vector<16x256xf32>
    %c28 = arith.constant 28 : index
    %c0_161 = arith.constant 0 : index
    %274 = vector.load %arg4[%c28, %c0_161] : memref<36x256xf32, #tpu.memory_space<vmem>>, vector<1x256xf32>
    %275 = vector.broadcast %272 : vector<16x1xf32> to vector<16x256xf32>
    %276 = arith.mulf %275, %273 : vector<16x256xf32>
    %277 = vector.broadcast %274 : vector<1x256xf32> to vector<16x256xf32>
    %278 = arith.mulf %276, %277 : vector<16x256xf32>
    %279 = arith.addf %270, %278 : vector<16x256xf32>
    %c3_162 = arith.constant 3 : index
    %c2_163 = arith.constant 2 : index
    %c0_164 = arith.constant 0 : index
    %c0_165 = arith.constant 0 : index
    %280 = vector.load %arg5[%c3_162, %c2_163, %c0_164, %c0_165] : memref<4x9x16x1xf32, #tpu.memory_space<vmem>>, vector<1x1x16x1xf32>
    %281 = vector.shape_cast %280 : vector<1x1x16x1xf32> to vector<16x1xf32>
    %c60_i32 = arith.constant 60 : i32
    %282 = tpu.dynamic_rotate %5 by %c60_i32 dim 1 : vector<16x256xf32>, i32 -> vector<16x256xf32>
    %c29 = arith.constant 29 : index
    %c0_166 = arith.constant 0 : index
    %283 = vector.load %arg4[%c29, %c0_166] : memref<36x256xf32, #tpu.memory_space<vmem>>, vector<1x256xf32>
    %284 = vector.broadcast %281 : vector<16x1xf32> to vector<16x256xf32>
    %285 = arith.mulf %284, %282 : vector<16x256xf32>
    %286 = vector.broadcast %283 : vector<1x256xf32> to vector<16x256xf32>
    %287 = arith.mulf %285, %286 : vector<16x256xf32>
    %288 = arith.addf %279, %287 : vector<16x256xf32>
    %c3_167 = arith.constant 3 : index
    %c3_168 = arith.constant 3 : index
    %c0_169 = arith.constant 0 : index
    %c0_170 = arith.constant 0 : index
    %289 = vector.load %arg5[%c3_167, %c3_168, %c0_169, %c0_170] : memref<4x9x16x1xf32, #tpu.memory_space<vmem>>, vector<1x1x16x1xf32>
    %290 = vector.shape_cast %289 : vector<1x1x16x1xf32> to vector<16x1xf32>
    %c4_i32 = arith.constant 4 : i32
    %291 = tpu.dynamic_rotate %5 by %c4_i32 dim 1 : vector<16x256xf32>, i32 -> vector<16x256xf32>
    %c30 = arith.constant 30 : index
    %c0_171 = arith.constant 0 : index
    %292 = vector.load %arg4[%c30, %c0_171] : memref<36x256xf32, #tpu.memory_space<vmem>>, vector<1x256xf32>
    %293 = vector.broadcast %290 : vector<16x1xf32> to vector<16x256xf32>
    %294 = arith.mulf %293, %291 : vector<16x256xf32>
    %295 = vector.broadcast %292 : vector<1x256xf32> to vector<16x256xf32>
    %296 = arith.mulf %294, %295 : vector<16x256xf32>
    %297 = arith.addf %288, %296 : vector<16x256xf32>
    %c3_172 = arith.constant 3 : index
    %c4_173 = arith.constant 4 : index
    %c0_174 = arith.constant 0 : index
    %c0_175 = arith.constant 0 : index
    %298 = vector.load %arg5[%c3_172, %c4_173, %c0_174, %c0_175] : memref<4x9x16x1xf32, #tpu.memory_space<vmem>>, vector<1x1x16x1xf32>
    %299 = vector.shape_cast %298 : vector<1x1x16x1xf32> to vector<16x1xf32>
    %300 = vector.broadcast %299 : vector<16x1xf32> to vector<16x256xf32>
    %301 = arith.mulf %300, %5 : vector<16x256xf32>
    %302 = arith.addf %297, %301 : vector<16x256xf32>
    %c3_176 = arith.constant 3 : index
    %c5_177 = arith.constant 5 : index
    %c0_178 = arith.constant 0 : index
    %c0_179 = arith.constant 0 : index
    %303 = vector.load %arg5[%c3_176, %c5_177, %c0_178, %c0_179] : memref<4x9x16x1xf32, #tpu.memory_space<vmem>>, vector<1x1x16x1xf32>
    %304 = vector.shape_cast %303 : vector<1x1x16x1xf32> to vector<16x1xf32>
    %c252_i32 = arith.constant 252 : i32
    %305 = tpu.dynamic_rotate %5 by %c252_i32 dim 1 : vector<16x256xf32>, i32 -> vector<16x256xf32>
    %c32 = arith.constant 32 : index
    %c0_180 = arith.constant 0 : index
    %306 = vector.load %arg4[%c32, %c0_180] : memref<36x256xf32, #tpu.memory_space<vmem>>, vector<1x256xf32>
    %307 = vector.broadcast %304 : vector<16x1xf32> to vector<16x256xf32>
    %308 = arith.mulf %307, %305 : vector<16x256xf32>
    %309 = vector.broadcast %306 : vector<1x256xf32> to vector<16x256xf32>
    %310 = arith.mulf %308, %309 : vector<16x256xf32>
    %311 = arith.addf %302, %310 : vector<16x256xf32>
    %c3_181 = arith.constant 3 : index
    %c6_182 = arith.constant 6 : index
    %c0_183 = arith.constant 0 : index
    %c0_184 = arith.constant 0 : index
    %312 = vector.load %arg5[%c3_181, %c6_182, %c0_183, %c0_184] : memref<4x9x16x1xf32, #tpu.memory_space<vmem>>, vector<1x1x16x1xf32>
    %313 = vector.shape_cast %312 : vector<1x1x16x1xf32> to vector<16x1xf32>
    %c196_i32 = arith.constant 196 : i32
    %314 = tpu.dynamic_rotate %5 by %c196_i32 dim 1 : vector<16x256xf32>, i32 -> vector<16x256xf32>
    %c33 = arith.constant 33 : index
    %c0_185 = arith.constant 0 : index
    %315 = vector.load %arg4[%c33, %c0_185] : memref<36x256xf32, #tpu.memory_space<vmem>>, vector<1x256xf32>
    %316 = vector.broadcast %313 : vector<16x1xf32> to vector<16x256xf32>
    %317 = arith.mulf %316, %314 : vector<16x256xf32>
    %318 = vector.broadcast %315 : vector<1x256xf32> to vector<16x256xf32>
    %319 = arith.mulf %317, %318 : vector<16x256xf32>
    %320 = arith.addf %311, %319 : vector<16x256xf32>
    %c3_186 = arith.constant 3 : index
    %c7_187 = arith.constant 7 : index
    %c0_188 = arith.constant 0 : index
    %c0_189 = arith.constant 0 : index
    %321 = vector.load %arg5[%c3_186, %c7_187, %c0_188, %c0_189] : memref<4x9x16x1xf32, #tpu.memory_space<vmem>>, vector<1x1x16x1xf32>
    %322 = vector.shape_cast %321 : vector<1x1x16x1xf32> to vector<16x1xf32>
    %c192_i32 = arith.constant 192 : i32
    %323 = tpu.dynamic_rotate %5 by %c192_i32 dim 1 : vector<16x256xf32>, i32 -> vector<16x256xf32>
    %c34 = arith.constant 34 : index
    %c0_190 = arith.constant 0 : index
    %324 = vector.load %arg4[%c34, %c0_190] : memref<36x256xf32, #tpu.memory_space<vmem>>, vector<1x256xf32>
    %325 = vector.broadcast %322 : vector<16x1xf32> to vector<16x256xf32>
    %326 = arith.mulf %325, %323 : vector<16x256xf32>
    %327 = vector.broadcast %324 : vector<1x256xf32> to vector<16x256xf32>
    %328 = arith.mulf %326, %327 : vector<16x256xf32>
    %329 = arith.addf %320, %328 : vector<16x256xf32>
    %c3_191 = arith.constant 3 : index
    %c8_192 = arith.constant 8 : index
    %c0_193 = arith.constant 0 : index
    %c0_194 = arith.constant 0 : index
    %330 = vector.load %arg5[%c3_191, %c8_192, %c0_193, %c0_194] : memref<4x9x16x1xf32, #tpu.memory_space<vmem>>, vector<1x1x16x1xf32>
    %331 = vector.shape_cast %330 : vector<1x1x16x1xf32> to vector<16x1xf32>
    %c188_i32 = arith.constant 188 : i32
    %332 = tpu.dynamic_rotate %5 by %c188_i32 dim 1 : vector<16x256xf32>, i32 -> vector<16x256xf32>
    %c35 = arith.constant 35 : index
    %c0_195 = arith.constant 0 : index
    %333 = vector.load %arg4[%c35, %c0_195] : memref<36x256xf32, #tpu.memory_space<vmem>>, vector<1x256xf32>
    %334 = vector.broadcast %331 : vector<16x1xf32> to vector<16x256xf32>
    %335 = arith.mulf %334, %332 : vector<16x256xf32>
    %336 = vector.broadcast %333 : vector<1x256xf32> to vector<16x256xf32>
    %337 = arith.mulf %335, %336 : vector<16x256xf32>
    %338 = arith.addf %329, %337 : vector<16x256xf32>
    %339 = vector.extract_strided_slice %338 {offsets = [0, 0], sizes = [8, 256], strides = [1, 1]} : vector<16x256xf32> to vector<8x256xf32>
    %340 = vector.extract_strided_slice %338 {offsets = [8, 0], sizes = [8, 256], strides = [1, 1]} : vector<16x256xf32> to vector<8x256xf32>
    %341 = arith.addf %339, %340 : vector<8x256xf32>
    %c3_196 = arith.constant 3 : index
    %c0_197 = arith.constant 0 : index
    %c0_198 = arith.constant 0 : index
    %342 = vector.load %arg6[%c3_196, %c0_197, %c0_198] : memref<4x8x1xf32, #tpu.memory_space<vmem>>, vector<1x8x1xf32>
    %343 = vector.shape_cast %342 : vector<1x8x1xf32> to vector<8x1xf32>
    %344 = vector.broadcast %343 : vector<8x1xf32> to vector<8x256xf32>
    %345 = arith.addf %341, %344 : vector<8x256xf32>
    %346 = tpu.concatenate %90, %175, %260, %345 in 0 : vector<8x256xf32>, vector<8x256xf32>, vector<8x256xf32>, vector<8x256xf32> -> vector<32x256xf32>
    %c0_199 = arith.constant 0 : index
    %c0_200 = arith.constant 0 : index
    %347 = vector.load %arg7[%c0_199, %c0_200] : memref<8x32xf32, #tpu.memory_space<vmem>>, vector<8x32xf32>
    %cst_201 = arith.constant dense<0.000000e+00> : vector<8x256xf32>
    %348 = tpu.matmul %347, %346, %cst_201 {dimension_numbers = #tpu.dot_dimension_numbers<[1], [0], [0], [1], [0, 0, 1, 1], [], []>} : vector<8x32xf32>, vector<32x256xf32>, vector<8x256xf32> -> vector<8x256xf32>
    %c0_202 = arith.constant 0 : index
    %c0_203 = arith.constant 0 : index
    %349 = vector.load %arg8[%c0_202, %c0_203] : memref<8x1xf32, #tpu.memory_space<vmem>>, vector<8x1xf32>
    %350 = vector.broadcast %349 : vector<8x1xf32> to vector<8x256xf32>
    %351 = arith.addf %348, %350 : vector<8x256xf32>
    %cst_204 = arith.constant 0.000000e+00 : f32
    %352 = vector.broadcast %cst_204 : f32 to vector<8x256xf32>
    %353 = arith.maximumf %351, %352 : vector<8x256xf32>
    %cst_205 = arith.constant dense<0.000000e+00> : vector<8xf32>
    %354 = vector.multi_reduction <add>, %1, %cst_205 [1] : vector<8x256xf32> to vector<8xf32>
    %355 = vector.shape_cast %354 : vector<8xf32> to vector<8x1xf32>
    %cst_206 = arith.constant 2.560000e+02 : f32
    %356 = vector.broadcast %cst_206 : f32 to vector<8x1xf32>
    %357 = arith.divf %355, %356 : vector<8x1xf32>
    %358 = vector.broadcast %357 : vector<8x1xf32> to vector<8x256xf32>
    %359 = arith.subf %1, %358 : vector<8x256xf32>
    %360 = arith.mulf %359, %359 : vector<8x256xf32>
    %cst_207 = arith.constant dense<0.000000e+00> : vector<8xf32>
    %361 = vector.multi_reduction <add>, %360, %cst_207 [1] : vector<8x256xf32> to vector<8xf32>
    %362 = vector.shape_cast %361 : vector<8xf32> to vector<8x1xf32>
    %cst_208 = arith.constant 0.00392156886 : f32
    %363 = vector.broadcast %cst_208 : f32 to vector<8x1xf32>
    %364 = arith.mulf %362, %363 : vector<8x1xf32>
    %cst_209 = arith.constant 9.99999974E-5 : f32
    %365 = vector.broadcast %cst_209 : f32 to vector<8x1xf32>
    %366 = arith.addf %364, %365 : vector<8x1xf32>
    %cst_210 = arith.constant 4.000000e+00 : f32
    %367 = vector.broadcast %cst_210 : f32 to vector<8x1xf32>
    %368 = arith.mulf %367, %366 : vector<8x1xf32>
    %369 = tpu.reciprocal %368 {approx = true} : vector<8x1xf32> -> vector<8x1xf32>
    %370 = vector.broadcast %369 : vector<8x1xf32> to vector<8x256xf32>
    %371 = arith.mulf %360, %370 : vector<8x256xf32>
    %cst_211 = arith.constant 5.000000e-01 : f32
    %372 = vector.broadcast %cst_211 : f32 to vector<8x256xf32>
    %373 = arith.addf %371, %372 : vector<8x256xf32>
    %374 = arith.negf %373 : vector<8x256xf32>
    %375 = math.exp %374 : vector<8x256xf32>
    %cst_212 = arith.constant 1.000000e+00 : f32
    %376 = vector.broadcast %cst_212 : f32 to vector<8x256xf32>
    %377 = arith.addf %376, %375 : vector<8x256xf32>
    %378 = arith.divf %376, %377 : vector<8x256xf32>
    %379 = arith.mulf %1, %378 : vector<8x256xf32>
    %380 = arith.mulf %379, %353 : vector<8x256xf32>
    %cst_213 = arith.constant dense<0.000000e+00> : vector<8xf32>
    %381 = vector.multi_reduction <add>, %3, %cst_213 [1] : vector<8x256xf32> to vector<8xf32>
    %382 = vector.shape_cast %381 : vector<8xf32> to vector<8x1xf32>
    %cst_214 = arith.constant 2.560000e+02 : f32
    %383 = vector.broadcast %cst_214 : f32 to vector<8x1xf32>
    %384 = arith.divf %382, %383 : vector<8x1xf32>
    %385 = vector.broadcast %384 : vector<8x1xf32> to vector<8x256xf32>
    %386 = arith.subf %3, %385 : vector<8x256xf32>
    %387 = arith.mulf %386, %386 : vector<8x256xf32>
    %cst_215 = arith.constant dense<0.000000e+00> : vector<8xf32>
    %388 = vector.multi_reduction <add>, %387, %cst_215 [1] : vector<8x256xf32> to vector<8xf32>
    %389 = vector.shape_cast %388 : vector<8xf32> to vector<8x1xf32>
    %cst_216 = arith.constant 0.00392156886 : f32
    %390 = vector.broadcast %cst_216 : f32 to vector<8x1xf32>
    %391 = arith.mulf %389, %390 : vector<8x1xf32>
    %cst_217 = arith.constant 9.99999974E-5 : f32
    %392 = vector.broadcast %cst_217 : f32 to vector<8x1xf32>
    %393 = arith.addf %391, %392 : vector<8x1xf32>
    %cst_218 = arith.constant 4.000000e+00 : f32
    %394 = vector.broadcast %cst_218 : f32 to vector<8x1xf32>
    %395 = arith.mulf %394, %393 : vector<8x1xf32>
    %396 = tpu.reciprocal %395 {approx = true} : vector<8x1xf32> -> vector<8x1xf32>
    %397 = vector.broadcast %396 : vector<8x1xf32> to vector<8x256xf32>
    %398 = arith.mulf %387, %397 : vector<8x256xf32>
    %cst_219 = arith.constant 5.000000e-01 : f32
    %399 = vector.broadcast %cst_219 : f32 to vector<8x256xf32>
    %400 = arith.addf %398, %399 : vector<8x256xf32>
    %401 = arith.negf %400 : vector<8x256xf32>
    %402 = math.exp %401 : vector<8x256xf32>
    %cst_220 = arith.constant 1.000000e+00 : f32
    %403 = vector.broadcast %cst_220 : f32 to vector<8x256xf32>
    %404 = arith.addf %403, %402 : vector<8x256xf32>
    %405 = arith.divf %403, %404 : vector<8x256xf32>
    %406 = arith.mulf %3, %405 : vector<8x256xf32>
    %407 = arith.mulf %406, %353 : vector<8x256xf32>
    %cst_221 = arith.constant dense<0.000000e+00> : vector<8xf32>
    %408 = vector.multi_reduction <add>, %353, %cst_221 [1] : vector<8x256xf32> to vector<8xf32>
    %409 = vector.shape_cast %408 : vector<8xf32> to vector<8x1xf32>
    %cst_222 = arith.constant 2.560000e+02 : f32
    %410 = vector.broadcast %cst_222 : f32 to vector<8x1xf32>
    %411 = arith.divf %409, %410 : vector<8x1xf32>
    %412 = vector.broadcast %411 : vector<8x1xf32> to vector<8x256xf32>
    %413 = arith.subf %353, %412 : vector<8x256xf32>
    %414 = arith.mulf %413, %413 : vector<8x256xf32>
    %cst_223 = arith.constant dense<0.000000e+00> : vector<8xf32>
    %415 = vector.multi_reduction <add>, %414, %cst_223 [1] : vector<8x256xf32> to vector<8xf32>
    %416 = vector.shape_cast %415 : vector<8xf32> to vector<8x1xf32>
    %cst_224 = arith.constant 0.00392156886 : f32
    %417 = vector.broadcast %cst_224 : f32 to vector<8x1xf32>
    %418 = arith.mulf %416, %417 : vector<8x1xf32>
    %cst_225 = arith.constant 9.99999974E-5 : f32
    %419 = vector.broadcast %cst_225 : f32 to vector<8x1xf32>
    %420 = arith.addf %418, %419 : vector<8x1xf32>
    %cst_226 = arith.constant 4.000000e+00 : f32
    %421 = vector.broadcast %cst_226 : f32 to vector<8x1xf32>
    %422 = arith.mulf %421, %420 : vector<8x1xf32>
    %423 = tpu.reciprocal %422 {approx = true} : vector<8x1xf32> -> vector<8x1xf32>
    %424 = vector.broadcast %423 : vector<8x1xf32> to vector<8x256xf32>
    %425 = arith.mulf %414, %424 : vector<8x256xf32>
    %cst_227 = arith.constant 5.000000e-01 : f32
    %426 = vector.broadcast %cst_227 : f32 to vector<8x256xf32>
    %427 = arith.addf %425, %426 : vector<8x256xf32>
    %428 = arith.negf %427 : vector<8x256xf32>
    %429 = math.exp %428 : vector<8x256xf32>
    %cst_228 = arith.constant 1.000000e+00 : f32
    %430 = vector.broadcast %cst_228 : f32 to vector<8x256xf32>
    %431 = arith.addf %430, %429 : vector<8x256xf32>
    %432 = arith.divf %430, %431 : vector<8x256xf32>
    %433 = arith.mulf %353, %432 : vector<8x256xf32>
    %434 = arith.addf %433, %1 : vector<8x256xf32>
    %435 = arith.addf %434, %3 : vector<8x256xf32>
    %436 = arith.addf %435, %407 : vector<8x256xf32>
    %437 = arith.addf %436, %380 : vector<8x256xf32>
    %c17_i32_229 = arith.constant 17 : i32
    %438 = tpu.dynamic_rotate %437 by %c17_i32_229 dim 1 : vector<8x256xf32>, i32 -> vector<8x256xf32>
    %c0_230 = arith.constant 0 : index
    %c0_231 = arith.constant 0 : index
    %439 = vector.load %arg4[%c0_230, %c0_231] : memref<36x256xf32, #tpu.memory_space<vmem>>, vector<1x256xf32>
    %440 = vector.broadcast %439 : vector<1x256xf32> to vector<8x256xf32>
    %441 = arith.mulf %438, %440 : vector<8x256xf32>
    %c16_i32_232 = arith.constant 16 : i32
    %442 = tpu.dynamic_rotate %437 by %c16_i32_232 dim 1 : vector<8x256xf32>, i32 -> vector<8x256xf32>
    %c1_233 = arith.constant 1 : index
    %c0_234 = arith.constant 0 : index
    %443 = vector.load %arg4[%c1_233, %c0_234] : memref<36x256xf32, #tpu.memory_space<vmem>>, vector<1x256xf32>
    %444 = vector.broadcast %443 : vector<1x256xf32> to vector<8x256xf32>
    %445 = arith.mulf %442, %444 : vector<8x256xf32>
    %c15_i32_235 = arith.constant 15 : i32
    %446 = tpu.dynamic_rotate %437 by %c15_i32_235 dim 1 : vector<8x256xf32>, i32 -> vector<8x256xf32>
    %c2_236 = arith.constant 2 : index
    %c0_237 = arith.constant 0 : index
    %447 = vector.load %arg4[%c2_236, %c0_237] : memref<36x256xf32, #tpu.memory_space<vmem>>, vector<1x256xf32>
    %448 = vector.broadcast %447 : vector<1x256xf32> to vector<8x256xf32>
    %449 = arith.mulf %446, %448 : vector<8x256xf32>
    %c1_i32_238 = arith.constant 1 : i32
    %450 = tpu.dynamic_rotate %437 by %c1_i32_238 dim 1 : vector<8x256xf32>, i32 -> vector<8x256xf32>
    %c3_239 = arith.constant 3 : index
    %c0_240 = arith.constant 0 : index
    %451 = vector.load %arg4[%c3_239, %c0_240] : memref<36x256xf32, #tpu.memory_space<vmem>>, vector<1x256xf32>
    %452 = vector.broadcast %451 : vector<1x256xf32> to vector<8x256xf32>
    %453 = arith.mulf %450, %452 : vector<8x256xf32>
    %c255_i32_241 = arith.constant 255 : i32
    %454 = tpu.dynamic_rotate %437 by %c255_i32_241 dim 1 : vector<8x256xf32>, i32 -> vector<8x256xf32>
    %c5_242 = arith.constant 5 : index
    %c0_243 = arith.constant 0 : index
    %455 = vector.load %arg4[%c5_242, %c0_243] : memref<36x256xf32, #tpu.memory_space<vmem>>, vector<1x256xf32>
    %456 = vector.broadcast %455 : vector<1x256xf32> to vector<8x256xf32>
    %457 = arith.mulf %454, %456 : vector<8x256xf32>
    %c241_i32_244 = arith.constant 241 : i32
    %458 = tpu.dynamic_rotate %437 by %c241_i32_244 dim 1 : vector<8x256xf32>, i32 -> vector<8x256xf32>
    %c6_245 = arith.constant 6 : index
    %c0_246 = arith.constant 0 : index
    %459 = vector.load %arg4[%c6_245, %c0_246] : memref<36x256xf32, #tpu.memory_space<vmem>>, vector<1x256xf32>
    %460 = vector.broadcast %459 : vector<1x256xf32> to vector<8x256xf32>
    %461 = arith.mulf %458, %460 : vector<8x256xf32>
    %c240_i32_247 = arith.constant 240 : i32
    %462 = tpu.dynamic_rotate %437 by %c240_i32_247 dim 1 : vector<8x256xf32>, i32 -> vector<8x256xf32>
    %c7_248 = arith.constant 7 : index
    %c0_249 = arith.constant 0 : index
    %463 = vector.load %arg4[%c7_248, %c0_249] : memref<36x256xf32, #tpu.memory_space<vmem>>, vector<1x256xf32>
    %464 = vector.broadcast %463 : vector<1x256xf32> to vector<8x256xf32>
    %465 = arith.mulf %462, %464 : vector<8x256xf32>
    %c239_i32_250 = arith.constant 239 : i32
    %466 = tpu.dynamic_rotate %437 by %c239_i32_250 dim 1 : vector<8x256xf32>, i32 -> vector<8x256xf32>
    %c8_251 = arith.constant 8 : index
    %c0_252 = arith.constant 0 : index
    %467 = vector.load %arg4[%c8_251, %c0_252] : memref<36x256xf32, #tpu.memory_space<vmem>>, vector<1x256xf32>
    %468 = vector.broadcast %467 : vector<1x256xf32> to vector<8x256xf32>
    %469 = arith.mulf %466, %468 : vector<8x256xf32>
    %470 = tpu.concatenate %441, %445, %449, %453, %437, %457, %461, %465, %469 in 0 : vector<8x256xf32>, vector<8x256xf32>, vector<8x256xf32>, vector<8x256xf32>, vector<8x256xf32>, vector<8x256xf32>, vector<8x256xf32>, vector<8x256xf32>, vector<8x256xf32> -> vector<72x256xf32>
    %c0_253 = arith.constant 0 : index
    %c0_254 = arith.constant 0 : index
    %471 = vector.load %arg9[%c0_253, %c0_254] : memref<8x72xf32, #tpu.memory_space<vmem>>, vector<8x72xf32>
    %cst_255 = arith.constant dense<0.000000e+00> : vector<8x256xf32>
    %472 = tpu.matmul %471, %470, %cst_255 {dimension_numbers = #tpu.dot_dimension_numbers<[1], [0], [0], [1], [0, 0, 1, 1], [], []>} : vector<8x72xf32>, vector<72x256xf32>, vector<8x256xf32> -> vector<8x256xf32>
    %c0_256 = arith.constant 0 : index
    %c0_257 = arith.constant 0 : index
    %473 = vector.load %arg10[%c0_256, %c0_257] : memref<8x1xf32, #tpu.memory_space<vmem>>, vector<8x1xf32>
    %474 = vector.broadcast %473 : vector<8x1xf32> to vector<8x256xf32>
    %475 = arith.addf %472, %474 : vector<8x256xf32>
    %cst_258 = arith.constant 0.000000e+00 : f32
    %476 = vector.broadcast %cst_258 : f32 to vector<8x256xf32>
    %477 = arith.maximumf %475, %476 : vector<8x256xf32>
    %cst_259 = arith.constant dense<0.000000e+00> : vector<8xf32>
    %478 = vector.multi_reduction <add>, %477, %cst_259 [1] : vector<8x256xf32> to vector<8xf32>
    %479 = vector.shape_cast %478 : vector<8xf32> to vector<8x1xf32>
    %cst_260 = arith.constant 2.560000e+02 : f32
    %480 = vector.broadcast %cst_260 : f32 to vector<8x1xf32>
    %481 = arith.divf %479, %480 : vector<8x1xf32>
    %482 = vector.broadcast %481 : vector<8x1xf32> to vector<8x256xf32>
    %483 = arith.subf %477, %482 : vector<8x256xf32>
    %484 = arith.mulf %483, %483 : vector<8x256xf32>
    %cst_261 = arith.constant dense<0.000000e+00> : vector<8xf32>
    %485 = vector.multi_reduction <add>, %484, %cst_261 [1] : vector<8x256xf32> to vector<8xf32>
    %486 = vector.shape_cast %485 : vector<8xf32> to vector<8x1xf32>
    %cst_262 = arith.constant 0.00392156886 : f32
    %487 = vector.broadcast %cst_262 : f32 to vector<8x1xf32>
    %488 = arith.mulf %486, %487 : vector<8x1xf32>
    %cst_263 = arith.constant 9.99999974E-5 : f32
    %489 = vector.broadcast %cst_263 : f32 to vector<8x1xf32>
    %490 = arith.addf %488, %489 : vector<8x1xf32>
    %cst_264 = arith.constant 4.000000e+00 : f32
    %491 = vector.broadcast %cst_264 : f32 to vector<8x1xf32>
    %492 = arith.mulf %491, %490 : vector<8x1xf32>
    %493 = tpu.reciprocal %492 {approx = true} : vector<8x1xf32> -> vector<8x1xf32>
    %494 = vector.broadcast %493 : vector<8x1xf32> to vector<8x256xf32>
    %495 = arith.mulf %484, %494 : vector<8x256xf32>
    %cst_265 = arith.constant 5.000000e-01 : f32
    %496 = vector.broadcast %cst_265 : f32 to vector<8x256xf32>
    %497 = arith.addf %495, %496 : vector<8x256xf32>
    %498 = arith.negf %497 : vector<8x256xf32>
    %499 = math.exp %498 : vector<8x256xf32>
    %cst_266 = arith.constant 1.000000e+00 : f32
    %500 = vector.broadcast %cst_266 : f32 to vector<8x256xf32>
    %501 = arith.addf %500, %499 : vector<8x256xf32>
    %502 = arith.divf %500, %501 : vector<8x256xf32>
    %503 = arith.mulf %477, %502 : vector<8x256xf32>
    %c0_267 = arith.constant 0 : index
    %c0_268 = arith.constant 0 : index
    %c0_269 = arith.constant 0 : index
    %504 = vector.load %arg11[%c0_267, %c0_268, %c0_269] : memref<1x8x256xf32, #tpu.memory_space<vmem>>, vector<1x8x256xf32>
    %505 = vector.shape_cast %504 : vector<1x8x256xf32> to vector<8x256xf32>
    %506 = vector.shape_cast %503 : vector<8x256xf32> to vector<1x8x256xf32>
    tpu.vector_store %arg11[%c0_267, %c0_268, %c0_269], %506 {strides = array<i32>} : memref<1x8x256xf32, #tpu.memory_space<vmem>>, vector<1x8x256xf32>,
    return
  }
  func.func @transform_0(%arg0: i32) -> (i32, i32, i32) {
    %c0_i32 = arith.constant 0 : i32
    %c0_i32_0 = arith.constant 0 : i32
    %c0_i32_1 = arith.constant 0 : i32
    return %arg0, %c0_i32, %c0_i32_0 : i32, i32, i32
  }
  func.func @transform_1(%arg0: i32) -> (i32, i32, i32) {
    %c0_i32 = arith.constant 0 : i32
    %c0_i32_0 = arith.constant 0 : i32
    %c0_i32_1 = arith.constant 0 : i32
    return %arg0, %c0_i32, %c0_i32_0 : i32, i32, i32
  }
  func.func @transform_2(%arg0: i32) -> (i32, i32, i32) {
    %c0_i32 = arith.constant 0 : i32
    %c0_i32_0 = arith.constant 0 : i32
    %c0_i32_1 = arith.constant 0 : i32
    return %arg0, %c0_i32, %c0_i32_0 : i32, i32, i32
  }
  func.func @transform_3(%arg0: i32) -> (i32, i32) {
    %c0_i32 = arith.constant 0 : i32
    %c0_i32_0 = arith.constant 0 : i32
    %c0_i32_1 = arith.constant 0 : i32
    return %c0_i32, %c0_i32_0 : i32, i32
  }
  func.func @transform_4(%arg0: i32) -> (i32, i32, i32, i32) {
    %c0_i32 = arith.constant 0 : i32
    %c0_i32_0 = arith.constant 0 : i32
    %c0_i32_1 = arith.constant 0 : i32
    %c0_i32_2 = arith.constant 0 : i32
    %c0_i32_3 = arith.constant 0 : i32
    return %c0_i32, %c0_i32_0, %c0_i32_1, %c0_i32_2 : i32, i32, i32, i32
  }
  func.func @transform_5(%arg0: i32) -> (i32, i32, i32) {
    %c0_i32 = arith.constant 0 : i32
    %c0_i32_0 = arith.constant 0 : i32
    %c0_i32_1 = arith.constant 0 : i32
    %c0_i32_2 = arith.constant 0 : i32
    return %c0_i32, %c0_i32_0, %c0_i32_1 : i32, i32, i32
  }
  func.func @transform_6(%arg0: i32) -> (i32, i32) {
    %c0_i32 = arith.constant 0 : i32
    %c0_i32_0 = arith.constant 0 : i32
    %c0_i32_1 = arith.constant 0 : i32
    return %c0_i32, %c0_i32_0 : i32, i32
  }
  func.func @transform_7(%arg0: i32) -> (i32, i32) {
    %c0_i32 = arith.constant 0 : i32
    %c0_i32_0 = arith.constant 0 : i32
    %c0_i32_1 = arith.constant 0 : i32
    return %c0_i32, %c0_i32_0 : i32, i32
  }
  func.func @transform_8(%arg0: i32) -> (i32, i32) {
    %c0_i32 = arith.constant 0 : i32
    %c0_i32_0 = arith.constant 0 : i32
    %c0_i32_1 = arith.constant 0 : i32
    return %c0_i32, %c0_i32_0 : i32, i32
  }
  func.func @transform_9(%arg0: i32) -> (i32, i32) {
    %c0_i32 = arith.constant 0 : i32
    %c0_i32_0 = arith.constant 0 : i32
    %c0_i32_1 = arith.constant 0 : i32
    return %c0_i32, %c0_i32_0 : i32, i32
  }
  func.func @transform_10(%arg0: i32) -> (i32, i32, i32) {
    %c0_i32 = arith.constant 0 : i32
    %c0_i32_0 = arith.constant 0 : i32
    %c0_i32_1 = arith.constant 0 : i32
    return %arg0, %c0_i32, %c0_i32_0 : i32, i32, i32
  }
}

</mosaic_0001>

<bundles_post_ra>
// kernel: bfam_forward.1
= control target key start
LH: loop header
LB: loop body
LE: loop exit
PB: predicated region body
PF: predicated region fallthrough
CT: control target
= control target key end

     0   :  { %s2900_s13 = smov 0   ;;  %s4883_s0 = inlined_call_operand.vmem [shape: f32[2,8,256], index: 0, kind: input, shape index: {}]   ;;  %s4884_s1 = inlined_call_operand.vmem [shape: f32[2,8,256], index: 1, kind: input, shape index: {}]   ;;  %s4885_s2 = inlined_call_operand.vmem [shape: f32[2,16,256], index: 2, kind: input, shape index: {}]   ;;  %s4886_s3 = inlined_call_operand.vmem [shape: f32[36,256], index: 3, kind: input, shape index: {}]   ;;  %s4887_s4 = inlined_call_operand.vmem [shape: f32[4,9,16,1], index: 4, kind: input, shape index: {}]   ;;  %s4888_s5 = inlined_call_operand.vmem [shape: f32[4,8,1], index: 5, kind: input, shape index: {}]   ;;  %s4889_s6 = inlined_call_operand.vmem [shape: f32[8,32], index: 6, kind: input, shape index: {}]   ;;  %s4890_s7 = inlined_call_operand.vmem [shape: f32[8,1], index: 7, kind: input, shape index: {}]   ;;  %s4891_s8 = inlined_call_operand.vmem [shape: f32[8,72], index: 8, kind: input, shape index: {}]   ;;  %s4892_s9 = inlined_call_operand.vmem [shape: f32[8,1], index: 9, kind: input, shape index: {}]   ;;  %s4893_s10 = inlined_call_operand.vmem [shape: f32[2,8,256], index: 10, kind: output, shape index: {}]  }
   0x1 LB: > { %s2586_s14 = sadd.s32 4294967295, %s2812_s13   ;;  %p2590_p0 = scmp.ge.s32.totalorder %s2812_s13, 1  ;;  %s2812_s13 = sphi %s2900_s13, %s20_s13  }
   0x2   : > { %p332_p1 = scmp.lt.s32.totalorder %s2812_s13, 3 }
   0x4   : > { %p333_p2 = pnand %p2590_p0, %p332_p1 }
   0x6   : > { %336 = sbr.rel (%p333_p2) target bundleno = 1775 (0x6ef), region = 60 }
   0xb   : > { %v2679_v0 = vld [vmem:[%s4887_s4 + $0x1c0] sm:$0xff]  ;;  %v2676_v1 = vld [vmem:[%s4887_s4 + $0x1b0] sm:$0xff]  ;;  %v2814_v2 = vmov 0   ;;  %v2680_v3 = vld [vmem:[%s4887_s4 + $0x1c8] sm:$0xff]  ;;  %p380_p3 = scmp.lt.s32.totalorder %s2586_s14, 1  ;;  %s2815_s15 = smov 68  }
   0xc   : > { %2759 = vset.pattern.permute.xlu1 %v2814_v2  ;;  %2758 = vset.pattern.permute.xlu0 %v2814_v2  ;;  %v2677_v4 = vld [vmem:[%s4887_s4 + $0x1b8] sm:$0xff]  ;;  %v2650_v5 = vld [vmem:[%s4887_s4 + $0x128] sm:$0xff]  ;;  %v2649_v6 = vld [vmem:[%s4887_s4 + $0x120] sm:$0xff]  ;;  %s2816_s16 = smov 64   ;;  %s2818_s17 = smov 48  }
   0xd   : > { %1798 = vperm.xlu1 %2759, %v2679_v0   ;;  %1747 = vperm.xlu0 %2758, %v2676_v1   ;;  %v2653_v7 = vld [vmem:[%s4887_s4 + $0x138] sm:$0xff]  ;;  %v2652_v8 = vld [vmem:[%s4887_s4 + $0x130] sm:$0xff]  ;;  %s5269_s14 = smov (!%p380_p3, %s2586_s14), 1  ;;  %v2626_v13 = vld [vmem:[%s4887_s4 + $0xa8] sm:$0xff]  ;;  %s2819_s22 = smov 60  }
   0xe   : > { %v2683_v9 = vld [vmem:[%s4887_s4 + $0x1d8] sm:$0xff]  ;;  %v2682_v10 = vld [vmem:[%s4887_s4 + $0x1d0] sm:$0xff]  ;;  %v2625_v14 = vld [vmem:[%s4887_s4 + $0xa0] sm:$0xff]  ;;  %s2717_s25 = sshll.u32 %s5269_s14, 5  ;;  %s2820_s27 = smov 34  }
   0xf   : > { %v2623_v11 = vld [vmem:[%s4887_s4 + $0x98] sm:$0xff]  ;;  %v2622_v12 = vld [vmem:[%s4887_s4 + $0x90] sm:$0xff]  ;;  %v2656_v15 = vld [vmem:[%s4887_s4 + $0x148] sm:$0xff]  ;;  %s2966_s12 = scalar_lea.vmem %s4885_s2, %s2717_s25  ;;  %s2821_s28 = smov 32  }
  0x10   : > { %v2655_v16 = vld [vmem:[%s4887_s4 + $0x140] sm:$0xff]  ;;  %v2969_v17 = vld [vmem:[%s2966_s12 + $0x10] sm:$0xff]  ;;  %v2977_v19 = vld [vmem:[%s2966_s12 + $0x18] sm:$0xff]  ;;  %s2824_s26 = smov 17   ;;  %s2828_s11 = smov 15  }
  0x11   : > { %1803 = vperm.xlu1 %2759, %v2680_v3   ;;  %1752 = vperm.xlu0 %2758, %v2677_v4   ;;  %v2972_v18 = vld [vmem:[%s2966_s12] sm:$0xff]  ;;  %v2980_v20 = vld [vmem:[%s2966_s12 + $0x8] sm:$0xff]  ;;  %v2600_v25 = vld [vmem:[%s4887_s4 + $0x18] sm:$0xff]  ;;  %s2830_s30 = smov 124   ;;  %s2831_s19 = smov 1  }
  0x12   : > { %v2686_v21 = vld [vmem:[%s4887_s4 + $0x1e8] sm:$0xff]  ;;  %v2685_v22 = vld [vmem:[%s4887_s4 + $0x1e0] sm:$0xff]  ;;  %v2599_v26 = vld [vmem:[%s4887_s4 + $0x10] sm:$0xff]  ;;  %s2832_s18 = smov 125   ;;  %s2834_s24 = smov 83  }
  0x13   : > { %v409_v23 = vld [vmem:[%s4887_s4 + $0x8] sm:$0xff]  ;;  %v408_v24 = vld [vmem:[%s4887_s4] sm:$0xff]  ;;  %v2629_v27 = vld [vmem:[%s4887_s4 + $0xb8] sm:$0xff]  ;;  %s2836_s21 = smov 98   ;;  %s2838_s29 = smov 113  }
  0x14   : > { %v2628_v28 = vld [vmem:[%s4887_s4 + $0xb0] sm:$0xff]  ;;  %v2659_v29 = vld [vmem:[%s4887_s4 + $0x158] sm:$0xff]  ;;  %v2603_v31 = vld [vmem:[%s4887_s4 + $0x28] sm:$0xff]  ;;  %s2840_s25 = smov 77  }
  0x15   : > { %1312 = vperm.xlu1 %2759, %v2650_v5   ;;  %1307 = vperm.xlu0 %2758, %v2649_v6   ;;  %v2658_v30 = vld [vmem:[%s4887_s4 + $0x150] sm:$0xff]  ;;  %v2602_v32 = vld [vmem:[%s4887_s4 + $0x20] sm:$0xff]  ;;  %v2632_v33 = vld [vmem:[%s4887_s4 + $0xc8] sm:$0xff] }
  0x16   : > { %v2631_v34 = vld [vmem:[%s4887_s4 + $0xc0] sm:$0xff]  ;;  %v2689_v39 = vld [vmem:[%s4887_s4 + $0x1f8] sm:$0xff]  ;;  %v2688_v40 = vld [vmem:[%s4887_s4 + $0x1f0] sm:$0xff] }
  0x17   : > { %v2691_v43 = vld [vmem:[%s4887_s4 + $0x208] sm:$0xff]  ;;  %v2690_v44 = vld [vmem:[%s4887_s4 + $0x200] sm:$0xff]  ;;  %v2606_v55 = vld [vmem:[%s4887_s4 + $0x38] sm:$0xff] }
  0x18   : > { %v2605_v56 = vld [vmem:[%s4887_s4 + $0x30] sm:$0xff]  ;;  %v2662_v3 = vld [vmem:[%s4887_s4 + $0x168] sm:$0xff]  ;;  %v2661_v4 = vld [vmem:[%s4887_s4 + $0x160] sm:$0xff] }
  0x19   : > { %1363 = vperm.xlu1 %2759, %v2653_v7   ;;  %1358 = vperm.xlu0 %2758, %v2652_v8   ;;  %v2664_v7 = vld [vmem:[%s4887_s4 + $0x178] sm:$0xff]  ;;  %v2663_v8 = vld [vmem:[%s4887_s4 + $0x170] sm:$0xff] }
  0x1d   : > { %1854 = vperm.xlu1 %2759, %v2683_v9   ;;  %1849 = vperm.xlu0 %2758, %v2682_v10  }
  0x21   : > { %872 = vperm.xlu1 %2759, %v2623_v11   ;;  %867 = vperm.xlu0 %2758, %v2622_v12   ;;  %v2694_v11 = vld [vmem:[%s4887_s4 + $0x218] sm:$0xff]  ;;  %v2693_v12 = vld [vmem:[%s4887_s4 + $0x210] sm:$0xff] }
  0x25   : > { %923 = vperm.xlu1 %2759, %v2626_v13   ;;  %918 = vperm.xlu0 %2758, %v2625_v14  }
  0x29   : > { %1414 = vperm.xlu1 %2759, %v2656_v15   ;;  %1409 = vperm.xlu0 %2758, %v2655_v16  }
  0x2d   : > { %1732 = vrot.lane.b32.xlu1 %v2969_v17, %s2815_s15  ;;  %1730 = vrot.lane.b32.xlu0 %v2972_v18, %s2815_s15 }
  0x31   : > { %1736 = vrot.lane.b32.xlu1 %v2977_v19, %s2815_s15  ;;  %1734 = vrot.lane.b32.xlu0 %v2980_v20, %s2815_s15  ;;  %s2826_s15 = smov 30  }
  0x35   : > { %1783 = vrot.lane.b32.xlu1 %v2969_v17, %s2816_s16  ;;  %1781 = vrot.lane.b32.xlu0 %v2972_v18, %s2816_s16 }
  0x39   : > { %1787 = vrot.lane.b32.xlu1 %v2977_v19, %s2816_s16  ;;  %1785 = vrot.lane.b32.xlu0 %v2980_v20, %s2816_s16  ;;  %s2817_s16 = smov 51  }
  0x3d   : > { %1905 = vperm.xlu1 %2759, %v2686_v21   ;;  %1900 = vperm.xlu0 %2758, %v2685_v22  }
  0x41   : > { %433 = vperm.xlu1 %2759, %v409_v23   ;;  %428 = vperm.xlu0 %2758, %v408_v24  }
  0x45   : > { %484 = vperm.xlu1 %2759, %v2600_v25   ;;  %479 = vperm.xlu0 %2758, %v2599_v26  }
  0x49   : > { %974 = vperm.xlu1 %2759, %v2629_v27   ;;  %969 = vperm.xlu0 %2758, %v2628_v28   ;;  %v2635_v27 = vld [vmem:[%s4887_s4 + $0xd8] sm:$0xff]  ;;  %v2634_v28 = vld [vmem:[%s4887_s4 + $0xd0] sm:$0xff] }
  0x4d   : > { %1292 = vrot.lane.b32.xlu1 %v2969_v17, %s2817_s16  ;;  %1290 = vrot.lane.b32.xlu0 %v2972_v18, %s2817_s16 }
  0x51   : > { %1296 = vrot.lane.b32.xlu1 %v2977_v19, %s2817_s16  ;;  %1294 = vrot.lane.b32.xlu0 %v2980_v20, %s2817_s16  ;;  %s2822_s16 = smov 45  }
  0x55   : > { %1343 = vrot.lane.b32.xlu1 %v2969_v17, %s2818_s17  ;;  %1341 = vrot.lane.b32.xlu0 %v2972_v18, %s2818_s17 }
  0x59   : > { %1347 = vrot.lane.b32.xlu1 %v2977_v19, %s2818_s17  ;;  %1345 = vrot.lane.b32.xlu0 %v2980_v20, %s2818_s17  ;;  %s2823_s17 = smov 4  }
  0x5d   : > { %1465 = vperm.xlu1 %2759, %v2659_v29   ;;  %1460 = vperm.xlu0 %2758, %v2658_v30  }
  0x61   : > { %1834 = vrot.lane.b32.xlu1 %v2969_v17, %s2819_s22  ;;  %1832 = vrot.lane.b32.xlu0 %v2972_v18, %s2819_s22 }
  0x65   : > { %1838 = vrot.lane.b32.xlu1 %v2977_v19, %s2819_s22  ;;  %1836 = vrot.lane.b32.xlu0 %v2980_v20, %s2819_s22 }
  0x69   : > { %535 = vperm.xlu1 %2759, %v2603_v31   ;;  %530 = vperm.xlu0 %2758, %v2602_v32   ;;  %v2637_v31 = vld [vmem:[%s4887_s4 + $0xe8] sm:$0xff]  ;;  %v2636_v32 = vld [vmem:[%s4887_s4 + $0xe0] sm:$0xff] }
  0x6d   : > { %852 = vrot.lane.b32.xlu1 %v2969_v17, %s2820_s27  ;;  %850 = vrot.lane.b32.xlu0 %v2972_v18, %s2820_s27 }
  0x71   : > { %856 = vrot.lane.b32.xlu1 %v2977_v19, %s2820_s27  ;;  %854 = vrot.lane.b32.xlu0 %v2980_v20, %s2820_s27  ;;  %s2825_s27 = smov 16  }
  0x75   : > { %903 = vrot.lane.b32.xlu1 %v2969_v17, %s2821_s28  ;;  %901 = vrot.lane.b32.xlu0 %v2972_v18, %s2821_s28 }
  0x79   : > { %907 = vrot.lane.b32.xlu1 %v2977_v19, %s2821_s28  ;;  %905 = vrot.lane.b32.xlu0 %v2980_v20, %s2821_s28  ;;  %s2837_s28 = smov 80  }
  0x7d   : > { %1025 = vperm.xlu1 %2759, %v2632_v33   ;;  %1020 = vperm.xlu0 %2758, %v2631_v34  }
  0x81   : > { %1394 = vrot.lane.b32.xlu1 %v2969_v17, %s2822_s16  ;;  %1392 = vrot.lane.b32.xlu0 %v2972_v18, %s2822_s16 }
  0x85   : > { %1398 = vrot.lane.b32.xlu1 %v2977_v19, %s2822_s16  ;;  %1396 = vrot.lane.b32.xlu0 %v2980_v20, %s2822_s16  ;;  %s2827_s16 = smov 3  }
  0x88   : > { %v3054_v35 = vpop.permute.xlu1 %1798  ;;  %v3056_v36 = vpop.permute.xlu0 %1747 }
  0x89   : > { %1885 = vrot.lane.b32.xlu1 %v2969_v17, %s2823_s17  ;;  %1883 = vrot.lane.b32.xlu0 %v2972_v18, %s2823_s17 }
  0x8c   : > { %v3060_v37 = vpop.permute.xlu1 %1803  ;;  %v3062_v38 = vpop.permute.xlu0 %1752 }
  0x8d   : > { %1889 = vrot.lane.b32.xlu1 %v2977_v19, %s2823_s17  ;;  %1887 = vrot.lane.b32.xlu0 %v2980_v20, %s2823_s17 }
  0x90   : > { %v3072_v41 = vpop.permute.xlu1 %1312  ;;  %v3074_v42 = vpop.permute.xlu0 %1307 }
  0x91   : > { %1941 = vperm.xlu1 %2759, %v2689_v39   ;;  %1936 = vperm.xlu0 %2758, %v2688_v40   ;;  %v2667_v39 = vld [vmem:[%s4887_s4 + $0x188] sm:$0xff]  ;;  %v2666_v40 = vld [vmem:[%s4887_s4 + $0x180] sm:$0xff] }
  0x94   : > { %v3082_v45 = vpop.permute.xlu1 %1363  ;;  %v3084_v46 = vpop.permute.xlu0 %1358 }
  0x95   : > { %1977 = vperm.xlu1 %2759, %v2691_v43   ;;  %1972 = vperm.xlu0 %2758, %v2690_v44  }
  0x98   : > { %v3086_v47 = vpop.permute.xlu1 %1854  ;;  %v3088_v48 = vpop.permute.xlu0 %1849 }
  0x99   : > { %412 = vrot.lane.b32.xlu1 %v2969_v17, %s2824_s26  ;;  %410 = vrot.lane.b32.xlu0 %v2972_v18, %s2824_s26 }
  0x9c   : > { %v3094_v49 = vpop.permute.xlu1 %872  ;;  %v3096_v50 = vpop.permute.xlu0 %867 }
  0x9d   : > { %5020 = vst [vmem:[#allocation2_spill] sm:$0xff] %v3094_v49  ;;  %5021 = vst [vmem:[#allocation3_spill] sm:$0xff] %v3096_v50  ;;  %416 = vrot.lane.b32.xlu1 %v2977_v19, %s2824_s26  ;;  %414 = vrot.lane.b32.xlu0 %v2980_v20, %s2824_s26 }
  0xa0   : > { %v3102_v51 = vpop.permute.xlu1 %923  ;;  %v3104_v52 = vpop.permute.xlu0 %918 }
  0xa1   : > { %5022 = vst [vmem:[#allocation4_spill] sm:$0xff] %v3102_v51  ;;  %5023 = vst [vmem:[#allocation5_spill] sm:$0xff] %v3104_v52  ;;  %464 = vrot.lane.b32.xlu1 %v2969_v17, %s2825_s27  ;;  %462 = vrot.lane.b32.xlu0 %v2972_v18, %s2825_s27 }
  0xa4   : > { %v3110_v53 = vpop.permute.xlu1 %1414  ;;  %v3112_v54 = vpop.permute.xlu0 %1409 }
  0xa5   : > { %5024 = vst [vmem:[#allocation6_spill] sm:$0xff] %v3110_v53  ;;  %5025 = vst [vmem:[#allocation7_spill] sm:$0xff] %v3112_v54  ;;  %468 = vrot.lane.b32.xlu1 %v2977_v19, %s2825_s27  ;;  %466 = vrot.lane.b32.xlu0 %v2980_v20, %s2825_s27 }
  0xa8   : > { %v3124_v57 = vpop.permute.xlu1 %1732  ;;  %v3126_v58 = vpop.permute.xlu0 %1730 }
  0xa9   : > { %586 = vperm.xlu1 %2759, %v2606_v55   ;;  %581 = vperm.xlu0 %2758, %v2605_v56  }
  0xac   : > { %v3128_v59 = vpop.permute.xlu1 %1736  ;;  %v3130_v60 = vpop.permute.xlu0 %1734 }
  0xad   : > { %954 = vrot.lane.b32.xlu1 %v2969_v17, %s2826_s15  ;;  %952 = vrot.lane.b32.xlu0 %v2972_v18, %s2826_s15 }
  0xb0   : > { %v3134_v61 = vpop.permute.xlu1 %1783  ;;  %v3136_v62 = vpop.permute.xlu0 %1781 }
  0xb1   : > { %958 = vrot.lane.b32.xlu1 %v2977_v19, %s2826_s15  ;;  %956 = vrot.lane.b32.xlu0 %v2980_v20, %s2826_s15  ;;  %s2829_s15 = smov 2  }
  0xb4   : > { %v3140_v63 = vpop.permute.xlu1 %1787  ;;  %v3142_v0 = vpop.permute.xlu0 %1785 }
  0xb5   : > { %1445 = vrot.lane.b32.xlu1 %v2969_v17, %s2827_s16  ;;  %1443 = vrot.lane.b32.xlu0 %v2972_v18, %s2827_s16 }
  0xb8   : > { %v3146_v1 = vpop.permute.xlu1 %1905  ;;  %v3148_v2 = vpop.permute.xlu0 %1900 }
  0xb9   : > { %5026 = vst [vmem:[#allocation8_spill] sm:$0xff] %v3146_v1  ;;  %5027 = vst [vmem:[#allocation9_spill] sm:$0xff] %v3148_v2  ;;  %1449 = vrot.lane.b32.xlu1 %v2977_v19, %s2827_s16  ;;  %1447 = vrot.lane.b32.xlu0 %v2980_v20, %s2827_s16  ;;  %v2624_v2 = vld [vmem:[%s4886_s3 + $0x11] ss:$8 sm:$0x3]  ;;  %s2842_s16 = smov 94  }
  0xbc   : > { %v3158_v5 = vpop.permute.xlu1 %433  ;;  %v3160_v6 = vpop.permute.xlu0 %428 }
  0xbd   : > { %5028 = vst [vmem:[#allocation10_spill] sm:$0xff] %v3158_v5  ;;  %5029 = vst [vmem:[#allocation11_spill] sm:$0xff] %v3160_v6  ;;  %1501 = vperm.xlu1 %2759, %v2662_v3   ;;  %1496 = vperm.xlu0 %2758, %v2661_v4   ;;  %v2699_v5 = vld [vmem:[%s4887_s4 + $0x230] sm:$0xff] }
  0xc0   : > { %v3168_v9 = vpop.permute.xlu1 %484  ;;  %v3170_v10 = vpop.permute.xlu0 %479 }
  0xc1   : > { %5030 = vst [vmem:[#allocation12_spill] sm:$0xff] %v3168_v9  ;;  %5031 = vst [vmem:[#allocation13_spill] sm:$0xff] %v3170_v10  ;;  %1537 = vperm.xlu1 %2759, %v2664_v7   ;;  %1532 = vperm.xlu0 %2758, %v2663_v8   ;;  %v2697_v7 = vld [vmem:[%s4887_s4 + $0x228] sm:$0xff]  ;;  %v2696_v8 = vld [vmem:[%s4887_s4 + $0x220] sm:$0xff] }
  0xc4   : > { %v3178_v13 = vpop.permute.xlu1 %974  ;;  %v3180_v14 = vpop.permute.xlu0 %969 }
  0xc5   : > { %5032 = vst [vmem:[#allocation14_spill] sm:$0xff] %v3178_v13  ;;  %5033 = vst [vmem:[#allocation15_spill] sm:$0xff] %v3180_v14  ;;  %2015 = vperm.xlu1 %2759, %v2694_v11   ;;  %2010 = vperm.xlu0 %2758, %v2693_v12  }
  0xc8   : > { %v3182_v15 = vpop.permute.xlu1 %1292  ;;  %v3184_v16 = vpop.permute.xlu0 %1290 }
  0xc9   : > { %515 = vrot.lane.b32.xlu1 %v2969_v17, %s2828_s11  ;;  %513 = vrot.lane.b32.xlu0 %v2972_v18, %s2828_s11 }
  0xcc   : > { %v3190_v21 = vpop.permute.xlu1 %1296  ;;  %v3192_v22 = vpop.permute.xlu0 %1294 }
  0xcd   : > { %519 = vrot.lane.b32.xlu1 %v2977_v19, %s2828_s11  ;;  %517 = vrot.lane.b32.xlu0 %v2980_v20, %s2828_s11 }
  0xd0   : > { %v3198_v23 = vpop.permute.xlu1 %1343  ;;  %v3200_v24 = vpop.permute.xlu0 %1341 }
  0xd1   : > { %1005 = vrot.lane.b32.xlu1 %v2969_v17, %s2829_s15  ;;  %1003 = vrot.lane.b32.xlu0 %v2972_v18, %s2829_s15 }
  0xd4   : > { %v3204_v25 = vpop.permute.xlu1 %1347  ;;  %v3206_v26 = vpop.permute.xlu0 %1345 }
  0xd5   : > { %1009 = vrot.lane.b32.xlu1 %v2977_v19, %s2829_s15  ;;  %1007 = vrot.lane.b32.xlu0 %v2980_v20, %s2829_s15  ;;  %s2835_s15 = smov 127  }
  0xd8   : > { %v3216_v29 = vpop.permute.xlu1 %1465  ;;  %v3218_v30 = vpop.permute.xlu0 %1460 }
  0xd9   : > { %5034 = vst [vmem:[#allocation16_spill] sm:$0xff] %v3216_v29  ;;  %5035 = vst [vmem:[#allocation17_spill] sm:$0xff] %v3218_v30  ;;  %1061 = vperm.xlu1 %2759, %v2635_v27   ;;  %1056 = vperm.xlu0 %2758, %v2634_v28   ;;  %v2700_v29 = vld [vmem:[%s4887_s4 + $0x238] sm:$0xff] }
  0xdc   : > { %v3226_v33 = vpop.permute.xlu1 %1834  ;;  %v3228_v34 = vpop.permute.xlu0 %1832 }
  0xdd   : > { %1097 = vperm.xlu1 %2759, %v2637_v31   ;;  %1092 = vperm.xlu0 %2758, %v2636_v32  }
  0xe0   : > { %v3236_v43 = vpop.permute.xlu1 %1838  ;;  %v3238_v44 = vpop.permute.xlu0 %1836 }
  0xe1   : > { %1588 = vperm.xlu1 %2759, %v2667_v39   ;;  %1583 = vperm.xlu0 %2758, %v2666_v40   ;;  %v2609_v39 = vld [vmem:[%s4887_s4 + $0x48] sm:$0xff]  ;;  %v2608_v40 = vld [vmem:[%s4887_s4 + $0x40] sm:$0xff] }
  0xe4   : > { %v3240_v55 = vpop.permute.xlu1 %535  ;;  %v3242_v56 = vpop.permute.xlu0 %530 }
  0xe5   : > { %5036 = vst [vmem:[#allocation18_spill] sm:$0xff] %v3240_v55  ;;  %5037 = vst [vmem:[#allocation19_spill] sm:$0xff] %v3242_v56  ;;  %1957 = vrot.lane.b32.xlu1 %v2969_v17, %s2830_s30  ;;  %1955 = vrot.lane.b32.xlu0 %v2972_v18, %s2830_s30  ;;  %v2611_v56 = vld [vmem:[%s4887_s4 + $0x58] sm:$0xff]  ;;  %v2610_v55 = vld [vmem:[%s4887_s4 + $0x50] sm:$0xff] }
  0xe8   : > { %v3246_v3 = vpop.permute.xlu1 %852  ;;  %v3248_v4 = vpop.permute.xlu0 %850 }
  0xe9   : > { %1961 = vrot.lane.b32.xlu1 %v2977_v19, %s2830_s30  ;;  %1959 = vrot.lane.b32.xlu0 %v2980_v20, %s2830_s30  ;;  %s2839_s30 = smov 96  }
  0xec   : > { %v3258_v11 = vpop.permute.xlu1 %856  ;;  %v3260_v12 = vpop.permute.xlu0 %854 }
  0xed   : > { %2053 = vperm.xlu1 %2759, %v2697_v7   ;;  %2048 = vperm.xlu0 %2758, %v2696_v8  }
  0xf0   : > { %v3262_v27 = vpop.permute.xlu1 %903  ;;  %v3264_v28 = vpop.permute.xlu0 %901 }
  0xf1   : > { %5038 = vst [vmem:[#allocation20_spill] sm:$0xff] %v3262_v27  ;;  %5039 = vst [vmem:[#allocation21_spill] sm:$0xff] %v3264_v28  ;;  %566 = vrot.lane.b32.xlu1 %v2969_v17, %s2831_s19  ;;  %564 = vrot.lane.b32.xlu0 %v2972_v18, %s2831_s19 }
  0xf4   : > { %v3270_v31 = vpop.permute.xlu1 %907  ;;  %v3272_v32 = vpop.permute.xlu0 %905 }
  0xf5   : > { %5040 = vst [vmem:[#allocation22_spill] sm:$0xff] %v3270_v31  ;;  %5041 = vst [vmem:[#allocation23_spill] sm:$0xff] %v3272_v32  ;;  %570 = vrot.lane.b32.xlu1 %v2977_v19, %s2831_s19  ;;  %568 = vrot.lane.b32.xlu0 %v2980_v20, %s2831_s19  ;;  %v2627_v31 = vld [vmem:[%s4886_s3 + $0x12] ss:$8 sm:$0x3] }
  0xf8   : > { %v3284_v7 = vpop.permute.xlu1 %1025  ;;  %v3286_v8 = vpop.permute.xlu0 %1020 }
  0xf9   : > { %5042 = vst [vmem:[#allocation24_spill] sm:$0xff] %v3284_v7  ;;  %5043 = vst [vmem:[#allocation25_spill] sm:$0xff] %v3286_v8  ;;  %622 = vperm.xlu1 %2759, %v2609_v39   ;;  %617 = vperm.xlu0 %2758, %v2608_v40   ;;  %v2640_v8 = vld [vmem:[%s4887_s4 + $0xf8] sm:$0xff]  ;;  %v2639_v39 = vld [vmem:[%s4887_s4 + $0xf0] sm:$0xff] }
  0xfc   : > { %v3294_v14 = vpop.permute.xlu1 %1394  ;;  %v3296_v13 = vpop.permute.xlu0 %1392 }
  0xfd   : > { %5044 = vst [vmem:[#allocation26_spill] sm:$0xff] %v3294_v14  ;;  %5045 = vst [vmem:[#allocation27_spill] sm:$0xff] %v3296_v13  ;;  %658 = vperm.xlu1 %2759, %v2611_v56   ;;  %653 = vperm.xlu0 %2758, %v2610_v55   ;;  %v2614_v13 = vld [vmem:[%s4887_s4 + $0x68] sm:$0xff] }
 0x100   : > { %v3304_v40 = vpop.permute.xlu1 %1398  ;;  %v3306_v7 = vpop.permute.xlu0 %1396 }
 0x101   : > { %5046 = vst [vmem:[#allocation28_spill] sm:$0xff] %v3304_v40  ;;  %5047 = vst [vmem:[#allocation29_spill] sm:$0xff] %v3306_v7  ;;  %1148 = vperm.xlu1 %2759, %v2640_v8   ;;  %1143 = vperm.xlu0 %2758, %v2639_v39   ;;  %v2670_v8 = vld [vmem:[%s4887_s4 + $0x198] sm:$0xff]  ;;  %v2669_v39 = vld [vmem:[%s4887_s4 + $0x190] sm:$0xff] }
 0x104   : > { %v3308_v10 = vpop.permute.xlu1 %1885  ;;  %v3310_v9 = vpop.permute.xlu0 %1883 }
 0x105   : > { %1517 = vrot.lane.b32.xlu1 %v2969_v17, %s2832_s18  ;;  %1515 = vrot.lane.b32.xlu0 %v2972_v18, %s2832_s18 }
 0x108   : > { %v3314_v55 = vpop.permute.xlu1 %1889  ;;  %v3316_v56 = vpop.permute.xlu0 %1887 }
 0x109   : > { %1521 = vrot.lane.b32.xlu1 %v2977_v19, %s2832_s18  ;;  %1519 = vrot.lane.b32.xlu0 %v2980_v20, %s2832_s18  ;;  %s2833_s18 = smov 126  }
 0x10c   : > { %v3326_v30 = vpop.permute.xlu1 %1941  ;;  %v3328_v6 = vpop.permute.xlu0 %1936 }
 0x10d   : > { %5048 = vst [vmem:[#allocation30_spill] sm:$0xff] %v3326_v30  ;;  %5049 = vst [vmem:[#allocation31_spill] sm:$0xff] %v3328_v6  ;;  %1639 = vperm.xlu1 %2759, %v2670_v8   ;;  %1634 = vperm.xlu0 %2758, %v2669_v39   ;;  %v2613_v8 = vld [vmem:[%s4887_s4 + $0x60] sm:$0xff]  ;;  %v2684_v30 = vld [vmem:[%s4886_s3 + $0x35] ss:$8 sm:$0x3] }
 0x110   : > { %v3336_v54 = vpop.permute.xlu1 %1977  ;;  %v3338_v53 = vpop.permute.xlu0 %1972 }
 0x111   : > { %5050 = vst [vmem:[#allocation32_spill] sm:$0xff] %v3336_v54  ;;  %5051 = vst [vmem:[#allocation33_spill] sm:$0xff] %v3338_v53  ;;  %2091 = vperm.xlu1 %2759, %v2700_v29   ;;  %2086 = vperm.xlu0 %2758, %v2699_v5  }
 0x114   : > { %v3346_v39 = vpop.permute.xlu1 %412  ;;  %v3348_v7 = vpop.permute.xlu0 %410 }
 0x115   : > { %5052 = vst [vmem:[#allocation34_spill] sm:$0xff] %v3346_v39  ;;  %5053 = vst [vmem:[#allocation35_spill] sm:$0xff] %v3348_v7  ;;  %709 = vperm.xlu1 %2759, %v2614_v13   ;;  %704 = vperm.xlu0 %2758, %v2613_v8   ;;  %v2643_v13 = vld [vmem:[%s4887_s4 + $0x108] sm:$0xff]  ;;  %v2642_v8 = vld [vmem:[%s4887_s4 + $0x100] sm:$0xff] }
 0x118   : > { %v3350_v14 = vpop.permute.xlu1 %416  ;;  %v3352_v40 = vpop.permute.xlu0 %414 }
 0x119   : > { %5054 = vst [vmem:[#allocation36_spill] sm:$0xff] %v3350_v14  ;;  %5055 = vst [vmem:[#allocation37_spill] sm:$0xff] %v3352_v40  ;;  %1077 = vrot.lane.b32.xlu1 %v2969_v17, %s2833_s18  ;;  %1075 = vrot.lane.b32.xlu0 %v2972_v18, %s2833_s18 }
 0x11c   : > { %v3356_v5 = vpop.permute.xlu1 %464  ;;  %v3358_v29 = vpop.permute.xlu0 %462 }
 0x11d   : > { %5056 = vst [vmem:[#allocation38_spill] sm:$0xff] %v3356_v5  ;;  %5057 = vst [vmem:[#allocation39_spill] sm:$0xff] %v3358_v29  ;;  %1081 = vrot.lane.b32.xlu1 %v2977_v19, %s2833_s18  ;;  %1079 = vrot.lane.b32.xlu0 %v2980_v20, %s2833_s18 }
 0x120   : > { %v3368_v40 = vpop.permute.xlu1 %468  ;;  %v3370_v7 = vpop.permute.xlu0 %466 }
 0x121   : > { %5058 = vst [vmem:[#allocation40_spill] sm:$0xff] %v3368_v40  ;;  %5059 = vst [vmem:[#allocation41_spill] sm:$0xff] %v3370_v7  ;;  %1199 = vperm.xlu1 %2759, %v2643_v13   ;;  %1194 = vperm.xlu0 %2758, %v2642_v8   ;;  %v2673_v13 = vld [vmem:[%s4887_s4 + $0x1a8] sm:$0xff]  ;;  %v2672_v8 = vld [vmem:[%s4887_s4 + $0x1a0] sm:$0xff] }
 0x124   : > { %v3372_v5 = vpop.permute.xlu1 %586  ;;  %v3374_v29 = vpop.permute.xlu0 %581 }
 0x125   : > { %5060 = vst [vmem:[#allocation42_spill] sm:$0xff] %v3372_v5  ;;  %5061 = vst [vmem:[#allocation43_spill] sm:$0xff] %v3374_v29  ;;  %1568 = vrot.lane.b32.xlu1 %v2969_v17, %s2834_s24  ;;  %1566 = vrot.lane.b32.xlu0 %v2972_v18, %s2834_s24 }
 0x128   : > { %v3378_v14 = vpop.permute.xlu1 %954  ;;  %v3380_v39 = vpop.permute.xlu0 %952 }
 0x129   : > { %5062 = vst [vmem:[#allocation44_spill] sm:$0xff] %v3378_v14  ;;  %5063 = vst [vmem:[#allocation45_spill] sm:$0xff] %v3380_v39  ;;  %1572 = vrot.lane.b32.xlu1 %v2977_v19, %s2834_s24  ;;  %1570 = vrot.lane.b32.xlu0 %v2980_v20, %s2834_s24 }
 0x12c   : > { %v3390_v29 = vpop.permute.xlu1 %958  ;;  %v3392_v5 = vpop.permute.xlu0 %956 }
 0x12d   : > { %5064 = vst [vmem:[#allocation46_spill] sm:$0xff] %v3390_v29  ;;  %5065 = vst [vmem:[#allocation47_spill] sm:$0xff] %v3392_v5  ;;  %1690 = vperm.xlu1 %2759, %v2673_v13   ;;  %1685 = vperm.xlu0 %2758, %v2672_v8   ;;  %v2617_v13 = vld [vmem:[%s4887_s4 + $0x78] sm:$0xff]  ;;  %v2616_v8 = vld [vmem:[%s4887_s4 + $0x70] sm:$0xff] }
 0x130   : > { %v3394_v14 = vpop.permute.xlu1 %1445  ;;  %v3396_v39 = vpop.permute.xlu0 %1443 }
 0x131   : > { %5066 = vst [vmem:[#allocation48_spill] sm:$0xff] %v3394_v14  ;;  %5067 = vst [vmem:[#allocation49_spill] sm:$0xff] %v3396_v39  ;;  %638 = vrot.lane.b32.xlu1 %v2969_v17, %s2835_s15  ;;  %636 = vrot.lane.b32.xlu0 %v2972_v18, %s2835_s15 }
 0x134   : > { %v3402_v7 = vpop.permute.xlu1 %1449  ;;  %v3404_v40 = vpop.permute.xlu0 %1447 }
 0x135   : > { %5068 = vst [vmem:[#allocation50_spill] sm:$0xff] %v3402_v7  ;;  %5069 = vst [vmem:[#allocation51_spill] sm:$0xff] %v3404_v40  ;;  %642 = vrot.lane.b32.xlu1 %v2977_v19, %s2835_s15  ;;  %640 = vrot.lane.b32.xlu0 %v2980_v20, %s2835_s15 }
 0x138   : > { %v3416_v5 = vpop.permute.xlu1 %1501  ;;  %v3418_v29 = vpop.permute.xlu0 %1496 }
 0x139   : > { %5070 = vst [vmem:[#allocation52_spill] sm:$0xff] %v3416_v5  ;;  %5071 = vst [vmem:[#allocation53_spill] sm:$0xff] %v3418_v29  ;;  %760 = vperm.xlu1 %2759, %v2617_v13   ;;  %755 = vperm.xlu0 %2758, %v2616_v8   ;;  %v2646_v13 = vld [vmem:[%s4887_s4 + $0x118] sm:$0xff]  ;;  %v2645_v8 = vld [vmem:[%s4887_s4 + $0x110] sm:$0xff] }
 0x13c   : > { %v3420_v39 = vpop.permute.xlu1 %1537  ;;  %v3422_v40 = vpop.permute.xlu0 %1532 }
 0x13d   : > { %5072 = vst [vmem:[#allocation54_spill] sm:$0xff] %v3420_v39  ;;  %5073 = vst [vmem:[#allocation55_spill] sm:$0xff] %v3422_v40  ;;  %1128 = vrot.lane.b32.xlu1 %v2969_v17, %s2836_s21  ;;  %1126 = vrot.lane.b32.xlu0 %v2972_v18, %s2836_s21 }
 0x140   : > { %v3426_v14 = vpop.permute.xlu1 %2015  ;;  %v3428_v7 = vpop.permute.xlu0 %2010 }
 0x141   : > { %5074 = vst [vmem:[#allocation56_spill] sm:$0xff] %v3426_v14  ;;  %5075 = vst [vmem:[#allocation57_spill] sm:$0xff] %v3428_v7  ;;  %1132 = vrot.lane.b32.xlu1 %v2977_v19, %s2836_s21  ;;  %1130 = vrot.lane.b32.xlu0 %v2980_v20, %s2836_s21  ;;  %v418_v7 = vlaneseq  ;;  %s2841_s21 = smov 112  }
 0x144   : > { %v3438_v29 = vpop.permute.xlu1 %515  ;;  %v3440_v40 = vpop.permute.xlu0 %513 }
 0x145   : > { %5076 = vst [vmem:[#allocation58_spill] sm:$0xff] %v3438_v29  ;;  %5077 = vst [vmem:[#allocation59_spill] sm:$0xff] %v3440_v40  ;;  %1250 = vperm.xlu1 %2759, %v2646_v13   ;;  %1245 = vperm.xlu0 %2758, %v2645_v8   ;;  %v442_v13 = vshrl.u32 %v418_v7, 7  ;;  %v2678_v29 = vld [vmem:[%s4886_s3 + $0x33] ss:$8 sm:$0x3] }
 0x148   : > { %v3442_v39 = vpop.permute.xlu1 %519  ;;  %v3444_v5 = vpop.permute.xlu0 %517 }
 0x149   : > { %5078 = vst [vmem:[#allocation60_spill] sm:$0xff] %v3442_v39  ;;  %5079 = vst [vmem:[#allocation61_spill] sm:$0xff] %v3444_v5  ;;  %1619 = vrot.lane.b32.xlu1 %v2969_v17, %s2837_s28  ;;  %1617 = vrot.lane.b32.xlu0 %v2972_v18, %s2837_s28  ;;  %v3462_v5 = vand.u32 127, %v418_v7  ;;  %v3464_v39 = vsub.s32 0, %v442_v13 }
 0x14a   : > { %v2651_v7 = vld [vmem:[%s4886_s3 + $0x22] ss:$8 sm:$0x3] }
 0x14b   : > { %vm1738_vm0 = vcmp.lt.s32.totalorder %v3462_v5, 68  ;;  %v3496_v6 = vrot.slane %v2678_v29, %v3464_v39  ;;  %vm1789_vm1 = vcmp.lt.s32.totalorder %v3462_v5, 64  ;;  %v3512_v51 = vrot.slane %v2651_v7, %v3464_v39 }
 0x14c   : > { %v3448_v14 = vpop.permute.xlu1 %1005  ;;  %v3450_v53 = vpop.permute.xlu0 %1003  ;;  %vm1349_vm2 = vcmp.lt.s32.totalorder %v3462_v5, 48  ;;  %v3560_v27 = vsel %vm1789_vm1, %v3142_v0, %v3136_v62  ;;  %vm1298_vm3 = vcmp.lt.s32.totalorder %v3462_v5, 51  ;;  %v3578_v49 = vsel %vm1738_vm0, %v3124_v57, %v3128_v59 }
 0x14d   : > { %5080 = vst [vmem:[#allocation62_spill] sm:$0xff] %v3448_v14  ;;  %5081 = vst [vmem:[#allocation63_spill] sm:$0xff] %v3450_v53  ;;  %1623 = vrot.lane.b32.xlu1 %v2977_v19, %s2837_s28  ;;  %1621 = vrot.lane.b32.xlu0 %v2980_v20, %s2837_s28  ;;  %v3471_v14 = vsub.s32 1, %v442_v13  ;;  %v2620_v13 = vld [vmem:[%s4887_s4 + $0x88] sm:$0xff]  ;;  %vm1840_vm4 = vcmp.lt.s32.totalorder %v3462_v5, 60  ;;  %vm858_vm5 = vcmp.lt.s32.totalorder %v3462_v5, 34 }
 0x14e   : > { %5091 = vst [vmem:[#allocation73_spill] sm:$0xff] %v3560_v27  ;;  %5095 = vst [vmem:[#allocation77_spill] sm:$0xff] %v3578_v49  ;;  %vm1891_vm6 = vcmp.lt.s32.totalorder %v3462_v5, 4  ;;  %vm909_vm7 = vcmp.lt.s32.totalorder %v3462_v5, 32  ;;  %vm1963_vm8 = vcmp.lt.s32.totalorder %v3462_v5, 124  ;;  %vm1400_vm9 = vcmp.lt.s32.totalorder %v3462_v5, 45 }
 0x14f   : > { %v3505_v52 = vrot.slane %v2678_v29, %v3471_v14  ;;  %v3520_v1 = vrot.slane %v2651_v7, %v3471_v14  ;;  %v3542_v7 = vsel %vm1789_vm1, %v3140_v63, %v3134_v61  ;;  %vm1523_vm10 = vcmp.lt.s32.totalorder %v3462_v5, 125 }
 0x150   : > { %v3454_v8 = vpop.permute.xlu1 %1009  ;;  %v3456_v40 = vpop.permute.xlu0 %1007  ;;  %5089 = vst [vmem:[#allocation71_spill] sm:$0xff] %v3542_v7  ;;  %vm420_vm11 = vcmp.lt.s32.totalorder %v3462_v5, 17  ;;  %vm470_vm12 = vcmp.lt.s32.totalorder %v3462_v5, 16  ;;  %vm1451_vm13 = vcmp.lt.s32.totalorder %v3462_v5, 3  ;;  %vm1083_vm14 = vcmp.lt.s32.totalorder %v3462_v5, 126 }
 0x151   : > { %5082 = vst [vmem:[#allocation64_spill] sm:$0xff] %v3454_v8  ;;  %5083 = vst [vmem:[#allocation65_spill] sm:$0xff] %v3456_v40  ;;  %689 = vrot.lane.b32.xlu1 %v2969_v17, %s2838_s29  ;;  %687 = vrot.lane.b32.xlu0 %v2972_v18, %s2838_s29  ;;  %v2681_v40 = vld [vmem:[%s4886_s3 + $0x34] ss:$8 sm:$0x3]  ;;  %vm960_vm15 = vcmp.lt.s32.totalorder %v3462_v5, 30 }
 0x152   : > { %v1814_v32 = vrot.slane %v2681_v40, %v3464_v39  ;;  %v3509_v28 = vrot.slane %v2681_v40, %v3471_v14 }
 0x154   : > { %v3469_v53 = vpop.permute.xlu1 %1061  ;;  %v3476_v8 = vpop.permute.xlu0 %1056 }
 0x155   : > { %5084 = vst [vmem:[#allocation66_spill] sm:$0xff] %v3469_v53  ;;  %5085 = vst [vmem:[#allocation67_spill] sm:$0xff] %v3476_v8  ;;  %693 = vrot.lane.b32.xlu1 %v2977_v19, %s2838_s29  ;;  %691 = vrot.lane.b32.xlu0 %v2980_v20, %s2838_s29  ;;  %v2654_v53 = vld [vmem:[%s4886_s3 + $0x23] ss:$8 sm:$0x3] }
 0x156   : > { %v2619_v8 = vld [vmem:[%s4887_s4 + $0x80] sm:$0xff]  ;;  %v3524_v29 = vrot.slane %v2654_v53, %v3464_v39  ;;  %v3527_v40 = vrot.slane %v2654_v53, %v3471_v14  ;;  %v3545_v53 = vrot.slane %v2684_v30, %v3464_v39 }
 0x158   : > { %v3499_v54 = vpop.permute.xlu1 %1097 }
 0x159   : > { %5086 = vst [vmem:[#allocation68_spill] sm:$0xff] %v3499_v54  ;;  %v3517_v54 = vpop.permute.xlu0 %1092  ;;  %811 = vperm.xlu1 %2759, %v2620_v13   ;;  %806 = vperm.xlu0 %2758, %v2619_v8   ;;  %v3536_v13 = vsel %vm1789_vm1, %v3134_v61, %v3140_v63  ;;  %v3554_v8 = vsel %vm1738_vm0, %v3128_v59, %v3124_v57  ;;  %v2687_v57 = vld [vmem:[%s4886_s3 + $0x36] ss:$8 sm:$0x3] }
 0x15a   : > { %5087 = vst [vmem:[#allocation69_spill] sm:$0xff] %v3517_v54  ;;  %5088 = vst [vmem:[#allocation70_spill] sm:$0xff] %v3536_v13  ;;  %v3548_v54 = vrot.slane %v2684_v30, %v3471_v14  ;;  %v3564_v61 = vrot.slane %v2624_v2, %v3464_v39  ;;  %v3567_v63 = vrot.slane %v2624_v2, %v3471_v14  ;;  %v2657_v30 = vld [vmem:[%s4886_s3 + $0x24] ss:$8 sm:$0x3] }
 0x15b   : > { %5090 = vst [vmem:[#allocation72_spill] sm:$0xff] %v3554_v8  ;;  %v3590_v2 = vsel %vm1738_vm0, %v3130_v60, %v3126_v58 }
 0x15c   : > { %5092 = vst [vmem:[#allocation74_spill] sm:$0xff] %v3564_v61  ;;  %5093 = vst [vmem:[#allocation75_spill] sm:$0xff] %v3567_v63  ;;  %v3572_v50 = vpop.permute.xlu1 %1588  ;;  %v3584_v61 = vsel %vm1738_vm0, %v3126_v58, %v3130_v60  ;;  %v1808_v63 = vmul.f32 %v3060_v37, %v3542_v7  ;;  %v1809_v58 = vmul.f32 %v3060_v37, %v3536_v13  ;;  %vm1574_vm0 = vcmp.lt.s32.totalorder %v3462_v5, 83 }
 0x15d   : > { %5094 = vst [vmem:[#allocation76_spill] sm:$0xff] %v3572_v50  ;;  %5096 = vst [vmem:[#allocation78_spill] sm:$0xff] %v3584_v61  ;;  %v3593_v50 = vrot.slane %v2627_v31, %v3464_v39  ;;  %v3598_v59 = vpop.permute.xlu0 %1583  ;;  %1179 = vrot.lane.b32.xlu1 %v2969_v17, %s2839_s30  ;;  %v3611_v60 = vsel %vm1789_vm1, %v3136_v62, %v3142_v0  ;;  %1177 = vrot.lane.b32.xlu0 %v2972_v18, %s2839_s30  ;;  %v2601_v0 = vld [vmem:[%s4886_s3 + $0x1] ss:$8 sm:$0x3]  ;;  %vm1011_vm1 = vcmp.lt.s32.totalorder %v3462_v5, 2 }
 0x15e   : > { %5097 = vst [vmem:[#allocation79_spill] sm:$0xff] %v3590_v2  ;;  %5099 = vst [vmem:[#allocation81_spill] sm:$0xff] %v3598_v59  ;;  %v3614_v59 = vrot.slane %v2627_v31, %v3471_v14  ;;  %v1757_v7 = vmul.f32 %v3062_v38, %v3554_v8  ;;  %v1806_v37 = vmul.f32 %v3054_v35, %v3560_v27 }
 0x15f   : > { %5098 = vst [vmem:[#allocation80_spill] sm:$0xff] %v3593_v50  ;;  %5100 = vst [vmem:[#allocation82_spill] sm:$0xff] %v3611_v60  ;;  %v425_v50 = vld [vmem:[%s4886_s3] ss:$8 sm:$0x3]  ;;  %v3626_v13 = vrot.slane %v2657_v30, %v3464_v39  ;;  %v3629_v62 = vrot.slane %v2657_v30, %v3471_v14  ;;  %v1758_v31 = vmul.f32 %v3062_v38, %v3578_v49 }
 0x160   : > { %5101 = vst [vmem:[#allocation83_spill] sm:$0xff] %v3614_v59  ;;  %v1755_v59 = vmul.f32 %v3056_v36, %v3590_v2  ;;  %v1756_v8 = vmul.f32 %v3056_v36, %v3584_v61  ;;  %v3641_v27 = vrot.slane %v2687_v57, %v3464_v39  ;;  %v2630_v30 = vld [vmem:[%s4886_s3 + $0x13] ss:$8 sm:$0x3]  ;;  %v3651_v38 = vrot.slane %v2687_v57, %v3471_v14 }
 0x161   : > { %5102 = vst [vmem:[#allocation84_spill] sm:$0xff] %v3626_v13  ;;  %5103 = vst [vmem:[#allocation85_spill] sm:$0xff] %v3629_v62  ;;  %v3646_v62 = vpop.permute.xlu1 %1957  ;;  %v1807_v13 = vmul.f32 %v3054_v35, %v3611_v60  ;;  %v3654_v2 = vrot.slane %v425_v50, %v3464_v39  ;;  %v3657_v36 = vrot.slane %v425_v50, %v3471_v14  ;;  %v2660_v61 = vld [vmem:[%s4886_s3 + $0x25] ss:$8 sm:$0x3]  ;;  %v3662_v49 = vpop.permute.xlu0 %1955  ;;  %1183 = vrot.lane.b32.xlu1 %v2977_v19, %s2839_s30 }
 0x162   : > { %5104 = vst [vmem:[#allocation86_spill] sm:$0xff] %v3646_v62  ;;  %5107 = vst [vmem:[#allocation89_spill] sm:$0xff] %v3662_v49  ;;  %v1823_v62 = vmul.f32 %v1814_v32, %v1808_v63  ;;  %v1824_v35 = vmul.f32 %v3509_v28, %v1809_v58  ;;  %v3668_v57 = vrot.slane %v2601_v0, %v3464_v39  ;;  %1181 = vrot.lane.b32.xlu0 %v2980_v20, %s2839_s30 }
 0x163   : > { %5105 = vst [vmem:[#allocation87_spill] sm:$0xff] %v3654_v2  ;;  %5106 = vst [vmem:[#allocation88_spill] sm:$0xff] %v3657_v36  ;;  %v3671_v2 = vrot.slane %v2601_v0, %v3471_v14  ;;  %v1772_v50 = vmul.f32 %v3496_v6, %v1757_v7  ;;  %v1821_v36 = vmul.f32 %v1814_v32, %v1806_v37 }
 0x164   : > { %5108 = vst [vmem:[#allocation90_spill] sm:$0xff] %v3668_v57  ;;  %v3677_v60 = vrot.slane %v2630_v30, %v3464_v39  ;;  %v3680_v49 = vrot.slane %v2630_v30, %v3471_v14  ;;  %v1773_v63 = vmul.f32 %v3505_v52, %v1758_v31  ;;  %v1770_v58 = vmul.f32 %v3496_v6, %v1755_v59 }
 0x165   : > { %5109 = vst [vmem:[#allocation91_spill] sm:$0xff] %v3671_v2  ;;  %v1771_v57 = vmul.f32 %v3505_v52, %v1756_v8  ;;  %v3686_v0 = vrot.slane %v2660_v61, %v3464_v39  ;;  %v3688_v2 = vpop.permute.xlu1 %1961  ;;  %v1822_v7 = vmul.f32 %v3509_v28, %v1807_v13  ;;  %v1351_v32 = vsel %vm1349_vm2, %v3198_v23, %v3204_v25  ;;  %v3702_v52 = vpop.permute.xlu0 %1959 }
 0x166   : > { %5110 = vst [vmem:[#allocation92_spill] sm:$0xff] %v3677_v60  ;;  %5111 = vst [vmem:[#allocation93_spill] sm:$0xff] %v3680_v49  ;;  %v1353_v37 = vsel %vm1349_vm2, %v3204_v25, %v3198_v23  ;;  %v3700_v6 = vrot.slane %v2660_v61, %v3471_v14  ;;  %1670 = vrot.lane.b32.xlu1 %v2969_v17, %s2840_s25  ;;  %v3705_v8 = vadd.f32 %v1823_v62, %v1772_v50  ;;  %v5155_v60 = vld [vmem:[#allocation78_spill] sm:$0xff] }
 0x167   : > { %v3707_v28 = vadd.f32 %v1824_v35, %v1773_v63  ;;  %v1350_v13 = vsel %vm1349_vm2, %v3200_v24, %v3206_v26  ;;  %v1352_v23 = vsel %vm1349_vm2, %v3206_v26, %v3200_v24  ;;  %1668 = vrot.lane.b32.xlu0 %v2972_v18, %s2840_s25  ;;  %v3718_v25 = vadd.f32 %v1821_v36, %v1770_v58  ;;  %v2604_v58 = vld [vmem:[%s4886_s3 + $0x2] ss:$8 sm:$0x3] }
 0x168   : > { %v1300_v61 = vsel %vm1298_vm3, %v3182_v15, %v3190_v21  ;;  %v1302_v59 = vsel %vm1298_vm3, %v3190_v21, %v3182_v15  ;;  %v1299_v62 = vsel %vm1298_vm3, %v3184_v16, %v3192_v22  ;;  %v1301_v24 = vsel %vm1298_vm3, %v3192_v22, %v3184_v16  ;;  %v2695_v15 = vld [vmem:[%s4886_s3 + $0x41] ss:$8 sm:$0x3] }
 0x169   : > { %v1368_v26 = vmul.f32 %v3082_v45, %v1353_v37  ;;  %v1369_v31 = vmul.f32 %v3082_v45, %v1351_v32  ;;  %v3743_v21 = vpop.permute.xlu1 %2053  ;;  %v3749_v30 = vsel %vm1840_vm4, %v3236_v43, %v3226_v33  ;;  %v3751_v36 = vadd.f32 %v1822_v7, %v1771_v57  ;;  %v3755_v22 = vpop.permute.xlu0 %2048 }
 0x16a   : > { %v1366_v16 = vmul.f32 %v3084_v46, %v1352_v23  ;;  %v1367_v45 = vmul.f32 %v3084_v46, %v1350_v13  ;;  %1674 = vrot.lane.b32.xlu1 %v2977_v19, %s2840_s25  ;;  %v3762_v35 = vsel %vm1840_vm4, %v3226_v33, %v3236_v43  ;;  %v1317_v50 = vmul.f32 %v3072_v41, %v1302_v59 }
 0x16b   : > { %v1318_v63 = vmul.f32 %v3072_v41, %v1300_v61  ;;  %1672 = vrot.lane.b32.xlu0 %v2980_v20, %s2840_s25  ;;  %v3771_v46 = vsel %vm1840_vm4, %v3228_v34, %v3238_v44  ;;  %v3777_v57 = vsel %vm1840_vm4, %v3238_v44, %v3228_v34  ;;  %v1315_v33 = vmul.f32 %v3074_v42, %v1301_v24  ;;  %s4233_s25 = sshll.u32 %s5269_s14, 4 }
 0x16c   : > { %v1316_v43 = vmul.f32 %v3074_v42, %v1299_v62  ;;  %v3783_v41 = vrot.slane %v2695_v15, %v3464_v39  ;;  %v1859_v7 = vmul.f32 %v3086_v47, %v3749_v30  ;;  %v1383_v32 = vmul.f32 %v3524_v29, %v1368_v26  ;;  %v2633_v42 = vld [vmem:[%s4886_s3 + $0x14] ss:$8 sm:$0x3]  ;;  %s4274_s30 = scalar_lea.vmem %s4884_s1, %s4233_s25  ;;  %s384_s24 = scalar_lea.vmem %s4883_s0, %s4233_s25 }
 0x16d   : > { %v1384_v34 = vmul.f32 %v3527_v40, %v1369_v31  ;;  %v3793_v44 = vrot.slane %v2695_v15, %v3471_v14  ;;  %v3798_v37 = vpop.permute.xlu1 %566  ;;  %v1860_v13 = vmul.f32 %v3086_v47, %v3762_v35  ;;  %v1381_v23 = vmul.f32 %v3524_v29, %v1366_v16  ;;  %v3804_v59 = vpop.permute.xlu0 %564 }
 0x16e   : > { %5112 = vst [vmem:[#allocation94_spill] sm:$0xff] %v3798_v37  ;;  %v1382_v61 = vmul.f32 %v3527_v40, %v1367_v45  ;;  %5113 = vst [vmem:[#allocation95_spill] sm:$0xff] %v3804_v59  ;;  %740 = vrot.lane.b32.xlu1 %v2969_v17, %s2841_s21  ;;  %v1857_v62 = vmul.f32 %v3088_v48, %v3777_v57  ;;  %v1858_v24 = vmul.f32 %v3088_v48, %v3771_v46  ;;  %v2692_v48 = vld [vmem:[%s4886_s3 + $0x40] ss:$8 sm:$0x3] }
 0x16f   : > { %v1332_v26 = vmul.f32 %v3512_v51, %v1317_v50  ;;  %v1333_v47 = vmul.f32 %v3520_v1, %v1318_v63  ;;  %v3815_v29 = vrot.slane %v2604_v58, %v3464_v39  ;;  %v3818_v40 = vrot.slane %v2604_v58, %v3471_v14  ;;  %738 = vrot.lane.b32.xlu0 %v2972_v18, %s2841_s21 }
 0x170   : > { %v1330_v17 = vmul.f32 %v3512_v51, %v1315_v33  ;;  %v1331_v31 = vmul.f32 %v3520_v1, %v1316_v43  ;;  %v3825_v15 = vrot.slane %v2633_v42, %v3464_v39  ;;  %v1874_v16 = vmul.f32 %v3545_v53, %v1859_v7 }
 0x171   : > { %5114 = vst [vmem:[#allocation96_spill] sm:$0xff] %v3815_v29  ;;  %5115 = vst [vmem:[#allocation97_spill] sm:$0xff] %v3818_v40  ;;  %v3831_v45 = vadd.f32 %v1383_v32, %v1332_v26  ;;  %v3833_v50 = vadd.f32 %v1384_v34, %v1333_v47  ;;  %v3836_v63 = vrot.slane %v2633_v42, %v3471_v14  ;;  %v3838_v18 = vpop.permute.xlu1 %570  ;;  %v3845_v43 = vpop.permute.xlu0 %568  ;;  %v5143_v29 = vld [vmem:[#allocation89_spill] sm:$0xff]  ;;  %vm521_vm2 = vcmp.lt.s32.totalorder %v3462_v5, 15 }
 0x172   : > { %5116 = vst [vmem:[#allocation98_spill] sm:$0xff] %v3825_v15  ;;  %5118 = vst [vmem:[#allocation100_spill] sm:$0xff] %v3838_v18  ;;  %v1875_v51 = vmul.f32 %v3548_v54, %v1860_v13  ;;  %v3841_v1 = vadd.f32 %v1381_v23, %v1330_v17  ;;  %v3843_v33 = vadd.f32 %v1382_v61, %v1331_v31  ;;  %744 = vrot.lane.b32.xlu1 %v2977_v19, %s2841_s21  ;;  %v5123_v17 = vld [vmem:[#allocation3_spill] sm:$0xff]  ;;  %v5125_v31 = vld [vmem:[#allocation22_spill] sm:$0xff] }
 0x173   : > { %5117 = vst [vmem:[#allocation99_spill] sm:$0xff] %v3836_v63  ;;  %5119 = vst [vmem:[#allocation101_spill] sm:$0xff] %v3845_v43  ;;  %v1872_v58 = vmul.f32 %v3545_v53, %v1857_v62  ;;  %v1873_v7 = vmul.f32 %v3548_v54, %v1858_v24  ;;  %v862_v32 = vsel %vm858_vm5, %v3258_v11, %v3246_v3  ;;  %742 = vrot.lane.b32.xlu0 %v2980_v20, %s2841_s21  ;;  %v3910_v24 = vld [vmem:[%s2966_s12 + $0x10] sm:$0xff]  ;;  %v5148_v63 = vld [vmem:[#allocation33_spill] sm:$0xff] }
 0x174   : > { %v3857_v34 = vrot.slane %v2692_v48, %v3464_v39  ;;  %v3860_v42 = vrot.slane %v2692_v48, %v3471_v14  ;;  %v860_v19 = vsel %vm858_vm5, %v3246_v3, %v3258_v11  ;;  %v861_v54 = vsel %vm858_vm5, %v3260_v12, %v3248_v4 }
 0x175   : > { %v1895_v53 = vsel %vm1891_vm6, %v3314_v55, %v3308_v10  ;;  %v3877_v13 = vadd.f32 %v1874_v16, %v3705_v8  ;;  %v859_v20 = vsel %vm858_vm5, %v3248_v4, %v3260_v12  ;;  %v1893_v3 = vsel %vm1891_vm6, %v3308_v10, %v3314_v55  ;;  %v2698_v8 = vld [vmem:[%s4886_s3 + $0x42] ss:$8 sm:$0x3]  ;;  %v3894_v23 = vpop.permute.xlu1 %622  ;;  %v2607_v55 = vld [vmem:[%s4886_s3 + $0x3] ss:$8 sm:$0x3]  ;;  %v3907_v62 = vpop.permute.xlu0 %617 }
 0x176   : > { %v1894_v11 = vsel %vm1891_vm6, %v3316_v56, %v3310_v9  ;;  %5120 = vst [vmem:[#allocation102_spill] sm:$0xff] %v3894_v23  ;;  %v3897_v61 = vadd.f32 %v1875_v51, %v3707_v28  ;;  %v5121_v4 = vld [vmem:[#allocation2_spill] sm:$0xff]  ;;  %v1892_v10 = vsel %vm1891_vm6, %v3310_v9, %v3316_v56  ;;  %1230 = vrot.lane.b32.xlu1 %v3910_v24, %s2842_s16  ;;  %v5124_v56 = vld [vmem:[#allocation20_spill] sm:$0xff]  ;;  %vm644_vm3 = vcmp.lt.s32.totalorder %v3462_v5, 127 }
 0x177   : > { %v877_v12 = vmul.f32 %v5121_v4, %v862_v32  ;;  %5122 = vst [vmem:[#allocation2_spill] sm:$0xff] %v3907_v62  ;;  %v1876_v28 = vadd.f32 %v1872_v58, %v3718_v25  ;;  %v1877_v26 = vadd.f32 %v1873_v7, %v3751_v36  ;;  %v878_v47 = vmul.f32 %v5121_v4, %v860_v19  ;;  %v5126_v16 = vld [vmem:[#allocation8_spill] sm:$0xff]  ;;  %v3925_v32 = vld [vmem:[%s2966_s12] sm:$0xff]  ;;  %v5128_v58 = vld [vmem:[#allocation9_spill] sm:$0xff] }
 0x178   : > { %v875_v9 = vmul.f32 %v5123_v17, %v861_v54  ;;  %v913_v48 = vsel %vm909_vm7, %v5125_v31, %v5124_v56  ;;  %v1910_v51 = vmul.f32 %v5126_v16, %v1895_v53  ;;  %5127 = vst [vmem:[#allocation3_spill] sm:$0xff] %v3925_v32  ;;  %1228 = vrot.lane.b32.xlu0 %v3925_v32, %s2842_s16  ;;  %vm572_vm4 = vcmp.lt.s32.totalorder %v3462_v5, 1 }
 0x179   : > { %v876_v25 = vmul.f32 %v5123_v17, %v859_v20  ;;  %v1911_v36 = vmul.f32 %v5126_v16, %v1893_v3  ;;  %v1908_v7 = vmul.f32 %v5128_v58, %v1894_v11  ;;  %v3933_v19 = vrot.slane %v2698_v8, %v3464_v39  ;;  %v3945_v20 = vpop.permute.xlu1 %658  ;;  %v5132_v3 = vld [vmem:[#allocation74_spill] sm:$0xff] }
 0x17a   : > { %v1909_v54 = vmul.f32 %v5128_v58, %v1892_v10  ;;  %v3937_v53 = vrot.slane %v2698_v8, %v3471_v14  ;;  %v3940_v4 = vrot.slane %v2607_v55, %v3464_v39  ;;  %v3943_v62 = vrot.slane %v2607_v55, %v3471_v14  ;;  %5131 = vst [vmem:[#allocation8_spill] sm:$0xff] %v3945_v20  ;;  %v5133_v10 = vld [vmem:[#allocation4_spill] sm:$0xff]  ;;  %v5134_v8 = vld [vmem:[#allocation21_spill] sm:$0xff]  ;;  %v5135_v58 = vld [vmem:[#allocation23_spill] sm:$0xff] }
 0x17b   : > { %v3948_v17 = vmul.f32 %v5132_v3, %v877_v12  ;;  %v911_v11 = vsel %vm909_vm7, %v5124_v56, %v5125_v31  ;;  %v928_v16 = vmul.f32 %v5133_v10, %v913_v48  ;;  %v912_v23 = vsel %vm909_vm7, %v5135_v58, %v5134_v8  ;;  %v3962_v55 = vld [vmem:[%s2966_s12 + $0x18] sm:$0xff]  ;;  %v5137_v12 = vld [vmem:[#allocation75_spill] sm:$0xff] }
 0x17c   : > { %5129 = vst [vmem:[#allocation20_spill] sm:$0xff] %v3940_v4  ;;  %5130 = vst [vmem:[#allocation22_spill] sm:$0xff] %v3943_v62  ;;  %v3959_v4 = vpop.permute.xlu0 %653  ;;  %1234 = vrot.lane.b32.xlu1 %v3962_v55, %s2842_s16  ;;  %v3967_v62 = vmul.f32 %v5137_v12, %v878_v47  ;;  %v3970_v40 = vmul.f32 %v5132_v3, %v875_v9  ;;  %v910_v56 = vsel %vm909_vm7, %v5134_v8, %v5135_v58  ;;  %v3978_v48 = vld [vmem:[%s2966_s12 + $0x8] sm:$0xff]  ;;  %v5139_v3 = vld [vmem:[#allocation86_spill] sm:$0xff]  ;;  %s2843_s12 = smov 111  }
 0x17d   : > { %5136 = vst [vmem:[#allocation9_spill] sm:$0xff] %v3959_v4  ;;  %v1925_v31 = vmul.f32 %v3641_v27, %v1910_v51  ;;  %5138 = vst [vmem:[#allocation74_spill] sm:$0xff] %v3978_v48  ;;  %1232 = vrot.lane.b32.xlu0 %v3978_v48, %s2842_s16  ;;  %v3983_v59 = vmul.f32 %v5137_v12, %v876_v25  ;;  %v1926_v47 = vmul.f32 %v3651_v38, %v1911_v36  ;;  %v2702_v51 = vld [vmem:[%s4888_s5 + $0x18] sm:$0xff]  ;;  %v4001_v36 = vpop.permute.xlu1 %1148 }
 0x17e   : > { %v1923_v9 = vmul.f32 %v3641_v27, %v1908_v7  ;;  %v1967_v43 = vsel %vm1963_vm8, %v3688_v2, %v5139_v3  ;;  %v929_v8 = vmul.f32 %v5133_v10, %v911_v11  ;;  %v5140_v58 = vld [vmem:[#allocation5_spill] sm:$0xff]  ;;  %v1924_v25 = vmul.f32 %v3651_v38, %v1909_v54  ;;  %5141 = vst [vmem:[#allocation4_spill] sm:$0xff] %v4001_v36  ;;  %v5142_v7 = vld [vmem:[#allocation80_spill] sm:$0xff] }
 0x17f   : > { %v926_v37 = vmul.f32 %v5140_v58, %v912_v23  ;;  %v1965_v27 = vsel %vm1963_vm8, %v5139_v3, %v3688_v2  ;;  %v4004_v12 = vmul.f32 %v5142_v7, %v928_v16  ;;  %v927_v18 = vmul.f32 %v5140_v58, %v910_v56  ;;  %v5145_v2 = vld [vmem:[#allocation30_spill] sm:$0xff]  ;;  %v5146_v16 = vld [vmem:[#allocation32_spill] sm:$0xff]  ;;  %v5147_v58 = vld [vmem:[#allocation31_spill] sm:$0xff] }
 0x180   : > { %v1964_v11 = vsel %vm1963_vm8, %v5143_v29, %v3702_v52  ;;  %v1966_v38 = vsel %vm1963_vm8, %v3702_v52, %v5143_v29  ;;  %v4015_v23 = vpop.permute.xlu0 %1143  ;;  %789 = vrot.lane.b32.xlu1 %v3925_v32, %s2843_s12  ;;  %v1946_v54 = vmul.f32 %v3910_v24, %v5145_v2  ;;  %v1947_v10 = vmul.f32 %v3962_v55, %v5145_v2 }
 0x181   : > { %5144 = vst [vmem:[#allocation21_spill] sm:$0xff] %v4015_v23  ;;  %v1983_v56 = vmul.f32 %v5146_v16, %v1967_v43  ;;  %2123 = vperm.xlu0 %2758, %v2702_v51   ;;  %v1929_v3 = vadd.f32 %v1925_v31, %v3877_v13  ;;  %v1944_v52 = vmul.f32 %v3925_v32, %v5147_v58  ;;  %v1518_v20 = vpop.permute.xlu1 %1517  ;;  %v5149_v51 = vld [vmem:[#allocation83_spill] sm:$0xff]  ;;  %vm1134_vm5 = vcmp.lt.s32.totalorder %v3462_v5, 98 }
 0x182   : > { %v1982_v29 = vmul.f32 %v5146_v16, %v1965_v27  ;;  %v1930_v23 = vadd.f32 %v1926_v47, %v3897_v61  ;;  %v1927_v36 = vadd.f32 %v1923_v9, %v1876_v28  ;;  %v1945_v4 = vmul.f32 %v3978_v48, %v5147_v58  ;;  %v5150_v61 = vld [vmem:[#allocation28_spill] sm:$0xff]  ;;  %v5151_v28 = vld [vmem:[#allocation26_spill] sm:$0xff]  ;;  %v5154_v16 = vld [vmem:[#allocation77_spill] sm:$0xff] }
 0x183   : > { %v1980_v15 = vmul.f32 %v5148_v63, %v1964_v11  ;;  %v1981_v2 = vmul.f32 %v5148_v63, %v1966_v38  ;;  %v1928_v43 = vadd.f32 %v1924_v25, %v1877_v26  ;;  %v4034_v49 = vmul.f32 %v5149_v51, %v929_v8  ;;  %v5152_v8 = vld [vmem:[#allocation72_spill] sm:$0xff] }
 0x184   : > { %v4037_v13 = vmul.f32 %v5142_v7, %v926_v37  ;;  %v4040_v31 = vmul.f32 %v5149_v51, %v927_v18  ;;  %v1402_v47 = vsel %vm1400_vm9, %v5151_v28, %v5150_v61  ;;  %v1516_v9 = vpop.permute.xlu0 %1515  ;;  %793 = vrot.lane.b32.xlu1 %v3978_v48, %s2843_s12  ;;  %v1404_v63 = vsel %vm1400_vm9, %v5150_v61, %v5151_v28  ;;  %v2675_v18 = vld [vmem:[%s4888_s5 + $0x10] sm:$0xff]  ;;  %v5156_v48 = vld [vmem:[#allocation57_spill] sm:$0xff] }
 0x185   : > { %v1998_v37 = vmul.f32 %v3860_v42, %v1983_v56  ;;  %791 = vrot.lane.b32.xlu0 %v3910_v24, %s2843_s12  ;;  %v1950_v26 = vadd.f32 %v1946_v54, %v1929_v3  ;;  %v5153_v25 = vld [vmem:[#allocation56_spill] sm:$0xff]  ;;  %v1997_v7 = vmul.f32 %v3857_v34, %v1982_v29  ;;  %v1951_v11 = vadd.f32 %v1947_v10, %v1930_v23  ;;  %v1522_v61 = vpop.permute.xlu1 %1521  ;;  %v5157_v54 = vld [vmem:[#allocation79_spill] sm:$0xff] }
 0x186   : > { %v2021_v27 = vmul.f32 %v5153_v25, %v5152_v8  ;;  %v1948_v38 = vadd.f32 %v1944_v52, %v1927_v36  ;;  %v2020_v56 = vmul.f32 %v5153_v25, %v5154_v16  ;;  %v1995_v58 = vmul.f32 %v3857_v34, %v1980_v15  ;;  %v5158_v15 = vld [vmem:[#allocation71_spill] sm:$0xff]  ;;  %v5162_v25 = vld [vmem:[#allocation82_spill] sm:$0xff] }
 0x187   : > { %v1996_v51 = vmul.f32 %v3860_v42, %v1981_v2  ;;  %v1949_v28 = vadd.f32 %v1945_v4, %v1928_v43  ;;  %v2018_v32 = vmul.f32 %v5156_v48, %v5155_v60  ;;  %v2019_v3 = vmul.f32 %v5156_v48, %v5157_v54  ;;  %v839_v4 = vld [vmem:[%s4888_s5] sm:$0xff]  ;;  %v5159_v48 = vld [vmem:[#allocation29_spill] sm:$0xff]  ;;  %v5160_v10 = vld [vmem:[#allocation27_spill] sm:$0xff] }
 0x188   : > { %v4072_v29 = vsel %vm1523_vm10, %v1518_v20, %v1522_v61  ;;  %v4076_v36 = vsel %vm1523_vm10, %v1522_v61, %v1518_v20  ;;  %v1520_v23 = vpop.permute.xlu0 %1519  ;;  %1722 = vperm.xlu1 %2759, %v2675_v18   ;;  %v2059_v34 = vmul.f32 %v3743_v21, %v5158_v15  ;;  %v2002_v20 = vadd.f32 %v1998_v37, %v1951_v11  ;;  %v5161_v43 = vld [vmem:[#allocation70_spill] sm:$0xff]  ;;  %v5163_v61 = vld [vmem:[#allocation73_spill] sm:$0xff] }
 0x189   : > { %v4082_v42 = vsel %vm1523_vm10, %v1516_v9, %v1520_v23  ;;  %v4086_v60 = vsel %vm1523_vm10, %v1520_v23, %v1516_v9  ;;  %795 = vrot.lane.b32.xlu0 %v3962_v55, %s2843_s12  ;;  %v1401_v52 = vsel %vm1400_vm9, %v5160_v10, %v5159_v48  ;;  %v2036_v2 = vmul.f32 %v3793_v44, %v2021_v27  ;;  %v2648_v9 = vld [vmem:[%s4888_s5 + $0x8] sm:$0xff]  ;;  %v4107_v11 = vpop.permute.xlu1 %1639 }
 0x18a   : > { %v2058_v18 = vmul.f32 %v3743_v21, %v5161_v43  ;;  %v2001_v8 = vadd.f32 %v1997_v7, %v1950_v26  ;;  %v2056_v16 = vmul.f32 %v3755_v22, %v5162_v25  ;;  %v2057_v37 = vmul.f32 %v3755_v22, %v5163_v61  ;;  %5164 = vst [vmem:[#allocation23_spill] sm:$0xff] %v4107_v11  ;;  %v2701_v27 = vld [vmem:[%s4886_s3 + $0x43] ss:$8 sm:$0x3] }
 0x18b   : > { %v2000_v54 = vadd.f32 %v1996_v51, %v1949_v28  ;;  %v1999_v23 = vadd.f32 %v1995_v58, %v1948_v38  ;;  %v5165_v21 = vld [vmem:[#allocation6_spill] sm:$0xff]  ;;  %v1403_v26 = vsel %vm1400_vm9, %v5159_v48, %v5160_v10  ;;  %v2035_v22 = vmul.f32 %v3783_v41, %v2020_v56 }
 0x18c   : > { %v1419_v15 = vmul.f32 %v5165_v21, %v1404_v63  ;;  %v1420_v43 = vmul.f32 %v5165_v21, %v1402_v47  ;;  %v4120_v7 = vpop.permute.xlu0 %1634  ;;  %842 = vperm.xlu1 %2759, %v839_v4   ;;  %v2033_v25 = vmul.f32 %v3783_v41, %v2018_v32  ;;  %v2034_v38 = vmul.f32 %v3793_v44, %v2019_v3  ;;  %v2129_v56 = vld [vmem:[%s4890_s7] sm:$0xff] }
 0x18d   : > { %5166 = vst [vmem:[#allocation75_spill] sm:$0xff] %v4120_v7  ;;  %v2074_v63 = vmul.f32 %v3937_v53, %v2059_v34  ;;  %1282 = vperm.xlu0 %2758, %v2648_v9   ;;  %v2040_v47 = vadd.f32 %v2036_v2, %v2002_v20  ;;  %v2073_v58 = vmul.f32 %v3933_v19, %v2058_v18  ;;  %v2092_v44 = vpop.permute.xlu1 %2091  ;;  %v5167_v34 = vld [vmem:[#allocation7_spill] sm:$0xff]  ;;  %vm1625_vm6 = vcmp.lt.s32.totalorder %v3462_v5, 80 }
 0x18e   : > { %v2102_v51 = vrot.slane %v2701_v27, %v3464_v39  ;;  %v2106_v28 = vrot.slane %v2701_v27, %v3471_v14  ;;  %v2039_v48 = vadd.f32 %v2035_v22, %v2001_v8  ;;  %v2071_v4 = vmul.f32 %v3933_v19, %v2056_v16 }
 0x18f   : > { %v2072_v41 = vmul.f32 %v3937_v53, %v2057_v37  ;;  %v2038_v32 = vadd.f32 %v2034_v38, %v2000_v54  ;;  %v2037_v3 = vadd.f32 %v2033_v25, %v1999_v23  ;;  %v1417_v20 = vmul.f32 %v5167_v34, %v1403_v26  ;;  %v5169_v23 = vld [vmem:[#allocation84_spill] sm:$0xff]  ;;  %v2665_v26 = vld [vmem:[%s4886_s3 + $0x27] ss:$8 sm:$0x3] }
 0x190   : > { %v1418_v10 = vmul.f32 %v5167_v34, %v1401_v52  ;;  %v2096_v2 = vmul.f32 %v2092_v44, %v3762_v35  ;;  %v2097_v18 = vmul.f32 %v2092_v44, %v3749_v30  ;;  %v2087_v9 = vpop.permute.xlu0 %2086  ;;  %v2078_v19 = vadd.f32 %v2074_v63, %v2040_v47  ;;  %v5171_v47 = vld [vmem:[#allocation85_spill] sm:$0xff] }
 0x191   : > { %v2094_v61 = vmul.f32 %v2087_v9, %v3771_v46  ;;  %v2095_v8 = vmul.f32 %v2087_v9, %v3777_v57  ;;  %2132 = vperm.xlu0 %2758, %v2129_v56   ;;  %v2077_v37 = vadd.f32 %v2073_v58, %v2039_v48  ;;  %v2844_v27 = vmov 0.0   ;;  %v4141_v30 = vpop.permute.xlu1 %709  ;;  %v5172_v48 = vld [vmem:[#allocation34_spill] sm:$0xff] }
 0x192   : > { %v2111_v53 = vmul.f32 %v2102_v51, %v2096_v2  ;;  %v2112_v16 = vmul.f32 %v2106_v28, %v2097_v18  ;;  %2203 = vmatprep.mubr.f32.mxu0 %v2844_v27  ;;  %2463 = vmatprep.mubr.f32.mxu1 %v2844_v27  ;;  %5168 = vst [vmem:[#allocation86_spill] sm:$0xff] %v4141_v30  ;;  %v5179_v2 = vld [vmem:[#allocation37_spill] sm:$0xff]  ;;  %v5182_v27 = vld [vmem:[#allocation51_spill] sm:$0xff]  ;;  %vm695_vm7 = vcmp.lt.s32.totalorder %v3462_v5, 113  ;;  %vm1185_vm8 = vcmp.lt.s32.totalorder %v3462_v5, 96 }
 0x193   : > { %v2109_v35 = vmul.f32 %v2102_v51, %v2094_v61  ;;  %v2110_v52 = vmul.f32 %v2106_v28, %v2095_v8  ;;  %v2076_v54 = vadd.f32 %v2072_v41, %v2038_v32  ;;  %v2075_v46 = vadd.f32 %v2071_v4, %v2037_v3  ;;  %v5173_v4 = vld [vmem:[#allocation36_spill] sm:$0xff]  ;;  %v5180_v8 = vld [vmem:[#allocation10_spill] sm:$0xff] }
 0x194   : > { %v4145_v57 = vadd.f32 %v4004_v12, %v3948_v17  ;;  %v1434_v21 = vmul.f32 %v5169_v23, %v1419_v15  ;;  %v4151_v22 = vpop.permute.xlu0 %704  ;;  %v2116_v25 = vadd.f32 %v2112_v16, %v2078_v19  ;;  %v2115_v38 = vadd.f32 %v2111_v53, %v2077_v37  ;;  %v2638_v53 = vld [vmem:[%s4886_s3 + $0x16] ss:$8 sm:$0x3] }
 0x195   : > { %5170 = vst [vmem:[#allocation5_spill] sm:$0xff] %v4151_v22  ;;  %v4155_v63 = vadd.f32 %v4034_v49, %v3967_v62  ;;  %v1435_v58 = vmul.f32 %v5171_v47, %v1420_v43  ;;  %v2114_v51 = vadd.f32 %v2110_v52, %v2076_v54  ;;  %v2113_v28 = vadd.f32 %v2109_v35, %v2075_v46  ;;  %v1078_v43 = vpop.permute.xlu1 %1077  ;;  %v5181_v16 = vld [vmem:[#allocation16_spill] sm:$0xff]  ;;  %v5183_v35 = vld [vmem:[#allocation49_spill] sm:$0xff] }
 0x196   : > { %v4160_v17 = vadd.f32 %v4037_v13, %v3970_v40  ;;  %v4164_v12 = vadd.f32 %v4040_v31, %v3983_v59  ;;  %v1432_v15 = vmul.f32 %v5169_v23, %v1417_v20  ;;  %v1433_v56 = vmul.f32 %v5171_v47, %v1418_v10  ;;  %v5176_v13 = vld [vmem:[#allocation50_spill] sm:$0xff]  ;;  %v5177_v31 = vld [vmem:[#allocation48_spill] sm:$0xff]  ;;  %v5178_v10 = vld [vmem:[#allocation35_spill] sm:$0xff] }
 0x197   : > { %v424_v49 = vsel %vm420_vm11, %v5173_v4, %v5172_v48  ;;  %v4173_v62 = vrot.slane %v2665_v26, %v3464_v39  ;;  %v4175_v41 = vadd.f32 %v2116_v25, %v2114_v51  ;;  %v4177_v40 = vadd.f32 %v2115_v38, %v2113_v28  ;;  %v5184_v23 = vld [vmem:[#allocation11_spill] sm:$0xff]  ;;  %v5185_v47 = vld [vmem:[#allocation40_spill] sm:$0xff] }
 0x198   : > { %v1438_v59 = vadd.f32 %v1434_v21, %v3831_v45  ;;  %v1453_v44 = vsel %vm1451_vm13, %v5177_v31, %v5176_v13  ;;  %v1455_v32 = vsel %vm1451_vm13, %v5176_v13, %v5177_v31  ;;  %v4189_v3 = vrot.slane %v2665_v26, %v3471_v14  ;;  %v1076_v34 = vpop.permute.xlu0 %1075  ;;  %v5189_v13 = vld [vmem:[#allocation17_spill] sm:$0xff] }
 0x199   : > { %5174 = vst [vmem:[#allocation80_spill] sm:$0xff] %v4175_v41  ;;  %5175 = vst [vmem:[#allocation89_spill] sm:$0xff] %v4177_v40  ;;  %v1439_v20 = vadd.f32 %v1435_v58, %v3833_v50  ;;  %v422_v45 = vsel %vm420_vm11, %v5172_v48, %v5173_v4  ;;  %v423_v18 = vsel %vm420_vm11, %v5179_v2, %v5178_v10  ;;  %v1082_v54 = vpop.permute.xlu1 %1081  ;;  %v5186_v58 = vld [vmem:[#allocation38_spill] sm:$0xff]  ;;  %v5187_v4 = vld [vmem:[#allocation39_spill] sm:$0xff]  ;;  %vm1676_vm9 = vcmp.lt.s32.totalorder %v3462_v5, 77 }
 0x19a   : > { %v1436_v9 = vadd.f32 %v1432_v15, %v3841_v1  ;;  %v1437_v61 = vadd.f32 %v1433_v56, %v3843_v33  ;;  %v438_v19 = vmul.f32 %v5180_v8, %v424_v49  ;;  %v421_v50 = vsel %vm420_vm11, %v5178_v10, %v5179_v2  ;;  %v5188_v49 = vld [vmem:[#allocation41_spill] sm:$0xff]  ;;  %v5208_v40 = vld [vmem:[#allocation3_spill] sm:$0xff] }
 0x19b   : > { %v1470_v37 = vmul.f32 %v5181_v16, %v1455_v32  ;;  %v1471_v1 = vmul.f32 %v5181_v16, %v1453_v44  ;;  %v1452_v33 = vsel %vm1451_vm13, %v5183_v35, %v5182_v27  ;;  %v1454_v52 = vsel %vm1451_vm13, %v5182_v27, %v5183_v35  ;;  %v5196_v27 = vld [vmem:[#allocation12_spill] sm:$0xff] }
 0x19c   : > { %v439_v46 = vmul.f32 %v5180_v8, %v422_v45  ;;  %v436_v21 = vmul.f32 %v5184_v23, %v423_v18  ;;  %v4226_v26 = vsel %vm1083_vm14, %v1078_v43, %v1082_v54  ;;  %v4230_v25 = vsel %vm1083_vm14, %v1082_v54, %v1078_v43  ;;  %v1080_v38 = vpop.permute.xlu0 %1079  ;;  %v5191_v18 = vld [vmem:[#allocation87_spill] sm:$0xff]  ;;  %v2668_v54 = vld [vmem:[%s4886_s3 + $0x30] ss:$8 sm:$0x3] }
 0x19d   : > { %v472_v51 = vsel %vm470_vm12, %v5186_v58, %v5185_v47  ;;  %v4240_v28 = vrot.slane %v2638_v53, %v3464_v39  ;;  %v4244_v15 = vsel %vm1083_vm14, %v1076_v34, %v1080_v38  ;;  %v4248_v56 = vsel %vm1083_vm14, %v1080_v38, %v1076_v34  ;;  %v4268_v2 = vpop.permute.xlu1 %1199 }
 0x19e   : > { %v474_v48 = vsel %vm470_vm12, %v5185_v47, %v5186_v58  ;;  %v473_v43 = vsel %vm470_vm12, %v5188_v49, %v5187_v4  ;;  %v1468_v31 = vmul.f32 %v5189_v13, %v1454_v52  ;;  %v1469_v44 = vmul.f32 %v5189_v13, %v1452_v33  ;;  %5190 = vst [vmem:[#allocation30_spill] sm:$0xff] %v4268_v2  ;;  %v4311_v58 = vld [vmem:[%s4274_s30] sm:$0xff] }
 0x19f   : > { %v4261_v32 = vmul.f32 %v5184_v23, %v421_v50  ;;  %v1485_v34 = vmul.f32 %v3686_v0, %v1470_v37  ;;  %v1486_v45 = vmul.f32 %v3700_v6, %v1471_v1  ;;  %v4266_v10 = vrot.slane %v2638_v53, %v3471_v14  ;;  %v5192_v50 = vld [vmem:[#allocation88_spill] sm:$0xff]  ;;  %5199 = vst [vmem:[#allocation83_spill] sm:$0xff] %v4311_v58 }
 0x1a0   : > { %v4277_v8 = vmul.f32 %v5191_v18, %v438_v19  ;;  %v4280_v16 = vmul.f32 %v5192_v50, %v439_v46  ;;  %v4283_v37 = vmul.f32 %v5191_v18, %v436_v21  ;;  %v471_v53 = vsel %vm470_vm12, %v5187_v4, %v5188_v49  ;;  %v4289_v1 = vpop.permute.xlu0 %1194  ;;  %v5197_v19 = vld [vmem:[#allocation13_spill] sm:$0xff]  ;;  %v5198_v21 = vld [vmem:[#allocation52_spill] sm:$0xff]  ;;  %v5201_v49 = vld [vmem:[#allocation54_spill] sm:$0xff] }
 0x1a1   : > { %5195 = vst [vmem:[#allocation33_spill] sm:$0xff] %v4289_v1  ;;  %v4292_v35 = vmul.f32 %v5196_v27, %v474_v48  ;;  %v4295_v33 = vmul.f32 %v5196_v27, %v472_v51  ;;  %v4298_v52 = vmul.f32 %v5197_v19, %v473_v43  ;;  %v1483_v46 = vmul.f32 %v3686_v0, %v1468_v31  ;;  %v4314_v51 = vld [vmem:[%s4274_s30 + $0x8] sm:$0xff]  ;;  %v1569_v13 = vpop.permute.xlu1 %1568  ;;  %v5207_v18 = vld [vmem:[#allocation53_spill] sm:$0xff]  ;;  %v5209_v1 = vld [vmem:[#allocation74_spill] sm:$0xff] }
 0x1a2   : > { %5193 = vst [vmem:[#allocation32_spill] sm:$0xff] %v4280_v16  ;;  %5194 = vst [vmem:[#allocation31_spill] sm:$0xff] %v4283_v37  ;;  %v1484_v23 = vmul.f32 %v3700_v6, %v1469_v44  ;;  %v1506_v38 = vmul.f32 %v3910_v24, %v5198_v21  ;;  %v1507_v47 = vmul.f32 %v3962_v55, %v5198_v21  ;;  %v5202_v6 = vld [vmem:[#allocation55_spill] sm:$0xff]  ;;  %vm746_vm10 = vcmp.lt.s32.totalorder %v3462_v5, 112 }
 0x1a3   : > { %5200 = vst [vmem:[#allocation28_spill] sm:$0xff] %v4314_v51  ;;  %v1489_v48 = vadd.f32 %v1485_v34, %v1438_v59  ;;  %v1490_v4 = vadd.f32 %v1486_v45, %v1439_v20  ;;  %v1542_v43 = vmul.f32 %v5201_v49, %v4072_v29  ;;  %v1543_v0 = vmul.f32 %v5201_v49, %v4076_v36  ;;  %v5203_v20 = vld [vmem:[#allocation46_spill] sm:$0xff]  ;;  %v5204_v34 = vld [vmem:[#allocation44_spill] sm:$0xff]  ;;  %v5205_v45 = vld [vmem:[#allocation45_spill] sm:$0xff] }
 0x1a4   : > { %v1540_v31 = vmul.f32 %v5202_v6, %v4082_v42  ;;  %v1541_v44 = vmul.f32 %v5202_v6, %v4086_v60  ;;  %v1567_v27 = vpop.permute.xlu0 %1566  ;;  %v1599_v21 = vrot.slane %v2668_v54, %v3464_v39  ;;  %v1603_v59 = vrot.slane %v2668_v54, %v3471_v14  ;;  %v5206_v42 = vld [vmem:[#allocation47_spill] sm:$0xff] }
 0x1a5   : > { %v962_v29 = vsel %vm960_vm15, %v5204_v34, %v5203_v20  ;;  %v964_v36 = vsel %vm960_vm15, %v5203_v20, %v5204_v34  ;;  %v963_v60 = vsel %vm960_vm15, %v5206_v42, %v5205_v45  ;;  %v2248_v49 = vadd.f32 %v4314_v51, %v4311_v58  ;;  %v1573_v7 = vpop.permute.xlu1 %1572 }
 0x1a6   : > { %v1487_v6 = vadd.f32 %v1483_v46, %v1436_v9  ;;  %v1488_v54 = vadd.f32 %v1484_v23, %v1437_v61  ;;  %v1504_v41 = vmul.f32 %v5208_v40, %v5207_v18  ;;  %v1505_v2 = vmul.f32 %v5209_v1, %v5207_v18  ;;  %v5210_v18 = vld [vmem:[#allocation76_spill] sm:$0xff] }
 0x1a7   : > { %v1510_v22 = vadd.f32 %v1506_v38, %v1489_v48  ;;  %v1511_v30 = vadd.f32 %v1507_v47, %v1490_v4  ;;  %v1557_v20 = vmul.f32 %v4173_v62, %v1542_v43  ;;  %v1558_v34 = vmul.f32 %v4189_v3, %v1543_v0  ;;  %v5211_v4 = vld [vmem:[#allocation81_spill] sm:$0xff] }
 0x1a8   : > { %v1555_v11 = vmul.f32 %v4173_v62, %v1540_v31  ;;  %v1556_v37 = vmul.f32 %v4189_v3, %v1541_v44  ;;  %v1576_v9 = vsel %vm1574_vm0, %v1569_v13, %v1573_v7  ;;  %v1578_v61 = vsel %vm1574_vm0, %v1573_v7, %v1569_v13  ;;  %v1571_v46 = vpop.permute.xlu0 %1570 }
 0x1a9   : > { %v1593_v23 = vmul.f32 %v5210_v18, %v1576_v9  ;;  %v1594_v38 = vmul.f32 %v5210_v18, %v1578_v61  ;;  %v1575_v47 = vsel %vm1574_vm0, %v1567_v27, %v1571_v46  ;;  %v1577_v62 = vsel %vm1574_vm0, %v1571_v46, %v1567_v27  ;;  %v4362_v51 = vpop.permute.xlu1 %1690  ;;  %v5218_v46 = vld [vmem:[#allocation63_spill] sm:$0xff] }
 0x1aa   : > { %v1508_v3 = vadd.f32 %v1504_v41, %v1487_v6  ;;  %v1509_v48 = vadd.f32 %v1505_v2, %v1488_v54  ;;  %v1591_v43 = vmul.f32 %v5211_v4, %v1575_v47  ;;  %v1592_v0 = vmul.f32 %v5211_v4, %v1577_v62  ;;  %v5219_v47 = vld [vmem:[#allocation91_spill] sm:$0xff]  ;;  %v5220_v4 = vld [vmem:[#allocation92_spill] sm:$0xff] }
 0x1ab   : > { %v1561_v7 = vadd.f32 %v1557_v20, %v1510_v22  ;;  %v1562_v13 = vadd.f32 %v1558_v34, %v1511_v30  ;;  %v1608_v31 = vmul.f32 %v1599_v21, %v1593_v23  ;;  %v1609_v44 = vmul.f32 %v1603_v59, %v1594_v38  ;;  %v5212_v22 = vld [vmem:[#allocation90_spill] sm:$0xff]  ;;  %v5215_v20 = vld [vmem:[#allocation64_spill] sm:$0xff] }
 0x1ac   : > { %v1559_v9 = vadd.f32 %v1555_v11, %v1508_v3  ;;  %v1560_v61 = vadd.f32 %v1556_v37, %v1509_v48  ;;  %v1606_v18 = vmul.f32 %v1599_v21, %v1591_v43  ;;  %v1607_v58 = vmul.f32 %v1603_v59, %v1592_v0  ;;  %v4364_v16 = vpop.permute.xlu0 %1685  ;;  %v5213_v11 = vld [vmem:[#allocation14_spill] sm:$0xff]  ;;  %v5221_v0 = vld [vmem:[#allocation24_spill] sm:$0xff] }
 0x1ad   : > { %v488_v27 = vmul.f32 %v5197_v19, %v471_v53  ;;  %v961_v41 = vsel %vm960_vm15, %v5205_v45, %v5206_v42  ;;  %v4371_v2 = vadd.f32 %v1608_v31, %v1561_v7  ;;  %v4373_v30 = vadd.f32 %v1609_v44, %v1562_v13  ;;  %v5214_v19 = vld [vmem:[#allocation15_spill] sm:$0xff]  ;;  %v5216_v34 = vld [vmem:[#allocation62_spill] sm:$0xff]  ;;  %v639_v42 = vpop.permute.xlu1 %638 }
 0x1ae   : > { %v504_v6 = vmul.f32 %v5212_v22, %v4292_v35  ;;  %v979_v37 = vmul.f32 %v5213_v11, %v964_v36  ;;  %v4378_v21 = vadd.f32 %v1606_v18, %v1559_v9  ;;  %v4380_v59 = vadd.f32 %v1607_v58, %v1560_v61 }
 0x1af   : > { %v980_v53 = vmul.f32 %v5213_v11, %v962_v29  ;;  %v977_v54 = vmul.f32 %v5214_v19, %v963_v60  ;;  %v1013_v45 = vsel %vm1011_vm1, %v5216_v34, %v5215_v20  ;;  %v1015_v35 = vsel %vm1011_vm1, %v5215_v20, %v5216_v34  ;;  %v5217_v29 = vld [vmem:[#allocation65_spill] sm:$0xff] }
 0x1b0   : > { %v4394_v36 = vmul.f32 %v5192_v50, %v4261_v32  ;;  %v978_v58 = vmul.f32 %v5214_v19, %v961_v41  ;;  %v1012_v60 = vsel %vm1011_vm1, %v5218_v46, %v5217_v29  ;;  %v1014_v23 = vsel %vm1011_vm1, %v5217_v29, %v5218_v46  ;;  %v637_v38 = vpop.permute.xlu0 %636  ;;  %2249 = vadd.xlane.f32.xlu0 %v2248_v49  ;;  %v5229_v46 = vld [vmem:[#allocation9_spill] sm:$0xff] }
 0x1b1   : > { %v4407_v62 = vmul.f32 %v5219_v47, %v4295_v33  ;;  %v4411_v32 = vmul.f32 %v5212_v22, %v4298_v52  ;;  %v4414_v3 = vmul.f32 %v5219_v47, %v488_v27  ;;  %v4418_v48 = vadd.f32 %v504_v6, %v4277_v8  ;;  %v5222_v33 = vld [vmem:[#allocation93_spill] sm:$0xff]  ;;  %v643_v61 = vpop.permute.xlu1 %642  ;;  %v5224_v27 = vld [vmem:[#allocation58_spill] sm:$0xff]  ;;  %v5225_v8 = vld [vmem:[#allocation60_spill] sm:$0xff] }
 0x1b2   : > { %v994_v43 = vmul.f32 %v5220_v4, %v979_v37  ;;  %v1030_v49 = vmul.f32 %v5221_v0, %v1015_v35  ;;  %v1031_v7 = vmul.f32 %v5221_v0, %v1013_v45  ;;  %v995_v13 = vmul.f32 %v5222_v33, %v980_v53  ;;  %v5223_v52 = vld [vmem:[#allocation25_spill] sm:$0xff]  ;;  %v5226_v53 = vld [vmem:[#allocation8_spill] sm:$0xff]  ;;  %v5227_v45 = vld [vmem:[#allocation98_spill] sm:$0xff] }
 0x1b3   : > { %v992_v31 = vmul.f32 %v5220_v4, %v977_v54  ;;  %v1028_v44 = vmul.f32 %v5223_v52, %v1014_v23  ;;  %v1029_v9 = vmul.f32 %v5223_v52, %v1012_v60  ;;  %v993_v18 = vmul.f32 %v5222_v33, %v978_v58  ;;  %v5228_v58 = vld [vmem:[#allocation99_spill] sm:$0xff]  ;;  %v5243_v47 = vld [vmem:[#allocation101_spill] sm:$0xff] }
 0x1b4   : > { %v525_v41 = vsel %vm521_vm2, %v5225_v8, %v5224_v27  ;;  %v646_v6 = vsel %vm644_vm3, %v639_v42, %v643_v61  ;;  %v648_v11 = vsel %vm644_vm3, %v643_v61, %v639_v42  ;;  %v641_v37 = vpop.permute.xlu0 %640  ;;  %v1045_v35 = vmul.f32 %v5227_v45, %v1030_v49  ;;  %v5244_v22 = vld [vmem:[#allocation95_spill] sm:$0xff] }
 0x1b5   : > { %v4437_v19 = vmul.f32 %v5226_v53, %v646_v6  ;;  %v4440_v54 = vmul.f32 %v5226_v53, %v648_v11  ;;  %v645_v20 = vsel %vm644_vm3, %v637_v38, %v641_v37  ;;  %v647_v34 = vsel %vm644_vm3, %v641_v37, %v637_v38  ;;  %v4459_v38 = vpop.permute.xlu1 %760 }
 0x1b6   : > { %v1046_v29 = vmul.f32 %v5228_v58, %v1031_v7  ;;  %v4449_v60 = vmul.f32 %v5229_v46, %v645_v20  ;;  %v4452_v42 = vmul.f32 %v5229_v46, %v647_v34  ;;  %v998_v23 = vadd.f32 %v994_v43, %v4145_v57  ;;  %v5230_v57 = vld [vmem:[#allocation18_spill] sm:$0xff]  ;;  %v5235_v20 = vld [vmem:[#allocation68_spill] sm:$0xff]  ;;  %v5236_v46 = vld [vmem:[#allocation69_spill] sm:$0xff] }
 0x1b7   : > { %v999_v4 = vadd.f32 %v995_v13, %v4155_v63  ;;  %v1043_v0 = vmul.f32 %v5227_v45, %v1028_v44  ;;  %v1044_v33 = vmul.f32 %v5228_v58, %v1029_v9  ;;  %v996_v49 = vadd.f32 %v992_v31, %v4160_v17  ;;  %v5231_v13 = vld [vmem:[#allocation61_spill] sm:$0xff]  ;;  %v5232_v44 = vld [vmem:[#allocation59_spill] sm:$0xff] }
 0x1b8   : > { %v997_v7 = vadd.f32 %v993_v18, %v4164_v12  ;;  %v523_v52 = vsel %vm521_vm2, %v5224_v27, %v5225_v8  ;;  %v540_v43 = vmul.f32 %v5230_v57, %v525_v41  ;;  %v4468_v63 = vpop.permute.xlu0 %755  ;;  %v522_v9 = vsel %vm521_vm2, %v5232_v44, %v5231_v13  ;;  %v5233_v12 = vld [vmem:[#allocation66_spill] sm:$0xff]  ;;  %v2641_v18 = vld [vmem:[%s4886_s3 + $0x17] ss:$8 sm:$0x3]  ;;  %v5234_v41 = vld [vmem:[#allocation67_spill] sm:$0xff] }
 0x1b9   : > { %v524_v17 = vsel %vm521_vm2, %v5231_v13, %v5232_v44  ;;  %v1066_v31 = vmul.f32 %v3910_v24, %v5233_v12  ;;  %v1067_v61 = vmul.f32 %v3962_v55, %v5233_v12  ;;  %v1049_v27 = vadd.f32 %v1045_v35, %v998_v23  ;;  %v1129_v58 = vpop.permute.xlu1 %1128 }
 0x1ba   : > { %v1050_v8 = vadd.f32 %v1046_v29, %v999_v4  ;;  %v1064_v6 = vmul.f32 %v5208_v40, %v5234_v41  ;;  %v1065_v11 = vmul.f32 %v5209_v1, %v5234_v41  ;;  %v1047_v37 = vadd.f32 %v1043_v0, %v996_v49  ;;  %v5237_v4 = vld [vmem:[#allocation19_spill] sm:$0xff]  ;;  %v5238_v49 = vld [vmem:[#allocation96_spill] sm:$0xff] }
 0x1bb   : > { %v1048_v53 = vadd.f32 %v1044_v33, %v997_v7  ;;  %v1102_v34 = vmul.f32 %v5235_v20, %v4226_v26  ;;  %v1103_v45 = vmul.f32 %v5235_v20, %v4230_v25  ;;  %v1100_v13 = vmul.f32 %v5236_v46, %v4244_v15  ;;  %v4507_v33 = vld [vmem:[%s384_s24] sm:$0xff] }
 0x1bc   : > { %v1101_v35 = vmul.f32 %v5236_v46, %v4248_v56  ;;  %v1127_v29 = vpop.permute.xlu0 %1126  ;;  %v1159_v23 = vrot.slane %v2641_v18, %v3464_v39  ;;  %v541_v26 = vmul.f32 %v5230_v57, %v523_v52  ;;  %v538_v25 = vmul.f32 %v5237_v4, %v524_v17  ;;  %v4509_v56 = vld [vmem:[%s384_s24 + $0x8] sm:$0xff] }
 0x1bd   : > { %v539_v0 = vmul.f32 %v5237_v4, %v522_v9  ;;  %v1163_v15 = vrot.slane %v2641_v18, %v3471_v14  ;;  %v555_v7 = vmul.f32 %v5238_v49, %v540_v43  ;;  %v1070_v44 = vadd.f32 %v1066_v31, %v1049_v27  ;;  %v1133_v9 = vpop.permute.xlu1 %1132 }
 0x1be   : > { %v1071_v12 = vadd.f32 %v1067_v61, %v1050_v8  ;;  %v2212_v41 = vadd.f32 %v4509_v56, %v4507_v33  ;;  %v1068_v20 = vadd.f32 %v1064_v6, %v1047_v37  ;;  %v1069_v46 = vadd.f32 %v1065_v11, %v1048_v53  ;;  %v5239_v61 = vld [vmem:[#allocation4_spill] sm:$0xff] }
 0x1bf   : > { %v1117_v52 = vmul.f32 %v4240_v28, %v1102_v34  ;;  %v1118_v57 = vmul.f32 %v4266_v10, %v1103_v45  ;;  %v1115_v17 = vmul.f32 %v4240_v28, %v1100_v13  ;;  %v1116_v18 = vmul.f32 %v4266_v10, %v1101_v35  ;;  %v5240_v11 = vld [vmem:[#allocation100_spill] sm:$0xff]  ;;  %v5241_v10 = vld [vmem:[#allocation94_spill] sm:$0xff]  ;;  %v5242_v34 = vld [vmem:[#allocation21_spill] sm:$0xff] }
 0x1c0   : > { %v1136_v4 = vsel %vm1134_vm5, %v1129_v58, %v1133_v9  ;;  %v1138_v43 = vsel %vm1134_vm5, %v1133_v9, %v1129_v58  ;;  %v1131_v31 = vpop.permute.xlu0 %1130  ;;  %2213 = vadd.xlane.f32.xlu0 %v2212_v41  ;;  %v574_v37 = vsel %vm572_vm4, %v5241_v10, %v5240_v11  ;;  %v576_v53 = vsel %vm572_vm4, %v5240_v11, %v5241_v10 }
 0x1c1   : > { %v1153_v27 = vmul.f32 %v5239_v61, %v1136_v4  ;;  %v1154_v8 = vmul.f32 %v5239_v61, %v1138_v43  ;;  %v1135_v6 = vsel %vm1134_vm5, %v1127_v29, %v1131_v31  ;;  %v1137_v28 = vsel %vm1134_vm5, %v1131_v31, %v1127_v29  ;;  %v4538_v4 = vpop.permute.xlu1 %1250 }
 0x1c2   : > { %v1151_v45 = vmul.f32 %v5242_v34, %v1135_v6  ;;  %v1152_v58 = vmul.f32 %v5242_v34, %v1137_v28  ;;  %v1121_v13 = vadd.f32 %v1117_v52, %v1070_v44  ;;  %v1122_v35 = vadd.f32 %v1118_v57, %v1071_v12  ;;  %v5248_v28 = vld [vmem:[#allocation31_spill] sm:$0xff] }
 0x1c3   : > { %v1168_v41 = vmul.f32 %v1159_v23, %v1153_v27  ;;  %v1169_v9 = vmul.f32 %v1163_v15, %v1154_v8  ;;  %v1119_v29 = vadd.f32 %v1115_v17, %v1068_v20  ;;  %v1120_v43 = vadd.f32 %v1116_v18, %v1069_v46  ;;  %v5245_v20 = vld [vmem:[#allocation97_spill] sm:$0xff] }
 0x1c4   : > { %v1166_v31 = vmul.f32 %v1159_v23, %v1151_v45  ;;  %v1167_v61 = vmul.f32 %v1163_v15, %v1152_v58  ;;  %v4540_v50 = vpop.permute.xlu0 %1245  ;;  %v573_v11 = vsel %vm572_vm4, %v5244_v22, %v5243_v47  ;;  %v575_v44 = vsel %vm572_vm4, %v5243_v47, %v5244_v22  ;;  %v2612_v15 = vld [vmem:[%s4886_s3 + $0x5] ss:$8 sm:$0x3]  ;;  %v2671_v22 = vld [vmem:[%s4886_s3 + $0x31] ss:$8 sm:$0x3] }
 0x1c5   : > { %v4550_v12 = vadd.f32 %v1168_v41, %v1121_v13  ;;  %v4552_v52 = vadd.f32 %v1169_v9, %v1122_v35  ;;  %v556_v46 = vmul.f32 %v5245_v20, %v541_v26  ;;  %v553_v23 = vmul.f32 %v5238_v49, %v538_v25  ;;  %v5246_v47 = vld [vmem:[#allocation32_spill] sm:$0xff]  ;;  %v5247_v26 = vld [vmem:[#allocation42_spill] sm:$0xff]  ;;  %v1620_v6 = vpop.permute.xlu1 %1619  ;;  %v5249_v45 = vld [vmem:[#allocation43_spill] sm:$0xff] }
 0x1c6   : > { %v4559_v57 = vadd.f32 %v1166_v31, %v1119_v29  ;;  %v4561_v17 = vadd.f32 %v1167_v61, %v1120_v43  ;;  %v509_v18 = vadd.f32 %v4407_v62, %v5246_v47  ;;  %v554_v27 = vmul.f32 %v5245_v20, %v539_v0  ;;  %v5250_v9 = vld [vmem:[#allocation20_spill] sm:$0xff]  ;;  %v5251_v43 = vld [vmem:[#allocation22_spill] sm:$0xff] }
 0x1c7   : > { %v591_v8 = vmul.f32 %v5247_v26, %v576_v53  ;;  %v592_v25 = vmul.f32 %v5247_v26, %v574_v37  ;;  %v506_v10 = vadd.f32 %v4411_v32, %v5248_v28  ;;  %v507_v34 = vadd.f32 %v4414_v3, %v4394_v36  ;;  %v5253_v26 = vld [vmem:[#allocation102_spill] sm:$0xff] }
 0x1c8   : > { %v589_v58 = vmul.f32 %v5249_v45, %v575_v44  ;;  %v590_v13 = vmul.f32 %v5249_v45, %v573_v11  ;;  %v1618_v35 = vpop.permute.xlu0 %1617  ;;  %v4578_v62 = vrot.slane %v2612_v15, %v3464_v39  ;;  %v4581_v0 = vrot.slane %v2612_v15, %v3471_v14 }
 0x1c9   : > { %v1650_v37 = vrot.slane %v2671_v22, %v3464_v39  ;;  %v559_v32 = vadd.f32 %v555_v7, %v4418_v48  ;;  %v560_v53 = vadd.f32 %v556_v46, %v509_v18  ;;  %v557_v41 = vadd.f32 %v553_v23, %v506_v10  ;;  %v1624_v61 = vpop.permute.xlu1 %1623  ;;  %v5252_v46 = vld [vmem:[#allocation23_spill] sm:$0xff] }
 0x1ca   : > { %v1654_v36 = vrot.slane %v2671_v22, %v3471_v14  ;;  %v558_v3 = vadd.f32 %v554_v27, %v507_v34  ;;  %v606_v29 = vmul.f32 %v5250_v9, %v591_v8  ;;  %v607_v31 = vmul.f32 %v5251_v43, %v592_v25  ;;  %v2615_v27 = vld [vmem:[%s4886_s3 + $0x6] ss:$8 sm:$0x3] }
 0x1cb   : > { %v604_v11 = vmul.f32 %v5250_v9, %v589_v58  ;;  %v605_v44 = vmul.f32 %v5251_v43, %v590_v13  ;;  %v1627_v15 = vsel %vm1625_vm6, %v1620_v6, %v1624_v61  ;;  %v1629_v48 = vsel %vm1625_vm6, %v1624_v61, %v1620_v6  ;;  %v5254_v6 = vld [vmem:[#allocation75_spill] sm:$0xff] }
 0x1cc   : > { %v1622_v7 = vpop.permute.xlu0 %1621  ;;  %v1644_v23 = vmul.f32 %v5252_v46, %v1627_v15  ;;  %v1645_v22 = vmul.f32 %v5252_v46, %v1629_v48  ;;  %v627_v8 = vmul.f32 %v3910_v24, %v5253_v26  ;;  %v628_v25 = vmul.f32 %v3962_v55, %v5253_v26  ;;  %v5255_v46 = vld [vmem:[#allocation2_spill] sm:$0xff] }
 0x1cd   : > { %v1626_v47 = vsel %vm1625_vm6, %v1618_v35, %v1622_v7  ;;  %v1628_v18 = vsel %vm1625_vm6, %v1622_v7, %v1618_v35  ;;  %v610_v34 = vadd.f32 %v606_v29, %v559_v32  ;;  %v611_v45 = vadd.f32 %v607_v31, %v560_v53  ;;  %v690_v61 = vpop.permute.xlu1 %689 }
 0x1ce   : > { %v1642_v28 = vmul.f32 %v5254_v6, %v1626_v47  ;;  %v1643_v10 = vmul.f32 %v5254_v6, %v1628_v18  ;;  %v1659_v58 = vmul.f32 %v1650_v37, %v1644_v23  ;;  %v1660_v13 = vmul.f32 %v1654_v36, %v1645_v22 }
 0x1cf   : > { %v4612_v7 = vrot.slane %v2615_v27, %v3464_v39  ;;  %v4615_v24 = vrot.slane %v2615_v27, %v3471_v14  ;;  %v625_v55 = vmul.f32 %v5208_v40, %v5255_v46  ;;  %v626_v47 = vmul.f32 %v5209_v1, %v5255_v46 }
 0x1d0   : > { %v1657_v35 = vmul.f32 %v1650_v37, %v1642_v28  ;;  %v1658_v15 = vmul.f32 %v1654_v36, %v1643_v10  ;;  %v688_v48 = vpop.permute.xlu0 %687  ;;  %v4622_v32 = vadd.f32 %v1659_v58, %v4371_v2  ;;  %v4625_v53 = vadd.f32 %v1660_v13, %v4373_v30 }
 0x1d1   : > { %v608_v37 = vadd.f32 %v604_v11, %v557_v41  ;;  %v609_v36 = vadd.f32 %v605_v44, %v558_v3  ;;  %v631_v23 = vadd.f32 %v627_v8, %v610_v34  ;;  %v632_v22 = vadd.f32 %v628_v25, %v611_v45  ;;  %v694_v2 = vpop.permute.xlu1 %693  ;;  %v5256_v11 = vld [vmem:[#allocation86_spill] sm:$0xff] }
 0x1d2   : > { %v4628_v29 = vadd.f32 %v1657_v35, %v4378_v21  ;;  %v4631_v31 = vadd.f32 %v1658_v15, %v4380_v59  ;;  %v678_v40 = vmul.f32 %v4578_v62, %v4437_v19  ;;  %v679_v1 = vmul.f32 %v4581_v0, %v4440_v54 }
 0x1d3   : > { %v676_v30 = vmul.f32 %v4578_v62, %v4449_v60  ;;  %v677_v41 = vmul.f32 %v4581_v0, %v4452_v42  ;;  %v697_v21 = vsel %vm695_vm7, %v690_v61, %v694_v2  ;;  %v699_v59 = vsel %vm695_vm7, %v694_v2, %v690_v61  ;;  %v5257_v42 = vld [vmem:[#allocation5_spill] sm:$0xff] }
 0x1d4   : > { %v692_v3 = vpop.permute.xlu0 %691  ;;  %v714_v44 = vmul.f32 %v5256_v11, %v697_v21  ;;  %v715_v19 = vmul.f32 %v5256_v11, %v699_v59  ;;  %v629_v18 = vadd.f32 %v625_v55, %v608_v37  ;;  %v630_v27 = vadd.f32 %v626_v47, %v609_v36  ;;  %v2644_v36 = vld [vmem:[%s4886_s3 + $0x20] ss:$8 sm:$0x3] }
 0x1d5   : > { %v696_v54 = vsel %vm695_vm7, %v688_v48, %v692_v3  ;;  %v698_v60 = vsel %vm695_vm7, %v692_v3, %v688_v48  ;;  %v682_v25 = vadd.f32 %v678_v40, %v631_v23  ;;  %v683_v6 = vadd.f32 %v679_v1, %v632_v22  ;;  %v4655_v34 = vpop.permute.xlu1 %811 }
 0x1d6   : > { %v712_v26 = vmul.f32 %v5257_v42, %v696_v54  ;;  %v713_v8 = vmul.f32 %v5257_v42, %v698_v60  ;;  %v729_v28 = vmul.f32 %v4612_v7, %v714_v44  ;;  %v730_v10 = vmul.f32 %v4615_v24, %v715_v19  ;;  %v5259_v44 = vld [vmem:[#allocation33_spill] sm:$0xff] }
 0x1d7   : > { %v680_v45 = vadd.f32 %v676_v30, %v629_v18  ;;  %v681_v58 = vadd.f32 %v677_v41, %v630_v27  ;;  %v1210_v23 = vrot.slane %v2644_v36, %v3464_v39  ;;  %v1214_v22 = vrot.slane %v2644_v36, %v3471_v14  ;;  %v5258_v41 = vld [vmem:[#allocation30_spill] sm:$0xff] }
 0x1d8   : > { %v727_v13 = vmul.f32 %v4612_v7, %v712_v26  ;;  %v728_v61 = vmul.f32 %v4615_v24, %v713_v8  ;;  %v4659_v35 = vpop.permute.xlu0 %806  ;;  %v4661_v15 = vadd.f32 %v729_v28, %v682_v25  ;;  %v4663_v48 = vadd.f32 %v730_v10, %v683_v6  ;;  %v2674_v25 = vld [vmem:[%s4886_s3 + $0x32] ss:$8 sm:$0x3] }
 0x1d9   : > { %v1180_v47 = vpop.permute.xlu1 %1179  ;;  %vm1236_vm13 = vcmp.lt.s32.totalorder %v3462_v5, 94  ;;  %vm797_vm14 = vcmp.lt.s32.totalorder %v3462_v5, 111  ;;  %vm2135_vm15 = vcmask 261120  }
 0x1da   : > { %v4665_v46 = vadd.f32 %v727_v13, %v680_v45  ;;  %v4667_v55 = vadd.f32 %v728_v61, %v681_v58  ;;  %v1701_v58 = vrot.slane %v2674_v25, %v3464_v39  ;;  %v1705_v13 = vrot.slane %v2674_v25, %v3471_v14 }
 0x1dc   : > { %v1178_v37 = vpop.permute.xlu0 %1177 }
 0x1dd   : > { %v1184_v40 = vpop.permute.xlu1 %1183 }
 0x1de   : > { %v1187_v1 = vsel %vm1185_vm8, %v1180_v47, %v1184_v40  ;;  %v1189_v2 = vsel %vm1185_vm8, %v1184_v40, %v1180_v47 }
 0x1df   : > { %v1204_v21 = vmul.f32 %v5258_v41, %v1187_v1  ;;  %v1205_v59 = vmul.f32 %v5258_v41, %v1189_v2 }
 0x1e0   : > { %v1182_v30 = vpop.permute.xlu0 %1181 }
 0x1e1   : > { %v1186_v3 = vsel %vm1185_vm8, %v1178_v37, %v1182_v30  ;;  %v1188_v11 = vsel %vm1185_vm8, %v1182_v30, %v1178_v37  ;;  %v1219_v60 = vmul.f32 %v1210_v23, %v1204_v21  ;;  %v1220_v18 = vmul.f32 %v1214_v22, %v1205_v59  ;;  %v1671_v27 = vpop.permute.xlu1 %1670  ;;  %v2618_v59 = vld [vmem:[%s4886_s3 + $0x7] ss:$8 sm:$0x3] }
 0x1e2   : > { %v1202_v19 = vmul.f32 %v5259_v44, %v1186_v3  ;;  %v1203_v54 = vmul.f32 %v5259_v44, %v1188_v11  ;;  %v4710_v44 = vrot.slane %v2618_v59, %v3464_v39 }
 0x1e3   : > { %v4683_v6 = vadd.f32 %v1219_v60, %v4550_v12  ;;  %v4686_v28 = vadd.f32 %v1220_v18, %v4552_v52 }
 0x1e4   : > { %v1217_v42 = vmul.f32 %v1210_v23, %v1202_v19  ;;  %v1218_v26 = vmul.f32 %v1214_v22, %v1203_v54  ;;  %v1669_v8 = vpop.permute.xlu0 %1668  ;;  %v4713_v19 = vrot.slane %v2618_v59, %v3471_v14 }
 0x1e5   : > { %v1675_v61 = vpop.permute.xlu1 %1674 }
 0x1e6   : > { %v4690_v10 = vadd.f32 %v1217_v42, %v4559_v57  ;;  %v4693_v45 = vadd.f32 %v1218_v26, %v4561_v17  ;;  %v1678_v47 = vsel %vm1676_vm9, %v1671_v27, %v1675_v61  ;;  %v1680_v37 = vsel %vm1676_vm9, %v1675_v61, %v1671_v27 }
 0x1e7   : > { %v1695_v36 = vmul.f32 %v4362_v51, %v1678_v47  ;;  %v1696_v52 = vmul.f32 %v4362_v51, %v1680_v37 }
 0x1e8   : > { %v1673_v12 = vpop.permute.xlu0 %1672 }
 0x1e9   : > { %v1677_v23 = vsel %vm1676_vm9, %v1669_v8, %v1673_v12  ;;  %v1679_v22 = vsel %vm1676_vm9, %v1673_v12, %v1669_v8  ;;  %v1710_v17 = vmul.f32 %v1701_v58, %v1695_v36  ;;  %v1711_v1 = vmul.f32 %v1705_v13, %v1696_v52  ;;  %v741_v2 = vpop.permute.xlu1 %740  ;;  %v2647_v12 = vld [vmem:[%s4886_s3 + $0x21] ss:$8 sm:$0x3] }
 0x1ea   : > { %v1693_v57 = vmul.f32 %v4364_v16, %v1677_v23  ;;  %v1694_v40 = vmul.f32 %v4364_v16, %v1679_v22  ;;  %v1261_v22 = vrot.slane %v2647_v12, %v3464_v39 }
 0x1eb   : > { %v1714_v51 = vadd.f32 %v1710_v17, %v4622_v32  ;;  %v1715_v3 = vadd.f32 %v1711_v1, %v4625_v53 }
 0x1ec   : > { %v1708_v30 = vmul.f32 %v1701_v58, %v1693_v57  ;;  %v1709_v41 = vmul.f32 %v1705_v13, %v1694_v40  ;;  %v739_v21 = vpop.permute.xlu0 %738  ;;  %v1265_v57 = vrot.slane %v2647_v12, %v3471_v14 }
 0x1ed   : > { %v745_v54 = vpop.permute.xlu1 %744 }
 0x1ee   : > { %v1712_v11 = vadd.f32 %v1708_v30, %v4628_v29  ;;  %v1713_v16 = vadd.f32 %v1709_v41, %v4631_v31  ;;  %v748_v60 = vsel %vm746_vm10, %v741_v2, %v745_v54  ;;  %v750_v18 = vsel %vm746_vm10, %v745_v54, %v741_v2  ;;  %v5260_v54 = vld [vmem:[#allocation80_spill] sm:$0xff] }
 0x1ef   : > { %v765_v29 = vmul.f32 %v4459_v38, %v748_v60  ;;  %v766_v31 = vmul.f32 %v4459_v38, %v750_v18  ;;  %v5261_v18 = vld [vmem:[#allocation89_spill] sm:$0xff] }
 0x1f0   : > { %v743_v32 = vpop.permute.xlu0 %742  ;;  %v1716_v27 = vadd.f32 %v1714_v51, %v1712_v11  ;;  %v1717_v53 = vadd.f32 %v1715_v3, %v1713_v16 }
 0x1f1   : > { %v747_v42 = vsel %vm746_vm10, %v739_v21, %v743_v32  ;;  %v749_v26 = vsel %vm746_vm10, %v743_v32, %v739_v21  ;;  %v780_v58 = vmul.f32 %v4710_v44, %v765_v29  ;;  %v781_v13 = vmul.f32 %v4713_v19, %v766_v31  ;;  %v1231_v61 = vpop.permute.xlu1 %1230 }
 0x1f2   : > { %v763_v8 = vmul.f32 %v4468_v63, %v747_v42  ;;  %v764_v25 = vmul.f32 %v4468_v63, %v749_v26  ;;  %v2621_v42 = vld [vmem:[%s4886_s3 + $0x10] ss:$8 sm:$0x3] }
 0x1f3   : > { %v784_v36 = vadd.f32 %v780_v58, %v4661_v15  ;;  %v785_v52 = vadd.f32 %v781_v13, %v4663_v48 }
 0x1f4   : > { %v778_v47 = vmul.f32 %v4710_v44, %v763_v8  ;;  %v779_v37 = vmul.f32 %v4713_v19, %v764_v25  ;;  %v1229_v38 = vpop.permute.xlu0 %1228 }
 0x1f5   : > { %v1235_v40 = vpop.permute.xlu1 %1234 }
 0x1f6   : > { %v782_v63 = vadd.f32 %v778_v47, %v4665_v46  ;;  %v783_v23 = vadd.f32 %v779_v37, %v4667_v55  ;;  %v1238_v17 = vsel %vm1236_vm13, %v1231_v61, %v1235_v40  ;;  %v1240_v1 = vsel %vm1236_vm13, %v1235_v40, %v1231_v61 }
 0x1f7   : > { %v1255_v30 = vmul.f32 %v4538_v4, %v1238_v17  ;;  %v1256_v15 = vmul.f32 %v4538_v4, %v1240_v1 }
 0x1f8   : > { %v1233_v2 = vpop.permute.xlu0 %1232 }
 0x1f9   : > { %v1237_v41 = vsel %vm1236_vm13, %v1229_v38, %v1233_v2  ;;  %v1239_v48 = vsel %vm1236_vm13, %v1233_v2, %v1229_v38  ;;  %v1270_v59 = vmul.f32 %v1261_v22, %v1255_v30  ;;  %v1271_v55 = vmul.f32 %v1265_v57, %v1256_v15  ;;  %v790_v51 = vpop.permute.xlu1 %789 }
 0x1fa   : > { %v1253_v21 = vmul.f32 %v4540_v50, %v1237_v41  ;;  %v1254_v46 = vmul.f32 %v4540_v50, %v1239_v48 }
 0x1fb   : > { %v1274_v4 = vadd.f32 %v1270_v59, %v4683_v6  ;;  %v1275_v29 = vadd.f32 %v1271_v55, %v4686_v28 }
 0x1fc   : > { %v1268_v3 = vmul.f32 %v1261_v22, %v1253_v21  ;;  %v1269_v11 = vmul.f32 %v1265_v57, %v1254_v46  ;;  %v2124_v16 = vpop.permute.xlu0 %2123 }
 0x1fd   : > { %v2127_v60 = vadd.f32 %v2124_v16, %v5260_v54  ;;  %v2126_v32 = vadd.f32 %v2124_v16, %v5261_v18  ;;  %v794_v26 = vpop.permute.xlu1 %793 }
 0x1fe   : > { %v1272_v31 = vadd.f32 %v1268_v3, %v4690_v10  ;;  %v1273_v50 = vadd.f32 %v1269_v11, %v4693_v45  ;;  %v798_v8 = vsel %vm797_vm14, %v790_v51, %v794_v26  ;;  %v800_v25 = vsel %vm797_vm14, %v794_v26, %v790_v51  ;;  %v2128_v51 = vld [vmem:[%s4889_s6] sm:$0xff]  ;;  %v5263_v11 = vld [vmem:[#allocation28_spill] sm:$0xff] }
 0x1ff   : > { %2163 = vmatprep.subr.mxu0 %v2127_v60  ;;  %v4760_v10 = vrot.slane %v2621_v42, %v3464_v39  ;;  %v4763_v45 = vrot.slane %v2621_v42, %v3471_v14  ;;  %v814_v13 = vmul.f32 %v4659_v35, %v798_v8  ;;  %v815_v61 = vmul.f32 %v4659_v35, %v800_v25 }
 0x200   : > { %2164 = vmatpush1.msra.mxu0 %v2126_v32  ;;  %v792_v6 = vpop.permute.xlu0 %791  ;;  %v1276_v58 = vadd.f32 %v1274_v4, %v1272_v31  ;;  %v1277_v28 = vadd.f32 %v1275_v29, %v1273_v50 }
 0x201   : > { %v829_v39 = vmul.f32 %v4760_v10, %v814_v13  ;;  %v830_v40 = vmul.f32 %v4763_v45, %v815_v61 }
 0x203   : > { %v1723_v47 = vpop.permute.xlu1 %1722  ;;  %v833_v30 = vadd.f32 %v829_v39, %v782_v63  ;;  %v834_v15 = vadd.f32 %v830_v40, %v783_v23 }
 0x204   : > { %v1725_v37 = vadd.f32 %v1723_v47, %v1716_v27  ;;  %v1726_v38 = vadd.f32 %v1723_v47, %v1717_v53  ;;  %v796_v12 = vpop.permute.xlu0 %795 }
 0x205   : > { %v799_v22 = vsel %vm797_vm14, %v792_v6, %v796_v12  ;;  %v801_v57 = vsel %vm797_vm14, %v796_v12, %v792_v6 }
 0x206   : > { %v816_v14 = vmul.f32 %v4655_v34, %v799_v22  ;;  %v817_v17 = vmul.f32 %v4655_v34, %v801_v57  ;;  %2165 = vmatprep.subr.mxu0 %v1726_v38 }
 0x207   : > { %2166 = vmatpush1.msra.mxu0 %v1725_v37  ;;  %v843_v59 = vpop.permute.xlu1 %842 }
 0x208   : > { %v831_v35 = vmul.f32 %v4760_v10, %v816_v14  ;;  %v832_v27 = vmul.f32 %v4763_v45, %v817_v17  ;;  %v1283_v53 = vpop.permute.xlu0 %1282 }
 0x209   : > { %v1285_v1 = vadd.f32 %v1283_v53, %v1276_v58  ;;  %v1286_v2 = vadd.f32 %v1283_v53, %v1277_v28 }
 0x20a   : > { %v835_v41 = vadd.f32 %v831_v35, %v784_v36  ;;  %v836_v48 = vadd.f32 %v832_v27, %v785_v52  ;;  %v5262_v36 = vld [vmem:[#allocation83_spill] sm:$0xff] }
 0x20b   : > { %2167 = vmatprep.subr.mxu0 %v1286_v2 }
 0x20c   : > { %v837_v21 = vadd.f32 %v835_v41, %v833_v30  ;;  %v838_v46 = vadd.f32 %v836_v48, %v834_v15  ;;  %2168 = vmatpush1.msra.mxu0 %v1285_v1  ;;  %v2133_v3 = vpop.permute.xlu0 %2132 }
 0x20e   : > { %v845_v55 = vadd.f32 %v843_v59, %v837_v21  ;;  %v846_v34 = vadd.f32 %v843_v59, %v838_v46 }
 0x210   : > { %2169 = vmatprep.subr.mxu0 %v846_v34 }
 0x211   : > { %2170 = vmatpush1.msra.mxu0 %v845_v55 }
 0x212   : > { %2703 = vmatmul.mubr.msk.f32.vlgmr.msra.gmra.mxu0 %vm2135_vm15, %v2128_v51 }
 0x239   : > { %v2250_v63 = vpop.xlane.xlu0 %2249 }
 0x23a   : > { %v2251_v23 = vmul.f32 0.00390625, %v2250_v63 }
 0x23c   : > { %v2252_v52 = vsub.f32 %v5262_v36, %v2251_v23  ;;  %v2253_v16 = vsub.f32 %v5263_v11, %v2251_v23 }
 0x23e   : > { %v2254_v54 = vmul.f32 %v2252_v52, %v2252_v52  ;;  %v2255_v60 = vmul.f32 %v2253_v16, %v2253_v16 }
 0x240   : > { %v2256_v18 = vadd.f32 %v2255_v60, %v2254_v54 }
 0x242   : > { %2257 = vadd.xlane.f32.xlu0 %v2256_v18 }
 0x249   : > { %v2214_v8 = vpop.xlane.xlu0 %2213 }
 0x24a   : > { %v2216_v25 = vmul.f32 0.00390625, %v2214_v8 }
 0x24c   : > { %v2217_v58 = vsub.f32 %v4507_v33, %v2216_v25  ;;  %v2218_v28 = vsub.f32 %v4509_v56, %v2216_v25 }
 0x24e   : > { %v2219_v37 = vmul.f32 %v2217_v58, %v2217_v58  ;;  %v2220_v38 = vmul.f32 %v2218_v28, %v2218_v28 }
 0x250   : > { %v2221_v39 = vadd.f32 %v2220_v38, %v2219_v37 }
 0x2cb   : > { %v2258_v40 = vpop.xlane.xlu0 %2257 }
 0x2cc   : > { %v2259_v14 = vmul.f32 0.003921569, %v2258_v40 }
 0x2ce   : > { %v2260_v17 = vadd.f32 0.0001, %v2259_v14 }
 0x2d0   : > { %v2261_v35 = vmul.f32 4.0, %v2260_v17 }
 0x2d2   : > { %v2205_v32 = vpop.f32.mrf.mxu0  ;;  %2760 = vrcp.f32 %v2261_v35 }
 0x2d3   : > { %v2206_v4 = vadd.f32 %v2205_v32, %v2133_v3 }
 0x2d4   : > { %v2207_v29 = vpop.f32.mrf.mxu0 }
 0x2d5   : > { %v2208_v31 = vadd.f32 %v2207_v29, %v2133_v3  ;;  %v4782_v50 = vmax.f32 %v2206_v4, 0.0 }
 0x2d7   : > { %v4784_v42 = vmax.f32 %v2208_v31, 0.0 }
 0x2d9   : > { %v2283_v26 = vadd.f32 %v4784_v42, %v4782_v50 }
 0x2db   : > { %2284 = vadd.xlane.f32.xlu1 %v2283_v26 }
 0x2df   : > { %v2761_v41 = vpop.eup %2760 }
 0x2e0   : > { %v2263_v21 = vmul.f32 %v2761_v41, %v2254_v54  ;;  %v2264_v59 = vmul.f32 %v2761_v41, %v2255_v60 }
 0x2e2   : > { %v2265_v55 = vadd.f32 0.5, %v2263_v21  ;;  %v2266_v34 = vadd.f32 0.5, %v2264_v59 }
 0x2e4   : > { %v2706_v51 = vmul.f32 -1.442695, %v2265_v55  ;;  %v2707_v3 = vmul.f32 -1.442695, %v2266_v34  ;;  %v2805_v34 = vld [vmem:[%s4274_s30 + $0x8] sm:$0xff] }
 0x364   : > { %v2285_v6 = vpop.xlane.xlu1 %2284 }
 0x365   : > { %v2286_v13 = vmul.f32 0.00390625, %v2285_v6 }
 0x367   : > { %v2287_v61 = vsub.f32 %v4782_v50, %v2286_v13  ;;  %v2288_v47 = vsub.f32 %v4784_v42, %v2286_v13 }
 0x369   : > { %v2289_v12 = vmul.f32 %v2287_v61, %v2287_v61  ;;  %v2290_v22 = vmul.f32 %v2288_v47, %v2288_v47 }
 0x36b   : > { %v2291_v57 = vadd.f32 %v2290_v22, %v2289_v12 }
 0x36d   : > { %2292 = vadd.xlane.f32.xlu1 %v2291_v57 }
 0x371   : > { %2222 = vadd.xlane.f32.xlu1 %v2221_v39 }
 0x3f6   : > { %v2293_v27 = vpop.xlane.xlu1 %2292 }
 0x3f7   : > { %v2294_v53 = vmul.f32 0.003921569, %v2293_v27 }
 0x3f9   : > { %v2295_v1 = vadd.f32 0.0001, %v2294_v53 }
 0x3fa   : > { %v2223_v2 = vpop.xlane.xlu1 %2222 }
 0x3fb   : > { %v2296_v30 = vmul.f32 4.0, %v2295_v1  ;;  %v2224_v15 = vmul.f32 0.003921569, %v2223_v2 }
 0x3fd   : > { %2762 = vrcp.f32 %v2296_v30  ;;  %v2225_v48 = vadd.f32 0.0001, %v2224_v15 }
 0x3ff   : > { %v2226_v46 = vmul.f32 4.0, %v2225_v48 }
 0x401   : > { %2764 = vrcp.f32 %v2226_v46  ;;  %v2804_v46 = vld [vmem:[%s4274_s30] sm:$0xff] }
 0x402   : > { %2766 = vpow2.f32 %v2706_v51 }
 0x403   : > { %2768 = vpow2.f32 %v2707_v3 }
 0x40a   : > { %v2763_v63 = vpop.eup %2762 }
 0x40b   : > { %v2298_v23 = vmul.f32 %v2763_v63, %v2289_v12  ;;  %v2299_v52 = vmul.f32 %v2763_v63, %v2290_v22 }
 0x40d   : > { %v2300_v16 = vadd.f32 0.5, %v2298_v23  ;;  %v2301_v18 = vadd.f32 0.5, %v2299_v52 }
 0x40e   : > { %v2765_v32 = vpop.eup %2764 }
 0x40f   : > { %v2708_v4 = vmul.f32 -1.442695, %v2300_v16  ;;  %v2709_v29 = vmul.f32 -1.442695, %v2301_v18  ;;  %v2228_v31 = vmul.f32 %v2765_v32, %v2219_v37  ;;  %v2229_v26 = vmul.f32 %v2765_v32, %v2220_v38  ;;  %v2767_v6 = vpop.eup %2766 }
 0x410   : > { %v2769_v58 = vpop.eup %2768  ;;  %v2273_v28 = vadd.f32 1.0, %v2767_v6 }
 0x411   : > { %2770 = vpow2.f32 %v2708_v4  ;;  %v2230_v54 = vadd.f32 0.5, %v2228_v31  ;;  %v2231_v60 = vadd.f32 0.5, %v2229_v26  ;;  %v2274_v13 = vadd.f32 1.0, %v2769_v58 }
 0x412   : > { %2772 = vpow2.f32 %v2709_v29 }
 0x413   : > { %v2704_v8 = vmul.f32 -1.442695, %v2230_v54  ;;  %v2705_v25 = vmul.f32 -1.442695, %v2231_v60 }
 0x415   : > { %2774 = vpow2.f32 %v2704_v8 }
 0x416   : > { %2776 = vpow2.f32 %v2705_v25 }
 0x417   : > { %2778 = vrcp.f32 %v2273_v28 }
 0x418   : > { %2780 = vrcp.f32 %v2274_v13 }
 0x41e   : > { %v2771_v61 = vpop.eup %2770 }
 0x41f   : > { %v2773_v47 = vpop.eup %2772  ;;  %v2308_v12 = vadd.f32 1.0, %v2771_v61 }
 0x420   : > { %v2309_v22 = vadd.f32 1.0, %v2773_v47 }
 0x421   : > { %2782 = vrcp.f32 %v2308_v12 }
 0x422   : > { %v2775_v37 = vpop.eup %2774  ;;  %2784 = vrcp.f32 %v2309_v22 }
 0x423   : > { %v2777_v38 = vpop.eup %2776  ;;  %v2238_v57 = vadd.f32 1.0, %v2775_v37 }
 0x424   : > { %v2239_v39 = vadd.f32 1.0, %v2777_v38  ;;  %v2779_v40 = vpop.eup %2778 }
 0x425   : > { %2786 = vrcp.f32 %v2238_v57  ;;  %v2781_v14 = vpop.eup %2780  ;;  %v2279_v27 = vmul.f32 %v2779_v40, %v5262_v36 }
 0x426   : > { %2788 = vrcp.f32 %v2239_v39  ;;  %v2280_v1 = vmul.f32 %v2781_v14, %v5263_v11 }
 0x427   : > { %v2281_v21 = vmul.f32 %v2279_v27, %v4782_v50 }
 0x428   : > { %v2282_v36 = vmul.f32 %v2280_v1, %v4784_v42  ;;  %v5264_v1 = vld [vmem:[#allocation90_spill] sm:$0xff] }
 0x42e   : > { %v2783_v17 = vpop.eup %2782 }
 0x42f   : > { %v2785_v35 = vpop.eup %2784  ;;  %v2314_v53 = vmul.f32 %v2783_v17, %v4782_v50 }
 0x430   : > { %v2315_v2 = vmul.f32 %v2785_v35, %v4784_v42 }
 0x431   : > { %v2316_v30 = vadd.f32 %v2314_v53, %v4507_v33 }
 0x432   : > { %v2787_v15 = vpop.eup %2786  ;;  %v2317_v41 = vadd.f32 %v2315_v2, %v4509_v56 }
 0x433   : > { %v2789_v48 = vpop.eup %2788  ;;  %v2318_v59 = vadd.f32 %v2804_v46, %v2316_v30  ;;  %v2244_v55 = vmul.f32 %v2787_v15, %v4507_v33  ;;  %v2389_v33 = vld [vmem:[%s4892_s9] sm:$0xff]  ;;  %v5265_v30 = vld [vmem:[#allocation91_spill] sm:$0xff] }
 0x434   : > { %v2319_v51 = vadd.f32 %v2805_v34, %v2317_v41  ;;  %v2245_v11 = vmul.f32 %v2789_v48, %v4509_v56 }
 0x435   : > { %v2246_v3 = vmul.f32 %v2244_v55, %v4782_v50  ;;  %v2320_v63 = vadd.f32 %v2318_v59, %v2281_v21  ;;  %v5266_v21 = vld [vmem:[#allocation87_spill] sm:$0xff]  ;;  %v5267_v59 = vld [vmem:[#allocation88_spill] sm:$0xff] }
 0x436   : > { %v2247_v23 = vmul.f32 %v2245_v11, %v4784_v42  ;;  %v2321_v52 = vadd.f32 %v2319_v51, %v2282_v36  ;;  %v2388_v36 = vld [vmem:[%s4891_s8] sm:$0xff] }
 0x437   : > { %v2322_v16 = vadd.f32 %v2320_v63, %v2246_v3 }
 0x438   : > { %v2323_v18 = vadd.f32 %v2321_v52, %v2247_v23 }
 0x439   : > { %2380 = vrot.lane.b32.xlu0 %v2322_v16, %s2843_s12 }
 0x43a   : > { %2382 = vrot.lane.b32.xlu1 %v2323_v18, %s2843_s12 }
 0x43d   : > { %2374 = vrot.lane.b32.xlu0 %v2323_v18, %s2841_s21 }
 0x43e   : > { %2372 = vrot.lane.b32.xlu1 %v2322_v16, %s2841_s21 }
 0x441   : > { %2366 = vrot.lane.b32.xlu0 %v2323_v18, %s2838_s29 }
 0x442   : > { %2364 = vrot.lane.b32.xlu1 %v2322_v16, %s2838_s29 }
 0x445   : > { %2358 = vrot.lane.b32.xlu0 %v2323_v18, %s2835_s15 }
 0x446   : > { %2356 = vrot.lane.b32.xlu1 %v2322_v16, %s2835_s15  ;;  %s399_s15 = scalar_lea.vmem %s4893_s10, %s4233_s25 }
 0x449   : > { %2350 = vrot.lane.b32.xlu0 %v2323_v18, %s2831_s19 }
 0x44a   : > { %2348 = vrot.lane.b32.xlu1 %v2322_v16, %s2831_s19 }
 0x44d   : > { %2342 = vrot.lane.b32.xlu0 %v2323_v18, %s2828_s11 }
 0x44e   : > { %2340 = vrot.lane.b32.xlu1 %v2322_v16, %s2828_s11 }
 0x451   : > { %2334 = vrot.lane.b32.xlu0 %v2323_v18, %s2825_s27 }
 0x452   : > { %2332 = vrot.lane.b32.xlu1 %v2322_v16, %s2825_s27 }
 0x455   : > { %2326 = vrot.lane.b32.xlu0 %v2323_v18, %s2824_s26 }
 0x456   : > { %2324 = vrot.lane.b32.xlu1 %v2322_v16, %s2824_s26 }
 0x45a   : > { %2392 = vperm.xlu1 %2759, %v2389_v33  }
 0x4ab   : > { %v2381_v56 = vpop.permute.xlu0 %2380 }
 0x4ac   : > { %v2383_v50 = vpop.permute.xlu1 %2382 }
 0x4ad   : > { %v2384_v42 = vsel %vm797_vm14, %v2381_v56, %v2383_v50  ;;  %v2385_v32 = vsel %vm797_vm14, %v2383_v50, %v2381_v56 }
 0x4ae   : > { %v2387_v4 = vmul.f32 %v2385_v32, %v4763_v45  ;;  %v2386_v29 = vmul.f32 %v2384_v42, %v4760_v10 }
 0x4af   : > { %v2375_v31 = vpop.permute.xlu0 %2374 }
 0x4b0   : > { %v2373_v26 = vpop.permute.xlu1 %2372  ;;  %2413 = vmatprep.subr.mxu1 %v2387_v4 }
 0x4b1   : > { %v2376_v54 = vsel %vm746_vm10, %v2373_v26, %v2375_v31  ;;  %v2377_v60 = vsel %vm746_vm10, %v2375_v31, %v2373_v26  ;;  %2414 = vmatpush1.msra.mxu1 %v2386_v29 }
 0x4b2   : > { %v2378_v8 = vmul.f32 %v2376_v54, %v4710_v44  ;;  %v2379_v25 = vmul.f32 %v2377_v60, %v4713_v19 }
 0x4b3   : > { %v2367_v6 = vpop.permute.xlu0 %2366 }
 0x4b4   : > { %v2365_v58 = vpop.permute.xlu1 %2364  ;;  %2415 = vmatprep.subr.mxu1 %v2379_v25 }
 0x4b5   : > { %v2368_v10 = vsel %vm695_vm7, %v2365_v58, %v2367_v6  ;;  %v2369_v45 = vsel %vm695_vm7, %v2367_v6, %v2365_v58  ;;  %2416 = vmatpush1.msra.mxu1 %v2378_v8 }
 0x4b6   : > { %v2370_v28 = vmul.f32 %v2368_v10, %v4612_v7  ;;  %v2371_v13 = vmul.f32 %v2369_v45, %v4615_v24 }
 0x4b7   : > { %v2359_v61 = vpop.permute.xlu0 %2358 }
 0x4b8   : > { %v2357_v47 = vpop.permute.xlu1 %2356  ;;  %2417 = vmatprep.subr.mxu1 %v2371_v13 }
 0x4b9   : > { %v2360_v44 = vsel %vm644_vm3, %v2357_v47, %v2359_v61  ;;  %v2361_v19 = vsel %vm644_vm3, %v2359_v61, %v2357_v47  ;;  %2418 = vmatpush1.msra.mxu1 %v2370_v28 }
 0x4ba   : > { %v2362_v12 = vmul.f32 %v2360_v44, %v4578_v62  ;;  %v2363_v22 = vmul.f32 %v2361_v19, %v4581_v0 }
 0x4bb   : > { %v2351_v37 = vpop.permute.xlu0 %2350 }
 0x4bc   : > { %v2349_v38 = vpop.permute.xlu1 %2348  ;;  %2419 = vmatprep.subr.mxu1 %v2363_v22 }
 0x4bd   : > { %v2352_v7 = vsel %vm572_vm4, %v2349_v38, %v2351_v37  ;;  %v2353_v24 = vsel %vm572_vm4, %v2351_v37, %v2349_v38  ;;  %2420 = vmatpush1.msra.mxu1 %v2362_v12 }
 0x4be   : > { %v2354_v57 = vmul.f32 %v2353_v24, %v5250_v9  ;;  %v2355_v39 = vmul.f32 %v2352_v7, %v5251_v43  ;;  %2421 = vmatprep.subr.mxu1 %v2323_v18 }
 0x4bf   : > { %2422 = vmatpush1.msra.mxu1 %v2322_v16  ;;  %v2343_v40 = vpop.permute.xlu0 %2342 }
 0x4c0   : > { %v2341_v62 = vpop.permute.xlu1 %2340  ;;  %2423 = vmatprep.subr.mxu1 %v2355_v39 }
 0x4c1   : > { %v2344_v0 = vsel %vm521_vm2, %v2341_v62, %v2343_v40  ;;  %v2345_v14 = vsel %vm521_vm2, %v2343_v40, %v2341_v62  ;;  %2424 = vmatpush1.msra.mxu1 %v2354_v57 }
 0x4c2   : > { %v2346_v17 = vmul.f32 %v2345_v14, %v5238_v49  ;;  %v2347_v35 = vmul.f32 %v2344_v0, %v5245_v20 }
 0x4c3   : > { %v2335_v27 = vpop.permute.xlu0 %2334 }
 0x4c4   : > { %v2333_v9 = vpop.permute.xlu1 %2332  ;;  %2425 = vmatprep.subr.mxu1 %v2347_v35 }
 0x4c5   : > { %v2336_v43 = vsel %vm470_vm12, %v2333_v9, %v2335_v27  ;;  %v2337_v53 = vsel %vm470_vm12, %v2335_v27, %v2333_v9  ;;  %2426 = vmatpush1.msra.mxu1 %v2346_v17  ;;  %vm2395_vm12 = vcmask 588800  }
 0x4c6   : > { %v2338_v2 = vmul.f32 %v2337_v53, %v5264_v1  ;;  %v2339_v15 = vmul.f32 %v2336_v43, %v5265_v30 }
 0x4c7   : > { %v2327_v41 = vpop.permute.xlu0 %2326 }
 0x4c8   : > { %v2325_v48 = vpop.permute.xlu1 %2324  ;;  %2427 = vmatprep.subr.mxu1 %v2339_v15 }
 0x4c9   : > { %v2328_v49 = vsel %vm420_vm11, %v2325_v48, %v2327_v41  ;;  %v2329_v20 = vsel %vm420_vm11, %v2327_v41, %v2325_v48  ;;  %2428 = vmatpush1.msra.mxu1 %v2338_v2 }
 0x4ca   : > { %v2330_v46 = vmul.f32 %v2329_v20, %v5266_v21  ;;  %v2331_v55 = vmul.f32 %v2328_v49, %v5267_v59 }
 0x4cc   : > { %2429 = vmatprep.subr.mxu1 %v2331_v55 }
 0x4cd   : > { %2430 = vmatpush1.msra.mxu1 %v2330_v46 }
 0x4ce   : > { %2710 = vmatmul.mubr.msk.f32.vlgmr.msra.gmra.mxu1 %vm2395_vm12, %v2388_v36 }
 0x4d5   : > { %v2393_v34 = vpop.permute.xlu1 %2392 }
 0x58e   : > { %v2465_v51 = vpop.f32.mrf.mxu1 }
 0x58f   : > { %v2466_v11 = vadd.f32 %v2465_v51, %v2393_v34 }
 0x590   : > { %v2467_v3 = vpop.f32.mrf.mxu1 }
 0x591   : > { %v2468_v63 = vadd.f32 %v2467_v3, %v2393_v34  ;;  %v2470_v5 = vmax.f32 %v2466_v11, 0.0 }
 0x593   : > { %v2471_v23 = vmax.f32 %v2468_v63, 0.0 }
 0x595   : > { %v2472_v52 = vadd.f32 %v2471_v23, %v2470_v5 }
 0x597   : > { %2473 = vadd.xlane.f32.xlu0 %v2472_v52 }
 0x620   : > { %v2474_v16 = vpop.xlane.xlu0 %2473 }
 0x621   : > { %v2475_v18 = vmul.f32 0.00390625, %v2474_v16 }
 0x623   : > { %v2476_v33 = vsub.f32 %v2470_v5, %v2475_v18  ;;  %v2477_v56 = vsub.f32 %v2471_v23, %v2475_v18 }
 0x625   : > { %v2478_v50 = vmul.f32 %v2476_v33, %v2476_v33  ;;  %v2479_v42 = vmul.f32 %v2477_v56, %v2477_v56 }
 0x627   : > { %v2480_v32 = vadd.f32 %v2479_v42, %v2478_v50 }
 0x629   : > { %2481 = vadd.xlane.f32.xlu1 %v2480_v32 }
 0x6b2   : > { %v2482_v4 = vpop.xlane.xlu1 %2481 }
 0x6b3   : > { %v2483_v29 = vmul.f32 0.003921569, %v2482_v4 }
 0x6b5   : > { %v2484_v31 = vadd.f32 0.0001, %v2483_v29 }
 0x6b7   : > { %v2485_v26 = vmul.f32 4.0, %v2484_v31 }
 0x6b9   : > { %2790 = vrcp.f32 %v2485_v26 }
 0x6c6   : > { %v2791_v54 = vpop.eup %2790 }
 0x6c7   : > { %v2487_v60 = vmul.f32 %v2791_v54, %v2478_v50  ;;  %v2488_v8 = vmul.f32 %v2791_v54, %v2479_v42 }
 0x6c9   : > { %v2489_v25 = vadd.f32 0.5, %v2487_v60  ;;  %v2490_v6 = vadd.f32 0.5, %v2488_v8 }
 0x6cb   : > { %v2711_v58 = vmul.f32 -1.442695, %v2489_v25  ;;  %v2712_v10 = vmul.f32 -1.442695, %v2490_v6 }
 0x6cd   : > { %2792 = vpow2.f32 %v2711_v58 }
 0x6ce   : > { %2794 = vpow2.f32 %v2712_v10 }
 0x6da   : > { %v2793_v45 = vpop.eup %2792 }
 0x6db   : > { %v2795_v28 = vpop.eup %2794  ;;  %v2497_v13 = vadd.f32 1.0, %v2793_v45 }
 0x6dc   : > { %v2498_v61 = vadd.f32 1.0, %v2795_v28 }
 0x6dd   : > { %2796 = vrcp.f32 %v2497_v13 }
 0x6de   : > { %2798 = vrcp.f32 %v2498_v61 }
 0x6ea   : > { %v2797_v47 = vpop.eup %2796 }
 0x6eb   : > { %v2799_v44 = vpop.eup %2798  ;;  %v2503_v19 = vmul.f32 %v2797_v47, %v2470_v5 }
 0x6ec   : > { %v2504_v12 = vmul.f32 %v2799_v44, %v2471_v23 }
 0x6ed   : > { %2505 = vst [vmem:[%s399_s15] sm:$0xff] %v2503_v19 }
 0x6ee   : > { %2506 = vst [vmem:[%s399_s15 + $0x8] sm:$0xff] %v2504_v12 }
 0x6ef PF: > { %s20_s13 = sadd.s32 1, %s2812_s13  }
 0x6f0   : > { %p17_p4 = scmp.ge.s32.totalorder %s20_s13, 4  }
 0x6f2   :  { %19 = sbr.rel (!%p17_p4) target bundleno = 1 (0x1), region = 165 }

</bundles_post_ra>
